<compile_context>
chip_gen: v5e
topology: v5e:2x2
jax: 0.10.0
libtpu: 0.0.40
codegen_flags: <defaults>
</compile_context>

<pallas_src>
import functools

import jax
import jax.numpy as jnp
import numpy as np
from jax import lax
from jax.experimental import pallas as pl
from jax.experimental.pallas import tpu as pltpu

BN_EPS = 1e-5       # PyTorch BatchNorm2d default
LANE = 128          # TPU lane width: all channel dims are zero-padded to this


# ------------------------------ Pallas kernels -------------------------------

def conv_bn_relu_pool_kernel(x_ref, w_ref, scale_ref, bias_ref, *refs, H, W, pool):
    """Fused 3x3 conv + folded inference BatchNorm + ReLU (+ 2x2 max-pool).

    x_ref:     (1, H+2, W+2, Cp)  bf16, spatially zero-padded, lane-padded input
    w_ref:     (9*Cp, Cp)         bf16 im2col weights, row order (kh, kw, cin)
    scale_ref: (1, Cp) f32        gamma / sqrt(running_var + eps)   (0 in padding)
    bias_ref:  (1, Cp) f32        (conv_b - running_mean) * scale + beta
    sel_ref:   (2, Ho*Wo, Ho*W)   bf16 constant 0/1 W-pool selectors (pool only)
    o_ref:     (1, Ho, Wo, Cp)    bf16 output (pooled when `pool`)
    """
    if pool:
        sel_ref, o_ref = refs
    else:
        (o_ref,) = refs
    Cp = w_ref.shape[1]
    M = H * W
    # in-VMEM im2col: 9 shifted halo windows -> one (M, 9*Cp) bf16 lhs.
    # The halo is upcast to f32 before the +0/+1/+2 sublane-offset slices so we
    # only rely on (proven) f32 sublane shifts, not packed-bf16 offset slices.
    xw = x_ref[0].astype(jnp.float32)                        # (H+2, W+2, Cp)
    taps = []
    for kh in range(3):
        for kw in range(3):
            taps.append(
                xw[kh:kh + H, kw:kw + W, :].reshape(M, Cp).astype(w_ref.dtype))
    lhs = jnp.concatenate(taps, axis=1)                      # (M, 9*Cp) bf16
    # single MXU matmul (K = 9*Cp), f32 accumulation
    acc = jnp.dot(lhs, w_ref[...], preferred_element_type=jnp.float32)
    # folded BatchNorm + ReLU epilogue in f32 (VPU); scale/bias stay resident
    y = jnp.maximum(acc * scale_ref[...] + bias_ref[...], 0.0)        # (M, Cp)
    if pool:
        Ho, Wo = H // 2, W // 2
        # bf16 rounding commutes with max (monotone), so pooling on the bf16
        # values gives bit-identical stored output while keeping MXU in bf16.
        yb = y.astype(jnp.bfloat16)
        # H-direction max: tile-aligned slices on the sublane dim (VPU, ~free).
        y2 = yb.reshape(Ho, 2 * W, Cp)
        yh = jnp.maximum(y2[:, :W, :], y2[:, W:, :]).reshape(Ho * W, Cp)
        # W-direction gather: 2 tiny constant 0/1 selection matmuls (MXU).
        p0 = jnp.dot(sel_ref[0], yh, preferred_element_type=jnp.float32)
        p1 = jnp.dot(sel_ref[1], yh, preferred_element_type=jnp.float32)
        o_ref[0] = jnp.maximum(p0, p1).reshape(Ho, Wo, Cp).astype(o_ref.dtype)
    else:
        o_ref[0] = y.reshape(H, W, Cp).astype(o_ref.dtype)


def gap_linear_kernel(x_ref, w_ref, b_ref, o_ref):
    """AdaptiveAvgPool2d(1) + Flatten + Linear over a batch block.

    x_ref: (NB, Ho, Wo, Cp) bf16; w_ref: (Cp, Tp) bf16; b_ref: (1, Tp) f32;
    o_ref: (NB, 1, Tp) f32.
    """
    NB, Ho, Wo, Cp = x_ref.shape
    x = x_ref[...].astype(jnp.float32).reshape(NB, Ho * Wo, Cp)
    feat = jnp.mean(x, axis=1)                                        # (NB, Cp)
    out = jnp.dot(feat.astype(w_ref.dtype), w_ref[...],
                  preferred_element_type=jnp.float32) + b_ref[...]
    o_ref[:, 0, :] = out


# --------------------------- wrappers (glue) ---------------------------------

def _parallel():
    return pltpu.CompilerParams(dimension_semantics=("parallel",))


def _pool_selectors(H, W):
    """Constant 0/1 W-pool selectors (2, Ho*Wo, Ho*W), built once on the host."""
    Ho, Wo = H // 2, W // 2
    Mo, Mi = Ho * Wo, Ho * W
    sel = np.zeros((2, Mo, Mi), np.float32)
    q = np.arange(Mo)
    ho, wo = q // Wo, q % Wo
    sel[0, q, ho * W + 2 * wo] = 1.0
    sel[1, q, ho * W + 2 * wo + 1] = 1.0
    return jnp.asarray(sel, jnp.bfloat16)


def conv_bn_relu_pool(x, layer, *, pool):
    """x: (N, H, W, LANE) lane-padded activations. Returns (N, Ho, Wo, LANE) bf16."""
    N, H, W, Cp = x.shape
    Cout, Cin = layer['w'].shape[:2]
    assert Cp == LANE and Cin <= LANE and Cout <= LANE
    # TODO(synk): in-kernel reshapes assume W is a multiple of 8 (16 when
    # pooling, for bf16 tile alignment); true for this model's 16x16 / 8x8 maps.
    assert W % 8 == 0
    assert (not pool) or (H % 2 == 0 and W % 16 == 0)
    Hp, Wp = H + 2, W + 2
    # glue: spatial zero-pad is the ONLY HBM copy of the activation (bf16)
    xp = jnp.pad(x, ((0, 0), (1, 1), (1, 1), (0, 0))).astype(jnp.bfloat16)
    # glue: weights (Cout, Cin, 3, 3) -> (3,3,Cin,Cout) -> lane-pad -> (9*Cp, Cp)
    wt = jnp.transpose(layer['w'], (2, 3, 1, 0))
    wt = jnp.pad(wt, ((0, 0), (0, 0), (0, Cp - Cin), (0, Cp - Cout)))
    wt = wt.reshape(9 * Cp, Cp).astype(jnp.bfloat16)
    # glue: fold conv bias + inference BatchNorm into one f32 scale/bias pair
    scale = layer['gamma'] / jnp.sqrt(layer['rvar'] + BN_EPS)
    bias = (layer['b'] - layer['rmean']) * scale + layer['beta']
    scale_p = jnp.pad(scale, (0, Cp - Cout)).reshape(1, Cp).astype(jnp.float32)
    bias_p = jnp.pad(bias, (0, Cp - Cout)).reshape(1, Cp).astype(jnp.float32)
    Ho, Wo = (H // 2, W // 2) if pool else (H, W)
    in_specs = [
        pl.BlockSpec((1, Hp, Wp, Cp), lambda n: (n, 0, 0, 0)),
        pl.BlockSpec((9 * Cp, Cp), lambda n: (0, 0)),   # resident weights
        pl.BlockSpec((1, Cp), lambda n: (0, 0)),        # resident scale
        pl.BlockSpec((1, Cp), lambda n: (0, 0)),        # resident bias
    ]
    args = [xp, wt, scale_p, bias_p]
    if pool:
        sel = _pool_selectors(H, W)
        in_specs.append(pl.BlockSpec(sel.shape, lambda n: (0, 0, 0)))  # resident
        args.append(sel)
    kernel = functools.partial(conv_bn_relu_pool_kernel, H=H, W=W, pool=pool)
    return pl.pallas_call(
        kernel,
        out_shape=jax.ShapeDtypeStruct((N, Ho, Wo, Cp), jnp.bfloat16),
        grid=(N,),
        in_specs=in_specs,
        out_specs=pl.BlockSpec((1, Ho, Wo, Cp), lambda n: (n, 0, 0, 0)),
        compiler_params=_parallel(),
    )(*args)


def gap_linear(x, w_tc, b_t):
    """x: (N, Ho, Wo, LANE) bf16; w_tc: (T, C); b_t: (T,). Returns (N, T) f32."""
    N, Ho, Wo, Cp = x.shape
    T, C = w_tc.shape
    Tp = LANE
    assert C <= Cp and T <= Tp
    # largest batch block <= 8 that divides N (one matmul per grid step)
    NB = 1
    for d in range(min(N, 8), 0, -1):
        if N % d == 0:
            NB = d
            break
    w_p = jnp.pad(w_tc.T.astype(jnp.float32),
                  ((0, Cp - C), (0, Tp - T))).astype(jnp.bfloat16)     # (Cp, Tp)
    b_p = jnp.pad(b_t.astype(jnp.float32), (0, Tp - T)).reshape(1, Tp)
    out = pl.pallas_call(
        gap_linear_kernel,
        out_shape=jax.ShapeDtypeStruct((N, 1, Tp), jnp.float32),
        grid=(N // NB,),
        in_specs=[
            pl.BlockSpec((NB, Ho, Wo, Cp), lambda n: (n, 0, 0, 0)),
            pl.BlockSpec((Cp, Tp), lambda n: (0, 0)),
            pl.BlockSpec((1, Tp), lambda n: (0, 0)),
        ],
        out_specs=pl.BlockSpec((NB, 1, Tp), lambda n: (n, 0, 0)),
        compiler_params=_parallel(),
    )(x, w_p, b_p)
    return out.reshape(N, Tp)[:, :T]       # drop the lane padding of the target


def conv_forward(params, x_nchw):
    """Forward pass of Conv: normalize -> [conv+BN+ReLU (+MaxPool except last)]
    -> AdaptiveAvgPool2d(1) -> Flatten -> Linear."""
    # TODO(synk): normalize() in the source repo uses cfg dataset stats; fixed
    # per-channel constants (0.5 / 0.25) are used here.  The optional
    # feature_split masking and the cfg/loss_fn branch of forward() are omitted.
    mean, std = params['norm_mean'], params['norm_std']
    x = (x_nchw - mean[None, :, None, None]) / std[None, :, None, None]
    x = jnp.transpose(x, (0, 2, 3, 1))                          # NCHW -> NHWC
    cin = x.shape[-1]
    assert cin <= LANE
    x = jnp.pad(x, ((0, 0), (0, 0), (0, 0), (0, LANE - cin)))   # lane-pad chans
    x = x.astype(jnp.bfloat16)
    n_layers = len(params['convs'])
    for i, layer in enumerate(params['convs']):
        x = conv_bn_relu_pool(x, layer, pool=(i < n_layers - 1))
    target = gap_linear(x, params['linear_w'], params['linear_b'])
    return {'target': target}


# --------------------------- params & references -----------------------------

def init_params(key, data_shape, hidden_size, target_size):
    cin = data_shape[0]
    chans = [cin] + list(hidden_size)
    keys = jax.random.split(key, len(hidden_size) * 6 + 2)
    ki = 0
    params = {'convs': []}
    for i in range(len(hidden_size)):
        ci, co = chans[i], chans[i + 1]
        w = jax.random.normal(keys[ki], (co, ci, 3, 3), jnp.float32) / np.sqrt(ci * 9.0); ki += 1
        b = 0.1 * jax.random.normal(keys[ki], (co,), jnp.float32); ki += 1
        gamma = 1.0 + 0.1 * jax.random.normal(keys[ki], (co,), jnp.float32); ki += 1
        beta = 0.1 * jax.random.normal(keys[ki], (co,), jnp.float32); ki += 1
        rmean = 0.1 * jax.random.normal(keys[ki], (co,), jnp.float32); ki += 1
        rvar = jax.random.uniform(keys[ki], (co,), jnp.float32, 0.5, 1.5); ki += 1
        params['convs'].append(dict(w=w, b=b, gamma=gamma, beta=beta,
                                    rmean=rmean, rvar=rvar))
    c_last, T = hidden_size[-1], target_size
    params['linear_w'] = jax.random.normal(keys[ki], (T, c_last), jnp.float32) / np.sqrt(c_last); ki += 1
    params['linear_b'] = 0.1 * jax.random.normal(keys[ki], (T,), jnp.float32)
    params['norm_mean'] = jnp.full((cin,), 0.5, jnp.float32)
    params['norm_std'] = jnp.full((cin,), 0.25, jnp.float32)
    return params


def reference_forward(params, x_nchw):
    """Pure-JAX float32 (XLA) reference."""
    mean, std = params['norm_mean'], params['norm_std']
    x = (x_nchw - mean[None, :, None, None]) / std[None, :, None, None]
    n_layers = len(params['convs'])
    for i, layer in enumerate(params['convs']):
        y = lax.conv_general_dilated(x, layer['w'], (1, 1), ((1, 1), (1, 1)),
                                     dimension_numbers=('NCHW', 'OIHW', 'NCHW'),
                                     precision=lax.Precision.HIGHEST)
        y = y + layer['b'][None, :, None, None]
        s = layer['gamma'] / jnp.sqrt(layer['rvar'] + BN_EPS)
        y = (y - layer['rmean'][None, :, None, None]) * s[None, :, None, None] \
            + layer['beta'][None, :, None, None]
        x = jnp.maximum(y, 0.0)
        if i < n_layers - 1:
            N, C, H, W = x.shape
            x = x.reshape(N, C, H // 2, 2, W // 2, 2).max(axis=(3, 5))
    feat = x.mean(axis=(2, 3))
    return jnp.matmul(feat, params['linear_w'].T,
                      precision=lax.Precision.HIGHEST) + params['linear_b']


def matched_reference_forward(params, x_nchw):
    """XLA reference mirroring the kernel's bf16 rounding points exactly
    (bf16 operands, f32 accumulation/epilogue): differences vs. the Pallas path
    come only from f32 accumulation order."""
    def rb(a):  # round to bf16 and back
        return a.astype(jnp.bfloat16).astype(jnp.float32)
    mean, std = params['norm_mean'], params['norm_std']
    x = (x_nchw - mean[None, :, None, None]) / std[None, :, None, None]
    x = rb(x)
    n_layers = len(params['convs'])
    for i, layer in enumerate(params['convs']):
        y = lax.conv_general_dilated(x, rb(layer['w']), (1, 1), ((1, 1), (1, 1)),
                                     dimension_numbers=('NCHW', 'OIHW', 'NCHW'),
                                     precision=lax.Precision.HIGHEST)
        scale = layer['gamma'] / jnp.sqrt(layer['rvar'] + BN_EPS)
        bias = (layer['b'] - layer['rmean']) * scale + layer['beta']
        x = jnp.maximum(y * scale[None, :, None, None]
                        + bias[None, :, None, None], 0.0)
        if i < n_layers - 1:
            N, C, H, W = x.shape
            x = x.reshape(N, C, H // 2, 2, W // 2, 2).max(axis=(3, 5))
        x = rb(x)                                  # bf16 activation store
    feat = rb(x.mean(axis=(2, 3)))
    return jnp.matmul(feat, rb(params['linear_w']).T,
                      precision=lax.Precision.HIGHEST) + params['linear_b']


# ----------------------------------- main -------------------------------------

if __name__ == "__main__":
    data_shape = (3, 16, 16)      # (C, H, W)
    hidden_size = [8, 16]
    target_size = 10
    batch = 2

    key = jax.random.PRNGKey(0)
    pkey, xkey = jax.random.split(key)
    params = init_params(pkey, data_shape, hidden_size, target_size)
    x = jax.random.normal(xkey, (batch,) + data_shape, jnp.float32)

    forward = jax.jit(conv_forward)
    out = forward(params, x)
    target = np.asarray(jax.block_until_ready(out['target']))

    # Tight check vs. an XLA reference with identical bf16 rounding points:
    # remaining differences are f32 accumulation-order only (<< 2e-3).
    matched = np.asarray(matched_reference_forward(params, x))
    np.testing.assert_allclose(target, matched, rtol=2e-3, atol=2e-3)

    # Coarse sanity bound vs. the pure-f32 reference (bounds the end-to-end
    # drift introduced by using bf16 MXU operands).
    ref = np.asarray(reference_forward(params, x))
    np.testing.assert_allclose(target, ref, rtol=5e-2, atol=1e-1)

    print("KERNEL_OK")
</pallas_src>

<mosaic_0001>
module attributes {stable_mosaic.version = 11 : i64} {
  func.func @conv_bn_relu_pool_kernel(%arg0: i32, %arg1: memref<1x18x18x128xbf16, #tpu.memory_space<vmem>>, %arg2: memref<1152x128xbf16, #tpu.memory_space<vmem>>, %arg3: memref<1x128xf32, #tpu.memory_space<vmem>>, %arg4: memref<1x128xf32, #tpu.memory_space<vmem>>, %arg5: memref<2x64x128xbf16, #tpu.memory_space<vmem>>, %arg6: memref<1x8x8x128xbf16, #tpu.memory_space<vmem>>) attributes {dimension_semantics = [#tpu.dimension_semantics<parallel>], iteration_bounds = array<i64: 2>, scalar_prefetch = 0 : i64, scratch_operands = 0 : i64, tpu.core_type = #tpu.core_type<tc>, window_params = [{transform_indices = @transform_0, window_bounds = array<i64: 1, 18, 18, 128>}, {pipeline_mode = #tpu.pipeline_mode<synchronous>, transform_indices = @transform_1, window_bounds = array<i64: 1152, 128>}, {pipeline_mode = #tpu.pipeline_mode<synchronous>, transform_indices = @transform_2, window_bounds = array<i64: 1, 128>}, {pipeline_mode = #tpu.pipeline_mode<synchronous>, transform_indices = @transform_3, window_bounds = array<i64: 1, 128>}, {pipeline_mode = #tpu.pipeline_mode<synchronous>, transform_indices = @transform_4, window_bounds = array<i64: 2, 64, 128>}, {transform_indices = @transform_5, window_bounds = array<i64: 1, 8, 8, 128>}]} {
    %c0 = arith.constant 0 : index
    %c0_0 = arith.constant 0 : index
    %c0_1 = arith.constant 0 : index
    %c0_2 = arith.constant 0 : index
    %0 = vector.load %arg1[%c0, %c0_0, %c0_1, %c0_2] : memref<1x18x18x128xbf16, #tpu.memory_space<vmem>>, vector<1x18x18x128xbf16>
    %1 = vector.shape_cast %0 : vector<1x18x18x128xbf16> to vector<18x18x128xbf16>
    %2 = arith.extf %1 : vector<18x18x128xbf16> to vector<18x18x128xf32>
    %3 = vector.extract_strided_slice %2 {offsets = [0, 0, 0], sizes = [16, 16, 128], strides = [1, 1, 1]} : vector<18x18x128xf32> to vector<16x16x128xf32>
    %4 = vector.shape_cast %3 : vector<16x16x128xf32> to vector<256x128xf32>
    %5 = arith.truncf %4 : vector<256x128xf32> to vector<256x128xbf16>
    %6 = vector.extract_strided_slice %2 {offsets = [0, 1, 0], sizes = [16, 16, 128], strides = [1, 1, 1]} : vector<18x18x128xf32> to vector<16x16x128xf32>
    %7 = vector.shape_cast %6 : vector<16x16x128xf32> to vector<256x128xf32>
    %8 = arith.truncf %7 : vector<256x128xf32> to vector<256x128xbf16>
    %9 = vector.extract_strided_slice %2 {offsets = [0, 2, 0], sizes = [16, 16, 128], strides = [1, 1, 1]} : vector<18x18x128xf32> to vector<16x16x128xf32>
    %10 = vector.shape_cast %9 : vector<16x16x128xf32> to vector<256x128xf32>
    %11 = arith.truncf %10 : vector<256x128xf32> to vector<256x128xbf16>
    %12 = vector.extract_strided_slice %2 {offsets = [1, 0, 0], sizes = [16, 16, 128], strides = [1, 1, 1]} : vector<18x18x128xf32> to vector<16x16x128xf32>
    %13 = vector.shape_cast %12 : vector<16x16x128xf32> to vector<256x128xf32>
    %14 = arith.truncf %13 : vector<256x128xf32> to vector<256x128xbf16>
    %15 = vector.extract_strided_slice %2 {offsets = [1, 1, 0], sizes = [16, 16, 128], strides = [1, 1, 1]} : vector<18x18x128xf32> to vector<16x16x128xf32>
    %16 = vector.shape_cast %15 : vector<16x16x128xf32> to vector<256x128xf32>
    %17 = arith.truncf %16 : vector<256x128xf32> to vector<256x128xbf16>
    %18 = vector.extract_strided_slice %2 {offsets = [1, 2, 0], sizes = [16, 16, 128], strides = [1, 1, 1]} : vector<18x18x128xf32> to vector<16x16x128xf32>
    %19 = vector.shape_cast %18 : vector<16x16x128xf32> to vector<256x128xf32>
    %20 = arith.truncf %19 : vector<256x128xf32> to vector<256x128xbf16>
    %21 = vector.extract_strided_slice %2 {offsets = [2, 0, 0], sizes = [16, 16, 128], strides = [1, 1, 1]} : vector<18x18x128xf32> to vector<16x16x128xf32>
    %22 = vector.shape_cast %21 : vector<16x16x128xf32> to vector<256x128xf32>
    %23 = arith.truncf %22 : vector<256x128xf32> to vector<256x128xbf16>
    %24 = vector.extract_strided_slice %2 {offsets = [2, 1, 0], sizes = [16, 16, 128], strides = [1, 1, 1]} : vector<18x18x128xf32> to vector<16x16x128xf32>
    %25 = vector.shape_cast %24 : vector<16x16x128xf32> to vector<256x128xf32>
    %26 = arith.truncf %25 : vector<256x128xf32> to vector<256x128xbf16>
    %27 = vector.extract_strided_slice %2 {offsets = [2, 2, 0], sizes = [16, 16, 128], strides = [1, 1, 1]} : vector<18x18x128xf32> to vector<16x16x128xf32>
    %28 = vector.shape_cast %27 : vector<16x16x128xf32> to vector<256x128xf32>
    %29 = arith.truncf %28 : vector<256x128xf32> to vector<256x128xbf16>
    %30 = tpu.concatenate %5, %8, %11, %14, %17, %20, %23, %26, %29 in 1 : vector<256x128xbf16>, vector<256x128xbf16>, vector<256x128xbf16>, vector<256x128xbf16>, vector<256x128xbf16>, vector<256x128xbf16>, vector<256x128xbf16>, vector<256x128xbf16>, vector<256x128xbf16> -> vector<256x1152xbf16>
    %c0_3 = arith.constant 0 : index
    %c0_4 = arith.constant 0 : index
    %31 = vector.load %arg2[%c0_3, %c0_4] : memref<1152x128xbf16, #tpu.memory_space<vmem>>, vector<1152x128xbf16>
    %cst = arith.constant dense<0.000000e+00> : vector<256x128xf32>
    %32 = tpu.matmul %30, %31, %cst {dimension_numbers = #tpu.dot_dimension_numbers<[1], [0], [0], [1], [0, 0, 1, 1], [], []>} : vector<256x1152xbf16>, vector<1152x128xbf16>, vector<256x128xf32> -> vector<256x128xf32>
    %c0_5 = arith.constant 0 : index
    %c0_6 = arith.constant 0 : index
    %33 = vector.load %arg3[%c0_5, %c0_6] : memref<1x128xf32, #tpu.memory_space<vmem>>, vector<1x128xf32>
    %34 = vector.broadcast %33 : vector<1x128xf32> to vector<256x128xf32>
    %35 = arith.mulf %32, %34 : vector<256x128xf32>
    %c0_7 = arith.constant 0 : index
    %c0_8 = arith.constant 0 : index
    %36 = vector.load %arg4[%c0_7, %c0_8] : memref<1x128xf32, #tpu.memory_space<vmem>>, vector<1x128xf32>
    %37 = vector.broadcast %36 : vector<1x128xf32> to vector<256x128xf32>
    %38 = arith.addf %35, %37 : vector<256x128xf32>
    %cst_9 = arith.constant 0.000000e+00 : f32
    %39 = vector.broadcast %cst_9 : f32 to vector<256x128xf32>
    %40 = arith.maximumf %38, %39 : vector<256x128xf32>
    %41 = arith.truncf %40 : vector<256x128xf32> to vector<256x128xbf16>
    %42 = vector.shape_cast %41 : vector<256x128xbf16> to vector<8x32x128xbf16>
    %43 = vector.extract_strided_slice %42 {offsets = [0, 0, 0], sizes = [8, 16, 128], strides = [1, 1, 1]} : vector<8x32x128xbf16> to vector<8x16x128xbf16>
    %44 = vector.extract_strided_slice %42 {offsets = [0, 16, 0], sizes = [8, 16, 128], strides = [1, 1, 1]} : vector<8x32x128xbf16> to vector<8x16x128xbf16>
    %45 = arith.maximumf %43, %44 : vector<8x16x128xbf16>
    %46 = vector.shape_cast %45 : vector<8x16x128xbf16> to vector<128x128xbf16>
    %c0_10 = arith.constant 0 : index
    %c0_11 = arith.constant 0 : index
    %c0_12 = arith.constant 0 : index
    %47 = vector.load %arg5[%c0_10, %c0_11, %c0_12] : memref<2x64x128xbf16, #tpu.memory_space<vmem>>, vector<1x64x128xbf16>
    %48 = vector.shape_cast %47 : vector<1x64x128xbf16> to vector<64x128xbf16>
    %cst_13 = arith.constant dense<0.000000e+00> : vector<64x128xf32>
    %49 = tpu.matmul %48, %46, %cst_13 {dimension_numbers = #tpu.dot_dimension_numbers<[1], [0], [0], [1], [0, 0, 1, 1], [], []>} : vector<64x128xbf16>, vector<128x128xbf16>, vector<64x128xf32> -> vector<64x128xf32>
    %c1 = arith.constant 1 : index
    %c0_14 = arith.constant 0 : index
    %c0_15 = arith.constant 0 : index
    %50 = vector.load %arg5[%c1, %c0_14, %c0_15] : memref<2x64x128xbf16, #tpu.memory_space<vmem>>, vector<1x64x128xbf16>
    %51 = vector.shape_cast %50 : vector<1x64x128xbf16> to vector<64x128xbf16>
    %cst_16 = arith.constant dense<0.000000e+00> : vector<64x128xf32>
    %52 = tpu.matmul %51, %46, %cst_16 {dimension_numbers = #tpu.dot_dimension_numbers<[1], [0], [0], [1], [0, 0, 1, 1], [], []>} : vector<64x128xbf16>, vector<128x128xbf16>, vector<64x128xf32> -> vector<64x128xf32>
    %53 = arith.maximumf %49, %52 : vector<64x128xf32>
    %54 = vector.shape_cast %53 : vector<64x128xf32> to vector<8x8x128xf32>
    %55 = arith.truncf %54 : vector<8x8x128xf32> to vector<8x8x128xbf16>
    %c0_17 = arith.constant 0 : index
    %c0_18 = arith.constant 0 : index
    %c0_19 = arith.constant 0 : index
    %c0_20 = arith.constant 0 : index
    %56 = vector.load %arg6[%c0_17, %c0_18, %c0_19, %c0_20] : memref<1x8x8x128xbf16, #tpu.memory_space<vmem>>, vector<1x8x8x128xbf16>
    %57 = vector.shape_cast %56 : vector<1x8x8x128xbf16> to vector<8x8x128xbf16>
    %58 = vector.shape_cast %55 : vector<8x8x128xbf16> to vector<1x8x8x128xbf16>
    tpu.vector_store %arg6[%c0_17, %c0_18, %c0_19, %c0_20], %58 {strides = array<i32>} : memref<1x8x8x128xbf16, #tpu.memory_space<vmem>>, vector<1x8x8x128xbf16>,
    return
  }
  func.func @transform_0(%arg0: i32) -> (i32, i32, i32, i32) {
    %c0_i32 = arith.constant 0 : i32
    %c0_i32_0 = arith.constant 0 : i32
    %c0_i32_1 = arith.constant 0 : i32
    %c0_i32_2 = arith.constant 0 : i32
    return %arg0, %c0_i32, %c0_i32_0, %c0_i32_1 : i32, i32, i32, i32
  }
  func.func @transform_1(%arg0: i32) -> (i32, i32) {
    %c0_i32 = arith.constant 0 : i32
    %c0_i32_0 = arith.constant 0 : i32
    %c0_i32_1 = arith.constant 0 : i32
    return %c0_i32, %c0_i32_0 : i32, i32
  }
  func.func @transform_2(%arg0: i32) -> (i32, i32) {
    %c0_i32 = arith.constant 0 : i32
    %c0_i32_0 = arith.constant 0 : i32
    %c0_i32_1 = arith.constant 0 : i32
    return %c0_i32, %c0_i32_0 : i32, i32
  }
  func.func @transform_3(%arg0: i32) -> (i32, i32) {
    %c0_i32 = arith.constant 0 : i32
    %c0_i32_0 = arith.constant 0 : i32
    %c0_i32_1 = arith.constant 0 : i32
    return %c0_i32, %c0_i32_0 : i32, i32
  }
  func.func @transform_4(%arg0: i32) -> (i32, i32, i32) {
    %c0_i32 = arith.constant 0 : i32
    %c0_i32_0 = arith.constant 0 : i32
    %c0_i32_1 = arith.constant 0 : i32
    %c0_i32_2 = arith.constant 0 : i32
    return %c0_i32, %c0_i32_0, %c0_i32_1 : i32, i32, i32
  }
  func.func @transform_5(%arg0: i32) -> (i32, i32, i32, i32) {
    %c0_i32 = arith.constant 0 : i32
    %c0_i32_0 = arith.constant 0 : i32
    %c0_i32_1 = arith.constant 0 : i32
    %c0_i32_2 = arith.constant 0 : i32
    return %arg0, %c0_i32, %c0_i32_0, %c0_i32_1 : i32, i32, i32, i32
  }
}

module attributes {stable_mosaic.version = 11 : i64} {
  func.func @conv_bn_relu_pool_kernel(%arg0: i32, %arg1: memref<1x10x10x128xbf16, #tpu.memory_space<vmem>>, %arg2: memref<1152x128xbf16, #tpu.memory_space<vmem>>, %arg3: memref<1x128xf32, #tpu.memory_space<vmem>>, %arg4: memref<1x128xf32, #tpu.memory_space<vmem>>, %arg5: memref<1x8x8x128xbf16, #tpu.memory_space<vmem>>) attributes {dimension_semantics = [#tpu.dimension_semantics<parallel>], iteration_bounds = array<i64: 2>, scalar_prefetch = 0 : i64, scratch_operands = 0 : i64, tpu.core_type = #tpu.core_type<tc>, window_params = [{transform_indices = @transform_0, window_bounds = array<i64: 1, 10, 10, 128>}, {pipeline_mode = #tpu.pipeline_mode<synchronous>, transform_indices = @transform_1, window_bounds = array<i64: 1152, 128>}, {pipeline_mode = #tpu.pipeline_mode<synchronous>, transform_indices = @transform_2, window_bounds = array<i64: 1, 128>}, {pipeline_mode = #tpu.pipeline_mode<synchronous>, transform_indices = @transform_3, window_bounds = array<i64: 1, 128>}, {transform_indices = @transform_4, window_bounds = array<i64: 1, 8, 8, 128>}]} {
    %c0 = arith.constant 0 : index
    %c0_0 = arith.constant 0 : index
    %c0_1 = arith.constant 0 : index
    %c0_2 = arith.constant 0 : index
    %0 = vector.load %arg1[%c0, %c0_0, %c0_1, %c0_2] : memref<1x10x10x128xbf16, #tpu.memory_space<vmem>>, vector<1x10x10x128xbf16>
    %1 = vector.shape_cast %0 : vector<1x10x10x128xbf16> to vector<10x10x128xbf16>
    %2 = arith.extf %1 : vector<10x10x128xbf16> to vector<10x10x128xf32>
    %3 = vector.extract_strided_slice %2 {offsets = [0, 0, 0], sizes = [8, 8, 128], strides = [1, 1, 1]} : vector<10x10x128xf32> to vector<8x8x128xf32>
    %4 = vector.shape_cast %3 : vector<8x8x128xf32> to vector<64x128xf32>
    %5 = arith.truncf %4 : vector<64x128xf32> to vector<64x128xbf16>
    %6 = vector.extract_strided_slice %2 {offsets = [0, 1, 0], sizes = [8, 8, 128], strides = [1, 1, 1]} : vector<10x10x128xf32> to vector<8x8x128xf32>
    %7 = vector.shape_cast %6 : vector<8x8x128xf32> to vector<64x128xf32>
    %8 = arith.truncf %7 : vector<64x128xf32> to vector<64x128xbf16>
    %9 = vector.extract_strided_slice %2 {offsets = [0, 2, 0], sizes = [8, 8, 128], strides = [1, 1, 1]} : vector<10x10x128xf32> to vector<8x8x128xf32>
    %10 = vector.shape_cast %9 : vector<8x8x128xf32> to vector<64x128xf32>
    %11 = arith.truncf %10 : vector<64x128xf32> to vector<64x128xbf16>
    %12 = vector.extract_strided_slice %2 {offsets = [1, 0, 0], sizes = [8, 8, 128], strides = [1, 1, 1]} : vector<10x10x128xf32> to vector<8x8x128xf32>
    %13 = vector.shape_cast %12 : vector<8x8x128xf32> to vector<64x128xf32>
    %14 = arith.truncf %13 : vector<64x128xf32> to vector<64x128xbf16>
    %15 = vector.extract_strided_slice %2 {offsets = [1, 1, 0], sizes = [8, 8, 128], strides = [1, 1, 1]} : vector<10x10x128xf32> to vector<8x8x128xf32>
    %16 = vector.shape_cast %15 : vector<8x8x128xf32> to vector<64x128xf32>
    %17 = arith.truncf %16 : vector<64x128xf32> to vector<64x128xbf16>
    %18 = vector.extract_strided_slice %2 {offsets = [1, 2, 0], sizes = [8, 8, 128], strides = [1, 1, 1]} : vector<10x10x128xf32> to vector<8x8x128xf32>
    %19 = vector.shape_cast %18 : vector<8x8x128xf32> to vector<64x128xf32>
    %20 = arith.truncf %19 : vector<64x128xf32> to vector<64x128xbf16>
    %21 = vector.extract_strided_slice %2 {offsets = [2, 0, 0], sizes = [8, 8, 128], strides = [1, 1, 1]} : vector<10x10x128xf32> to vector<8x8x128xf32>
    %22 = vector.shape_cast %21 : vector<8x8x128xf32> to vector<64x128xf32>
    %23 = arith.truncf %22 : vector<64x128xf32> to vector<64x128xbf16>
    %24 = vector.extract_strided_slice %2 {offsets = [2, 1, 0], sizes = [8, 8, 128], strides = [1, 1, 1]} : vector<10x10x128xf32> to vector<8x8x128xf32>
    %25 = vector.shape_cast %24 : vector<8x8x128xf32> to vector<64x128xf32>
    %26 = arith.truncf %25 : vector<64x128xf32> to vector<64x128xbf16>
    %27 = vector.extract_strided_slice %2 {offsets = [2, 2, 0], sizes = [8, 8, 128], strides = [1, 1, 1]} : vector<10x10x128xf32> to vector<8x8x128xf32>
    %28 = vector.shape_cast %27 : vector<8x8x128xf32> to vector<64x128xf32>
    %29 = arith.truncf %28 : vector<64x128xf32> to vector<64x128xbf16>
    %30 = tpu.concatenate %5, %8, %11, %14, %17, %20, %23, %26, %29 in 1 : vector<64x128xbf16>, vector<64x128xbf16>, vector<64x128xbf16>, vector<64x128xbf16>, vector<64x128xbf16>, vector<64x128xbf16>, vector<64x128xbf16>, vector<64x128xbf16>, vector<64x128xbf16> -> vector<64x1152xbf16>
    %c0_3 = arith.constant 0 : index
    %c0_4 = arith.constant 0 : index
    %31 = vector.load %arg2[%c0_3, %c0_4] : memref<1152x128xbf16, #tpu.memory_space<vmem>>, vector<1152x128xbf16>
    %cst = arith.constant dense<0.000000e+00> : vector<64x128xf32>
    %32 = tpu.matmul %30, %31, %cst {dimension_numbers = #tpu.dot_dimension_numbers<[1], [0], [0], [1], [0, 0, 1, 1], [], []>} : vector<64x1152xbf16>, vector<1152x128xbf16>, vector<64x128xf32> -> vector<64x128xf32>
    %c0_5 = arith.constant 0 : index
    %c0_6 = arith.constant 0 : index
    %33 = vector.load %arg3[%c0_5, %c0_6] : memref<1x128xf32, #tpu.memory_space<vmem>>, vector<1x128xf32>
    %34 = vector.broadcast %33 : vector<1x128xf32> to vector<64x128xf32>
    %35 = arith.mulf %32, %34 : vector<64x128xf32>
    %c0_7 = arith.constant 0 : index
    %c0_8 = arith.constant 0 : index
    %36 = vector.load %arg4[%c0_7, %c0_8] : memref<1x128xf32, #tpu.memory_space<vmem>>, vector<1x128xf32>
    %37 = vector.broadcast %36 : vector<1x128xf32> to vector<64x128xf32>
    %38 = arith.addf %35, %37 : vector<64x128xf32>
    %cst_9 = arith.constant 0.000000e+00 : f32
    %39 = vector.broadcast %cst_9 : f32 to vector<64x128xf32>
    %40 = arith.maximumf %38, %39 : vector<64x128xf32>
    %41 = vector.shape_cast %40 : vector<64x128xf32> to vector<8x8x128xf32>
    %42 = arith.truncf %41 : vector<8x8x128xf32> to vector<8x8x128xbf16>
    %c0_10 = arith.constant 0 : index
    %c0_11 = arith.constant 0 : index
    %c0_12 = arith.constant 0 : index
    %c0_13 = arith.constant 0 : index
    %43 = vector.load %arg5[%c0_10, %c0_11, %c0_12, %c0_13] : memref<1x8x8x128xbf16, #tpu.memory_space<vmem>>, vector<1x8x8x128xbf16>
    %44 = vector.shape_cast %43 : vector<1x8x8x128xbf16> to vector<8x8x128xbf16>
    %45 = vector.shape_cast %42 : vector<8x8x128xbf16> to vector<1x8x8x128xbf16>
    tpu.vector_store %arg5[%c0_10, %c0_11, %c0_12, %c0_13], %45 {strides = array<i32>} : memref<1x8x8x128xbf16, #tpu.memory_space<vmem>>, vector<1x8x8x128xbf16>,
    return
  }
  func.func @transform_0(%arg0: i32) -> (i32, i32, i32, i32) {
    %c0_i32 = arith.constant 0 : i32
    %c0_i32_0 = arith.constant 0 : i32
    %c0_i32_1 = arith.constant 0 : i32
    %c0_i32_2 = arith.constant 0 : i32
    return %arg0, %c0_i32, %c0_i32_0, %c0_i32_1 : i32, i32, i32, i32
  }
  func.func @transform_1(%arg0: i32) -> (i32, i32) {
    %c0_i32 = arith.constant 0 : i32
    %c0_i32_0 = arith.constant 0 : i32
    %c0_i32_1 = arith.constant 0 : i32
    return %c0_i32, %c0_i32_0 : i32, i32
  }
  func.func @transform_2(%arg0: i32) -> (i32, i32) {
    %c0_i32 = arith.constant 0 : i32
    %c0_i32_0 = arith.constant 0 : i32
    %c0_i32_1 = arith.constant 0 : i32
    return %c0_i32, %c0_i32_0 : i32, i32
  }
  func.func @transform_3(%arg0: i32) -> (i32, i32) {
    %c0_i32 = arith.constant 0 : i32
    %c0_i32_0 = arith.constant 0 : i32
    %c0_i32_1 = arith.constant 0 : i32
    return %c0_i32, %c0_i32_0 : i32, i32
  }
  func.func @transform_4(%arg0: i32) -> (i32, i32, i32, i32) {
    %c0_i32 = arith.constant 0 : i32
    %c0_i32_0 = arith.constant 0 : i32
    %c0_i32_1 = arith.constant 0 : i32
    %c0_i32_2 = arith.constant 0 : i32
    return %arg0, %c0_i32, %c0_i32_0, %c0_i32_1 : i32, i32, i32, i32
  }
}

module attributes {stable_mosaic.version = 11 : i64} {
  func.func @gap_linear_kernel(%arg0: i32, %arg1: memref<2x8x8x128xbf16, #tpu.memory_space<vmem>>, %arg2: memref<128x128xbf16, #tpu.memory_space<vmem>>, %arg3: memref<1x128xf32, #tpu.memory_space<vmem>>, %arg4: memref<2x1x128xf32, #tpu.memory_space<vmem>>) attributes {dimension_semantics = [#tpu.dimension_semantics<parallel>], iteration_bounds = array<i64: 1>, scalar_prefetch = 0 : i64, scratch_operands = 0 : i64, tpu.core_type = #tpu.core_type<tc>, window_params = [{transform_indices = @transform_0, window_bounds = array<i64: 2, 8, 8, 128>}, {pipeline_mode = #tpu.pipeline_mode<synchronous>, transform_indices = @transform_1, window_bounds = array<i64: 128, 128>}, {pipeline_mode = #tpu.pipeline_mode<synchronous>, transform_indices = @transform_2, window_bounds = array<i64: 1, 128>}, {transform_indices = @transform_3, window_bounds = array<i64: 2, 1, 128>}]} {
    %c0 = arith.constant 0 : index
    %c0_0 = arith.constant 0 : index
    %c0_1 = arith.constant 0 : index
    %c0_2 = arith.constant 0 : index
    %0 = vector.load %arg1[%c0, %c0_0, %c0_1, %c0_2] : memref<2x8x8x128xbf16, #tpu.memory_space<vmem>>, vector<2x8x8x128xbf16>
    %1 = arith.extf %0 : vector<2x8x8x128xbf16> to vector<2x8x8x128xf32>
    %2 = vector.shape_cast %1 : vector<2x8x8x128xf32> to vector<2x64x128xf32>
    %cst = arith.constant dense<0.000000e+00> : vector<2x128xf32>
    %3 = vector.multi_reduction <add>, %2, %cst [1] : vector<2x64x128xf32> to vector<2x128xf32>
    %cst_3 = arith.constant 6.400000e+01 : f32
    %4 = vector.broadcast %cst_3 : f32 to vector<2x128xf32>
    %5 = arith.divf %3, %4 : vector<2x128xf32>
    %6 = arith.truncf %5 : vector<2x128xf32> to vector<2x128xbf16>
    %c0_4 = arith.constant 0 : index
    %c0_5 = arith.constant 0 : index
    %7 = vector.load %arg2[%c0_4, %c0_5] : memref<128x128xbf16, #tpu.memory_space<vmem>>, vector<128x128xbf16>
    %cst_6 = arith.constant dense<0.000000e+00> : vector<2x128xf32>
    %8 = tpu.matmul %6, %7, %cst_6 {dimension_numbers = #tpu.dot_dimension_numbers<[1], [0], [0], [1], [0, 0, 1, 1], [], []>} : vector<2x128xbf16>, vector<128x128xbf16>, vector<2x128xf32> -> vector<2x128xf32>
    %c0_7 = arith.constant 0 : index
    %c0_8 = arith.constant 0 : index
    %9 = vector.load %arg3[%c0_7, %c0_8] : memref<1x128xf32, #tpu.memory_space<vmem>>, vector<1x128xf32>
    %10 = vector.broadcast %9 : vector<1x128xf32> to vector<2x128xf32>
    %11 = arith.addf %8, %10 : vector<2x128xf32>
    %c0_9 = arith.constant 0 : index
    %c0_10 = arith.constant 0 : index
    %c0_11 = arith.constant 0 : index
    %12 = vector.load %arg4[%c0_9, %c0_10, %c0_11] : memref<2x1x128xf32, #tpu.memory_space<vmem>>, vector<2x1x128xf32>
    %13 = vector.shape_cast %12 : vector<2x1x128xf32> to vector<2x128xf32>
    %14 = vector.shape_cast %11 : vector<2x128xf32> to vector<2x1x128xf32>
    tpu.vector_store %arg4[%c0_9, %c0_10, %c0_11], %14 {strides = array<i32>} : memref<2x1x128xf32, #tpu.memory_space<vmem>>, vector<2x1x128xf32>,
    return
  }
  func.func @transform_0(%arg0: i32) -> (i32, i32, i32, i32) {
    %c0_i32 = arith.constant 0 : i32
    %c0_i32_0 = arith.constant 0 : i32
    %c0_i32_1 = arith.constant 0 : i32
    %c0_i32_2 = arith.constant 0 : i32
    return %arg0, %c0_i32, %c0_i32_0, %c0_i32_1 : i32, i32, i32, i32
  }
  func.func @transform_1(%arg0: i32) -> (i32, i32) {
    %c0_i32 = arith.constant 0 : i32
    %c0_i32_0 = arith.constant 0 : i32
    %c0_i32_1 = arith.constant 0 : i32
    return %c0_i32, %c0_i32_0 : i32, i32
  }
  func.func @transform_2(%arg0: i32) -> (i32, i32) {
    %c0_i32 = arith.constant 0 : i32
    %c0_i32_0 = arith.constant 0 : i32
    %c0_i32_1 = arith.constant 0 : i32
    return %c0_i32, %c0_i32_0 : i32, i32
  }
  func.func @transform_3(%arg0: i32) -> (i32, i32, i32) {
    %c0_i32 = arith.constant 0 : i32
    %c0_i32_0 = arith.constant 0 : i32
    %c0_i32_1 = arith.constant 0 : i32
    return %arg0, %c0_i32, %c0_i32_0 : i32, i32, i32
  }
}

</mosaic_0001>

<bundles_post_ra>
// kernel: conv_forward.5
= control target key start
LH: loop header
LB: loop body
LE: loop exit
PB: predicated region body
PF: predicated region fallthrough
CT: control target
= control target key end

     0   :  { %v308_v11 = vmov 64.0   ;;  %s386_s0 = inlined_call_operand.vmem [shape: bf16[2,8,8,128], index: 0, kind: input, shape index: {}]   ;;  %s387_s1 = inlined_call_operand.vmem [shape: bf16[128,128], index: 1, kind: input, shape index: {}]   ;;  %s388_s2 = inlined_call_operand.vmem [shape: f32[1,128], index: 2, kind: input, shape index: {}]   ;;  %s389_s3 = inlined_call_operand.hbm [shape: f32[2,1,128], index: 3, kind: output, shape index: {}]  }
   0x1   :  { %v235_v0 = vld [vmem:[%s387_s1 + $0x38] sm:$0xff]  ;;  %v234_v1 = vld [vmem:[%s387_s1 + $0x30] sm:$0xff]  ;;  %v237_v2 = vld [vmem:[%s386_s0] sm:$0xff]   ;;  %280 = vrcp.f32 %v308_v11 }
   0x2   :  { %160 = vmatpush.bf16.msra.mxu0 %v235_v0  ;;  %v238_v3 = vunpack.c.l.bf16 %v237_v2  ;;  %v239_v4 = vunpack.c.h.bf16 %v237_v2  ;;  %v268_v5 = vld [vmem:[%s386_s0 + $0x8] sm:$0xff]   ;;  %v271_v6 = vld [vmem:[%s386_s0 + $0x20] sm:$0xff]  }
   0x3   :  { %v272_v7 = vld [vmem:[%s386_s0 + $0x28] sm:$0xff]   ;;  %v242_v8 = vunpack.c.l.bf16 %v268_v5  ;;  %v254_v9 = vunpack.c.l.bf16 %v271_v6  ;;  %v255_v10 = vunpack.c.h.bf16 %v271_v6 }
   0x4   :  { %8 = vsyncpa [#allocation3], 0  ;;  %v233_v12 = vld [vmem:[%s387_s1 + $0x28] sm:$0xff]  ;;  %v269_v13 = vld [vmem:[%s386_s0 + $0x10] sm:$0xff]   ;;  %v258_v14 = vunpack.c.l.bf16 %v272_v7  ;;  %v243_v16 = vunpack.c.h.bf16 %v268_v5  ;;  %v259_v17 = vunpack.c.h.bf16 %v272_v7  ;;  %v47_v18 = vadd.f32 %v239_v4, %v238_v3  ;;  %s309_s17 = smov [#allocation2]   ;;  %s184_s21 = sshll.u32 %s389_s3, 4  ;;  %s185_s21 = int_to_ptr.hbm [resolvable:$true] %s184_s21 }
   0x5   :  { %v273_v15 = vld [vmem:[%s386_s0 + $0x30] sm:$0xff]   ;;  %v60_v19 = vadd.f32 %v255_v10, %v254_v9  ;;  %v246_v20 = vunpack.c.l.bf16 %v269_v13  ;;  %v232_v24 = vld [vmem:[%s387_s1 + $0x20] sm:$0xff]  ;;  %v270_v25 = vld [vmem:[%s386_s0 + $0x18] sm:$0xff]   ;;  %v247_v28 = vunpack.c.h.bf16 %v269_v13  ;;  %vm108_vm1 = vcmask 1041409   ;;  %s182_s18 = sshll.u32 %s309_s17, 4  ;;  %s310_s22 = smov 16   ;;  %s183_s18 = int_to_ptr.vmem [resolvable:$true] %s182_s18 }
   0x6   :  { %161 = vmatpush.bf16.msra.mxu0 %v234_v1  ;;  %v262_v21 = vunpack.c.l.bf16 %v273_v15  ;;  %v48_v22 = vadd.f32 %v242_v8, %v47_v18  ;;  %v274_v26 = vld [vmem:[%s386_s0 + $0x38] sm:$0xff]   ;;  %v263_v29 = vunpack.c.h.bf16 %v273_v15  ;;  %v250_v32 = vunpack.c.l.bf16 %v270_v25  ;;  %v230_v44 = vld [vmem:[%s387_s1 + $0x10] sm:$0xff]  ;;  %v229_v50 = vld [vmem:[%s387_s1 + $0x8] sm:$0xff]  ;;  %s311_s23 = smov 1  }
   0x7   :  { %v61_v23 = vadd.f32 %v258_v14, %v60_v19  ;;  %v281_v27 = vpop.eup %280  ;;  %v266_v33 = vunpack.c.l.bf16 %v274_v26  ;;  %v231_v36 = vld [vmem:[%s387_s1 + $0x18] sm:$0xff]  ;;  %v251_v38 = vunpack.c.h.bf16 %v270_v25  ;;  %v267_v39 = vunpack.c.h.bf16 %v274_v26  ;;  %v228_v56 = vld [vmem:[%s387_s1] sm:$0xff] }
   0x8   :  { %v49_v30 = vadd.f32 %v243_v16, %v48_v22  ;;  %v74_v37 = vmul.f32 64.0, %v281_v27  ;;  %vm78_vm0 = vweird.f32 %v281_v27  ;;  %v279_v9 = vld [vmem:[%s388_s2] ss:$0 sm:$0xff] }
   0x9   :  { %v62_v31 = vadd.f32 %v259_v17, %v61_v23 }
   0xa   :  { %162 = vmatpush.bf16.msra.mxu0 %v233_v12  ;;  %v50_v34 = vadd.f32 %v246_v20, %v49_v30  ;;  %v75_v45 = vsub.f32 1.0, %v74_v37 }
   0xb   :  { %v63_v35 = vadd.f32 %v262_v21, %v62_v31 }
   0xc   :  { %v51_v40 = vadd.f32 %v247_v28, %v50_v34  ;;  %v76_v51 = vmul.f32 %v281_v27, %v75_v45 }
   0xd   :  { %v64_v41 = vadd.f32 %v263_v29, %v63_v35 }
   0xe   :  { %163 = vmatpush.bf16.msra.mxu0 %v232_v24  ;;  %v52_v42 = vadd.f32 %v250_v32, %v51_v40  ;;  %v77_v57 = vadd.f32 %v281_v27, %v76_v51 }
   0xf   :  { %v65_v43 = vadd.f32 %v266_v33, %v64_v41 }
  0x10   :  { %v53_v46 = vadd.f32 %v251_v38, %v52_v42  ;;  %v79_v62 = vsel %vm78_vm0, %v281_v27, %v77_v57 }
  0x11   :  { %v66_v47 = vadd.f32 %v267_v39, %v65_v43 }
  0x12   :  { %164 = vmatpush.bf16.msra.mxu0 %v231_v36  ;;  %v54_v48 = vrot.slane %v53_v46, 4 }
  0x13   :  { %v67_v49 = vrot.slane %v66_v47, 4 }
  0x14   :  { %v55_v52 = vadd.f32 %v54_v48, %v53_v46 }
  0x15   :  { %v68_v53 = vadd.f32 %v67_v49, %v66_v47 }
  0x16   :  { %165 = vmatpush.bf16.msra.mxu0 %v230_v44  ;;  %v56_v54 = vrot.slane %v55_v52, 2 }
  0x17   :  { %v69_v55 = vrot.slane %v68_v53, 2 }
  0x18   :  { %v57_v58 = vadd.f32 %v56_v54, %v55_v52 }
  0x19   :  { %v70_v59 = vadd.f32 %v69_v55, %v68_v53 }
  0x1a   :  { %166 = vmatpush.bf16.msra.mxu0 %v229_v50  ;;  %v58_v60 = vrot.slane %v57_v58, 1 }
  0x1b   :  { %v71_v61 = vrot.slane %v70_v59, 1 }
  0x1c   :  { %v59_v63 = vadd.f32 %v58_v60, %v57_v58 }
  0x1d   :  { %v72_v0 = vadd.f32 %v71_v61, %v70_v59 }
  0x1e   :  { %167 = vmatpush.bf16.msra.mxu0 %v228_v56  ;;  %v80_v1 = vmul.f32 %v79_v62, %v59_v63 }
  0x1f   :  { %v81_v2 = vmul.f32 %v79_v62, %v72_v0 }
  0x20   :  { %v82_v3 = vpack.c.bf16 %v80_v1, %v80_v1 }
  0x21   :  { %v83_v4 = vpack.c.bf16 %v81_v2, %v81_v2 }
  0x22   :  { %v106_v5 = vunpack.c.l.b16 %v82_v3 }
  0x23   :  { %v107_v6 = vunpack.c.l.b16 %v83_v4 }
  0x25   :  { %v109_v7 = vsel %vm108_vm1, %v107_v6, %v106_v5 }
  0x26   :  { %v110_v8 = vpack.c.b16 %v109_v7, %v109_v7 }
  0x28   :  { %168 = vmatmul.bf16.vlgmr.msra.gmra.mxu0 %v110_v8 }
  0xa5   :  { %v169_v10 = vpop.f32.mrf.mxu0 }
  0xa6   :  { %v170_v11 = vadd.f32 %v279_v9, %v169_v10 }
  0xa8   :  { %v174_v12 = vrot.slane %v170_v11, 1  ;;  %176 = vst [vmem:[#allocation2] sm:$0x1] %v170_v11 }
  0xaa   :  { %177 = vst [vmem:[#allocation2 + $0x1] sm:$0x1] %v174_v12 }
  0xab   :  { %190 = dma.vmem_to_hbm [thread:$0]  %s183_s18, 32, %s185_s21, [#allocation3], %s310_s22, %s310_s22, %s311_s23  }
  0xad   :  { %v171_v13 = vpop.f32.mrf.mxu0 }
  0xae   :  { %306 = dma.done.wait [#allocation3], 32  }
  0xaf   :  { %307 = vsyncadd [#allocation3], 4294967264 }
  0xb0   :  { %195 = vsyncpa [#allocation3], 1 }

// kernel: conv_forward.4
= control target key start
LH: loop header
LB: loop body
LE: loop exit
PB: predicated region body
PF: predicated region fallthrough
CT: control target
= control target key end

     0   :  { %s1878_s15 = smov 0   ;;  %s2411_s0 = inlined_call_operand.vmem [shape: bf16[2,10,10,128], index: 0, kind: input, shape index: {}]   ;;  %s2412_s1 = inlined_call_operand.vmem [shape: bf16[1152,128], index: 1, kind: input, shape index: {}]   ;;  %s2413_s2 = inlined_call_operand.vmem [shape: f32[1,128], index: 2, kind: input, shape index: {}]   ;;  %s2414_s3 = inlined_call_operand.vmem [shape: f32[1,128], index: 3, kind: input, shape index: {}]   ;;  %s2415_s4 = inlined_call_operand.vmem [shape: bf16[2,8,8,128], index: 4, kind: output, shape index: {}]  }
   0x1 LB: > { %s1424_s16 = sadd.s32 4294967295, %s1851_s15   ;;  %p1428_p0 = scmp.ge.s32.totalorder %s1851_s15, 1  ;;  %s1851_s15 = sphi %s1878_s15, %s14_s15  }
   0x2   : > { %p162_p1 = scmp.lt.s32.totalorder %s1851_s15, 3 }
   0x4   : > { %p163_p2 = pnand %p1428_p0, %p162_p1 }
   0x5   : > { %p188_p3 = scmp.lt.s32.totalorder (!%p163_p2), %s1424_s16, 1 }
   0x6   : > { %166 = sbr.rel (%p163_p2) target bundleno = 338 (0x152), region = 36 }
   0xb   : > { %v1730_v0 = vld [vmem:[%s2412_s1 + $0x38] sm:$0xff]  ;;  %v1729_v2 = vld [vmem:[%s2412_s1 + $0x30] sm:$0xff]  ;;  %s2417_s16 = smov (!%p188_p3, %s1424_s16), 1  ;;  %v1728_v6 = vld [vmem:[%s2412_s1 + $0x28] sm:$0xff]  ;;  %vm303_vm0 = vcmask 1045504   ;;  %vm262_vm1 = vcmask 1046528  }
   0xc   : > { %v1746_v1 = vld [vmem:[%s2412_s1 + $0xb8] sm:$0xff]  ;;  %1818 = vmatpush.bf16.msra.mxu1 %v1730_v0  ;;  %1060 = vmatpush.bf16.msra.mxu0 %v1730_v0  ;;  %v1745_v3 = vld [vmem:[%s2412_s1 + $0xb0] sm:$0xff]  ;;  %s1834_s27 = smul.u32 80, %s2417_s16  ;;  %v1744_v7 = vld [vmem:[%s2412_s1 + $0xa8] sm:$0xff]  ;;  %s1722_s29 = sshll.u32 %s2417_s16, 5 }
   0xd   : > { %1118 = vmatpush.bf16.msra.mxu2 %v1746_v1  ;;  %v1754_v4 = vld [vmem:[%s2412_s1 + $0xf8] sm:$0xff]  ;;  %v1753_v5 = vld [vmem:[%s2412_s1 + $0xf0] sm:$0xff]  ;;  %v1752_v10 = vld [vmem:[%s2412_s1 + $0xe8] sm:$0xff]  ;;  %s2381_s6 = scalar_lea.vmem %s2415_s4, %s1722_s29 }
   0xe   : > { %1147 = vmatpush.bf16.msra.mxu3 %v1754_v4  ;;  %s1916_s10 = scalar_lea.vmem %s2411_s0, %s1834_s27  ;;  %v1727_v13 = vld [vmem:[%s2412_s1 + $0x20] sm:$0xff]  ;;  %v1726_v19 = vld [vmem:[%s2412_s1 + $0x18] sm:$0xff]  ;;  %v1725_v36 = vld [vmem:[%s2412_s1 + $0x10] sm:$0xff] }
   0xf   : > { %v198_v8 = vld [vmem:[%s1916_s10] sm:$0xf]  ;;  %v200_v9 = vld [vmem:[%s1916_s10 + $0x8] sm:$0xf]  ;;  %v1926_v12 = vld [vmem:[%s1916_s10 + $0x4] sm:$0x1] }
  0x10   : > { %1819 = vmatpush.bf16.msra.mxu1 %v1729_v2  ;;  %1061 = vmatpush.bf16.msra.mxu0 %v1729_v2  ;;  %v1923_v11 = vunpack.c.l.bf16 %v200_v9  ;;  %v1932_v14 = vld [vmem:[%s1916_s10 + $0xc] sm:$0x1]  ;;  %v1743_v15 = vld [vmem:[%s2412_s1 + $0xa0] sm:$0xff]  ;;  %v1937_v16 = vunpack.c.l.bf16 %v198_v8  ;;  %v219_v17 = vunpack.c.l.bf16 %v1926_v12  ;;  %v202_v24 = vld [vmem:[%s1916_s10 + $0x10] sm:$0xf] }
  0x11   : > { %1119 = vmatpush.bf16.msra.mxu2 %v1745_v3  ;;  %v221_v18 = vunpack.c.l.bf16 %v1932_v14  ;;  %v1751_v20 = vld [vmem:[%s2412_s1 + $0xe0] sm:$0xff]  ;;  %v208_v25 = vld [vmem:[%s1916_s10 + $0x28] sm:$0xf]  ;;  %v1953_v26 = vunpack.c.l.bf16 %v202_v24  ;;  %v1956_v27 = vld [vmem:[%s1916_s10 + $0x14] sm:$0x1] }
  0x12   : > { %1148 = vmatpush.bf16.msra.mxu3 %v1753_v5  ;;  %v206_v21 = vld [vmem:[%s1916_s10 + $0x20] sm:$0xf]  ;;  %v307_v22 = vrot.slane %v1923_v11, 2  ;;  %v1742_v28 = vld [vmem:[%s2412_s1 + $0x98] sm:$0xff]  ;;  %v304_v29 = vrot.slane %v1937_v16, 2  ;;  %v305_v30 = vrot.slane %v219_v17, 2  ;;  %v223_v32 = vunpack.c.l.bf16 %v1956_v27 }
  0x13   : > { %v308_v23 = vrot.slane %v221_v18, 2  ;;  %v1964_v31 = vunpack.c.l.bf16 %v206_v21  ;;  %v1967_v33 = vunpack.c.l.bf16 %v208_v25  ;;  %v1750_v34 = vld [vmem:[%s2412_s1 + $0xd8] sm:$0xff]  ;;  %v310_v37 = vrot.slane %v1953_v26, 2  ;;  %v1741_v38 = vld [vmem:[%s2412_s1 + $0x90] sm:$0xff]  ;;  %v1724_v48 = vld [vmem:[%s2412_s1 + $0x8] sm:$0xff] }
  0x14   : > { %1820 = vmatpush.bf16.msra.mxu1 %v1728_v6  ;;  %1062 = vmatpush.bf16.msra.mxu0 %v1728_v6  ;;  %v306_v39 = vsel %vm303_vm0, %v304_v29, %v305_v30  ;;  %v311_v40 = vrot.slane %v223_v32, 2  ;;  %v238_v44 = vpack.c.bf16 %v1937_v16, %v1937_v16  ;;  %v239_v45 = vpack.c.bf16 %v1923_v11, %v1923_v11  ;;  %v1749_v46 = vld [vmem:[%s2412_s1 + $0xd0] sm:$0xff]  ;;  %v1740_v51 = vld [vmem:[%s2412_s1 + $0x88] sm:$0xff]  ;;  %v204_v54 = vld [vmem:[%s1916_s10 + $0x18] sm:$0xf] }
  0x15   : > { %1120 = vmatpush.bf16.msra.mxu2 %v1744_v7  ;;  %v309_v35 = vsel %vm303_vm0, %v307_v22, %v308_v23  ;;  %v242_v41 = vpack.c.bf16 %v1964_v31, %v1964_v31  ;;  %v243_v43 = vpack.c.bf16 %v1967_v33, %v1967_v33  ;;  %v336_v49 = vpack.c.bf16 %v306_v39, %v306_v39  ;;  %v2007_v55 = vld [vmem:[%s1916_s10 + $0x1c] sm:$0x1]  ;;  %v1748_v60 = vld [vmem:[%s2412_s1 + $0xc8] sm:$0xff]  ;;  %v1723_v62 = vld [vmem:[%s2412_s1] sm:$0xff] }
  0x16   : > { %1149 = vmatpush.bf16.msra.mxu3 %v1752_v10  ;;  %v337_v42 = vpack.c.bf16 %v309_v35, %v309_v35  ;;  %v312_v47 = vsel %vm303_vm0, %v310_v37, %v311_v40  ;;  %v378_v58 = vunpack.c.l.b16 %v238_v44  ;;  %v379_v59 = vunpack.c.l.b16 %v239_v45  ;;  %v1738_v1 = vld [vmem:[%s2412_s1 + $0x78] sm:$0xff]  ;;  %v1739_v2 = vld [vmem:[%s2412_s1 + $0x80] sm:$0xff]  ;;  %v210_v9 = vld [vmem:[%s1916_s10 + $0x30] sm:$0xf] }
  0x17   : > { %v338_v50 = vpack.c.bf16 %v312_v47, %v312_v47  ;;  %v2001_v52 = vunpack.c.l.b16 %v242_v41  ;;  %v2011_v57 = vunpack.c.l.b16 %v243_v43  ;;  %v240_v61 = vpack.c.bf16 %v1953_v26, %v1953_v26  ;;  %v1762_v5 = vld [vmem:[%s2412_s1 + $0x138] sm:$0xff]  ;;  %v1761_v24 = vld [vmem:[%s2412_s1 + $0x130] sm:$0xff]  ;;  %v1760_v37 = vld [vmem:[%s2412_s1 + $0x128] sm:$0xff] }
  0x18   : > { %1821 = vmatpush.bf16.msra.mxu1 %v1727_v13  ;;  %1063 = vmatpush.bf16.msra.mxu0 %v1727_v13  ;;  %v2003_v53 = vunpack.c.l.b16 %v337_v42  ;;  %v426_v63 = vunpack.c.l.b16 %v336_v49  ;;  %v2029_v3 = vunpack.c.l.bf16 %v204_v54  ;;  %v225_v4 = vunpack.c.l.bf16 %v2007_v55  ;;  %v1778_v6 = vld [vmem:[%s2412_s1 + $0x1b8] sm:$0xff]  ;;  %v1777_v29 = vld [vmem:[%s2412_s1 + $0x1b0] sm:$0xff]  ;;  %v1776_v41 = vld [vmem:[%s2412_s1 + $0x1a8] sm:$0xff] }
  0x19   : > { %1121 = vmatpush.bf16.msra.mxu2 %v1743_v15  ;;  %v2009_v56 = vunpack.c.l.b16 %v338_v50  ;;  %v2040_v7 = vpack.c.b16 %v2011_v57, %v2001_v52  ;;  %v386_v8 = vpack.c.b16 %v379_v59, %v378_v58  ;;  %v212_v10 = vld [vmem:[%s1916_s10 + $0x38] sm:$0xf]  ;;  %v380_v13 = vunpack.c.l.b16 %v240_v61  ;;  %v1735_v43 = vld [vmem:[%s2412_s1 + $0x60] sm:$0xff]  ;;  %v1784_v45 = vld [vmem:[%s2412_s1 + $0x1e8] sm:$0xff] }
  0x1a   : > { %1150 = vmatpush.bf16.msra.mxu3 %v1751_v20  ;;  %v434_v15 = vpack.c.b16 %v2003_v53, %v426_v63  ;;  %v1737_v20 = vld [vmem:[%s2412_s1 + $0x70] sm:$0xff]  ;;  %v313_v21 = vrot.slane %v2029_v3, 2  ;;  %v314_v22 = vrot.slane %v225_v4, 2  ;;  %v1786_v23 = vld [vmem:[%s2412_s1 + $0x1f8] sm:$0xff]  ;;  %v2060_v25 = vunpack.c.l.bf16 %v210_v9  ;;  %v1759_v44 = vld [vmem:[%s2412_s1 + $0x120] sm:$0xff] }
  0x1b   : > { %v464_v0 = vpack.c.b16 %v2009_v56, %v2003_v53  ;;  %v444_v30 = vpack.c.b16 %v380_v13, %v379_v59  ;;  %v241_v40 = vpack.c.bf16 %v2029_v3, %v2029_v3  ;;  %v2101_v49 = vld [vmem:[%s1916_s10 + $0x24] sm:$0x1]  ;;  %v2104_v50 = vld [vmem:[%s1916_s10 + $0x2c] sm:$0x1]  ;;  %v1734_v58 = vld [vmem:[%s2412_s1 + $0x58] sm:$0xff]  ;;  %v269_v9 = vrot.slane %v1953_v26, 1 }
  0x1c   : > { %1822 = vmatpush.bf16.msra.mxu1 %v1726_v19  ;;  %1064 = vmatpush.bf16.msra.mxu0 %v1726_v19  ;;  %v1747_v19 = vld [vmem:[%s2412_s1 + $0xc0] sm:$0xff]  ;;  %v315_v35 = vsel %vm303_vm0, %v313_v21, %v314_v22  ;;  %v227_v59 = vunpack.c.l.bf16 %v2101_v49  ;;  %v1758_v63 = vld [vmem:[%s2412_s1 + $0x118] sm:$0xff]  ;;  %v1733_v12 = vld [vmem:[%s2412_s1 + $0x50] sm:$0xff] }
  0x1d   : > { %1122 = vmatpush.bf16.msra.mxu2 %v1742_v28  ;;  %v2062_v28 = vunpack.c.l.bf16 %v212_v10  ;;  %v339_v42 = vpack.c.bf16 %v315_v35, %v315_v35  ;;  %v270_v10 = vrot.slane %v223_v32, 1  ;;  %v1774_v27 = vld [vmem:[%s2412_s1 + $0x198] sm:$0xff]  ;;  %v1783_v32 = vld [vmem:[%s2412_s1 + $0x1e0] sm:$0xff]  ;;  %v1773_v22 = vld [vmem:[%s2412_s1 + $0x190] sm:$0xff] }
  0x1e   : > { %1151 = vmatpush.bf16.msra.mxu3 %v1750_v34  ;;  %v1736_v34 = vld [vmem:[%s2412_s1 + $0x68] sm:$0xff] }
  0x1f   : > { %v245_v39 = vpack.c.bf16 %v2062_v28, %v2062_v28  ;;  %v2109_v54 = vunpack.c.l.b16 %v339_v42 }
  0x20   : > { %1823 = vmatpush.bf16.msra.mxu1 %v1725_v36  ;;  %1065 = vmatpush.bf16.msra.mxu0 %v1725_v36  ;;  %v1785_v36 = vld [vmem:[%s2412_s1 + $0x1f0] sm:$0xff] }
  0x21   : > { %1123 = vmatpush.bf16.msra.mxu2 %v1741_v38  ;;  %v244_v38 = vpack.c.bf16 %v2060_v25, %v2060_v25  ;;  %v2098_v47 = vunpack.c.l.b16 %v245_v39  ;;  %v1755_v39 = vld [vmem:[%s2412_s1 + $0x100] sm:$0xff] }
  0x22   : > { %1152 = vmatpush.bf16.msra.mxu3 %v1749_v46 }
  0x23   : > { %v2096_v46 = vunpack.c.l.b16 %v244_v38  ;;  %v1770_v38 = vld [vmem:[%s2412_s1 + $0x178] sm:$0xff] }
  0x24   : > { %1824 = vmatpush.bf16.msra.mxu1 %v1724_v48  ;;  %1066 = vmatpush.bf16.msra.mxu0 %v1724_v48  ;;  %v381_v48 = vunpack.c.l.b16 %v241_v40  ;;  %v2187_v40 = vld [vmem:[%s1916_s10 + $0x34] sm:$0x1] }
  0x25   : > { %1124 = vmatpush.bf16.msra.mxu2 %v1740_v51  ;;  %v1775_v51 = vld [vmem:[%s2412_s1 + $0x1a0] sm:$0xff]  ;;  %v2118_v61 = vpack.c.b16 %v2098_v47, %v2096_v46  ;;  %v446_v49 = vpack.c.b16 %v2096_v46, %v2011_v57 }
  0x26   : > { %1153 = vmatpush.bf16.msra.mxu3 %v1748_v60  ;;  %v229_v60 = vunpack.c.l.bf16 %v2104_v50  ;;  %v445_v26 = vpack.c.b16 %v2001_v52, %v381_v48  ;;  %v1732_v52 = vld [vmem:[%s2412_s1 + $0x48] sm:$0xff]  ;;  %v1771_v46 = vld [vmem:[%s2412_s1 + $0x180] sm:$0xff] }
  0x27   : > { %v1779_v50 = vld [vmem:[%s2412_s1 + $0x1c0] sm:$0xff] }
  0x28   : > { %1825 = vmatpush.bf16.msra.mxu1 %v1723_v62  ;;  %1067 = vmatpush.bf16.msra.mxu0 %v1723_v62  ;;  %v2120_v62 = vpack.c.b16 %v381_v48, %v380_v13  ;;  %v320_v14 = vrot.slane %v229_v60, 2 }
  0x29   : > { %1125 = vmatpush.bf16.msra.mxu2 %v1739_v2  ;;  %v264_v2 = vrot.slane %v219_v17, 1  ;;  %v319_v17 = vrot.slane %v1967_v33, 2 }
  0x2a   : > { %1154 = vmatpush.bf16.msra.mxu3 %v1747_v19  ;;  %v271_v19 = vsel %vm262_vm1, %v269_v9, %v270_v10  ;;  %v273_v10 = vrot.slane %v225_v4, 1  ;;  %v1772_v4 = vld [vmem:[%s2412_s1 + $0x188] sm:$0xff] }
  0x2b   : > { %1078 = vmatmul.bf16.vlgmr.msra.gmra.mxu1 %v2040_v7  ;;  %1068 = vmatmul.bf16.vlgmr.msra.gmra.mxu0 %v386_v8  ;;  %v267_v8 = vrot.slane %v221_v18, 1  ;;  %v1757_v18 = vld [vmem:[%s2412_s1 + $0x110] sm:$0xff]  ;;  %v321_v21 = vsel %vm303_vm0, %v319_v17, %v320_v14  ;;  %v325_v14 = vrot.slane %v2062_v28, 2 }
  0x2c   : > { %1089 = vmatpush.bf16.msrb.mxu1 %v1738_v1  ;;  %1176 = vmatpush.bf16.msrb.mxu0 %v1762_v5  ;;  %v263_v1 = vrot.slane %v1937_v16, 1  ;;  %v266_v5 = vrot.slane %v1923_v11, 1  ;;  %v316_v16 = vrot.slane %v1964_v31, 2  ;;  %v317_v11 = vrot.slane %v227_v59, 2 }
  0x2d   : > { %1234 = vmatpush.bf16.msrb.mxu2 %v1778_v6  ;;  %1155 = vmatmul.bf16.vlgmr.msra.gmra.mxu3 %v444_v30  ;;  %v2131_v6 = vpack.c.b16 %v2109_v54, %v2009_v56 }
  0x2e   : > { %1126 = vmatmul.bf16.vlgmr.msra.gmra.mxu2 %v434_v15  ;;  %1263 = vmatpush.bf16.msrb.mxu3 %v1786_v23  ;;  %v265_v13 = vsel %vm262_vm1, %v263_v1, %v264_v2  ;;  %v268_v15 = vsel %vm262_vm1, %v266_v5, %v267_v8  ;;  %v1756_v23 = vld [vmem:[%s2412_s1 + $0x108] sm:$0xff]  ;;  %v1769_v1 = vld [vmem:[%s2412_s1 + $0x170] sm:$0xff]  ;;  %v272_v8 = vrot.slane %v2029_v3, 1  ;;  %v322_v3 = vrot.slane %v2060_v25, 2 }
  0x2f   : > { %v296_v30 = vpack.c.bf16 %v268_v15, %v268_v15  ;;  %v1780_v15 = vld [vmem:[%s2412_s1 + $0x1c8] sm:$0xff] }
  0x30   : > { %1090 = vmatpush.bf16.msrb.mxu1 %v1737_v20  ;;  %1177 = vmatpush.bf16.msrb.mxu0 %v1761_v24  ;;  %v318_v20 = vsel %vm303_vm0, %v316_v16, %v317_v11  ;;  %v1782_v24 = vld [vmem:[%s2412_s1 + $0x1d8] sm:$0xff]  ;;  %v276_v16 = vrot.slane %v227_v59, 1  ;;  %v1793_v11 = vld [vmem:[%s2412_s1 + $0x230] sm:$0xff] }
  0x31   : > { %1235 = vmatpush.bf16.msrb.mxu2 %v1777_v29  ;;  %v295_v29 = vpack.c.bf16 %v265_v13, %v265_v13  ;;  %v340_v35 = vpack.c.bf16 %v318_v20, %v318_v20  ;;  %v1781_v59 = vld [vmem:[%s2412_s1 + $0x1d0] sm:$0xff] }
  0x32   : > { %1264 = vmatpush.bf16.msrb.mxu3 %v1785_v36  ;;  %v341_v36 = vpack.c.bf16 %v321_v21, %v321_v21 }
  0x33   : > { %v402_v42 = vunpack.c.l.b16 %v295_v29  ;;  %v2197_v48 = vunpack.c.l.b16 %v340_v35  ;;  %v1766_v29 = vld [vmem:[%s2412_s1 + $0x158] sm:$0xff] }
  0x34   : > { %1091 = vmatpush.bf16.msrb.mxu1 %v1736_v34  ;;  %1178 = vmatpush.bf16.msrb.mxu0 %v1760_v37  ;;  %v297_v34 = vpack.c.bf16 %v271_v19, %v271_v19  ;;  %v1731_v37 = vld [vmem:[%s2412_s1 + $0x40] sm:$0xff] }
  0x35   : > { %1236 = vmatpush.bf16.msrb.mxu2 %v1776_v41  ;;  %v2190_v41 = vld [vmem:[%s1916_s10 + $0x3c] sm:$0x1]  ;;  %v1767_v19 = vld [vmem:[%s2412_s1 + $0x160] sm:$0xff] }
  0x36   : > { %1265 = vmatpush.bf16.msrb.mxu3 %v1784_v45  ;;  %v1794_v45 = vld [vmem:[%s2412_s1 + $0x238] sm:$0xff] }
  0x38   : > { %1092 = vmatpush.bf16.msrb.mxu1 %v1735_v43  ;;  %1179 = vmatpush.bf16.msrb.mxu0 %v1759_v44  ;;  %v403_v43 = vunpack.c.l.b16 %v296_v30  ;;  %v2192_v44 = vunpack.c.l.b16 %v297_v34 }
  0x39   : > { %1237 = vmatpush.bf16.msrb.mxu2 %v1775_v51  ;;  %v2199_v51 = vunpack.c.l.b16 %v341_v36 }
  0x3a   : > { %1266 = vmatpush.bf16.msrb.mxu3 %v1783_v32  ;;  %v410_v2 = vpack.c.b16 %v403_v43, %v402_v42  ;;  %v454_v5 = vpack.c.b16 %v2192_v44, %v403_v43  ;;  %v1792_v32 = vld [vmem:[%s2412_s1 + $0x228] sm:$0xff]  ;;  %v278_v43 = vrot.slane %v1967_v33, 1 }
  0x3b   : > { %1083 = vmatmul.bf16.gmra.mxu1 %v2118_v61  ;;  %1073 = vmatmul.bf16.gmra.mxu0 %v2120_v62  ;;  %v2210_v9 = vpack.c.b16 %v2199_v51, %v2197_v48 }
  0x3c   : > { %1093 = vmatpush.bf16.msrb.mxu1 %v1734_v58  ;;  %1180 = vmatpush.bf16.msrb.mxu0 %v1758_v63  ;;  %v231_v58 = vunpack.c.l.bf16 %v2187_v40  ;;  %v233_v63 = vunpack.c.l.bf16 %v2190_v41 }
  0x3d   : > { %1238 = vmatpush.bf16.msrb.mxu2 %v1774_v27  ;;  %1160 = vmatmul.bf16.gmra.mxu3 %v445_v26  ;;  %v214_v27 = vld [vmem:[%s1916_s10 + $0x40] sm:$0xf] }
  0x3e   : > { %1131 = vmatmul.bf16.gmra.mxu2 %v2131_v6  ;;  %1267 = vmatpush.bf16.msrb.mxu3 %v1782_v24  ;;  %v323_v17 = vrot.slane %v231_v58, 2  ;;  %v326_v55 = vrot.slane %v233_v63, 2  ;;  %v2255_v21 = vunpack.c.l.bf16 %v214_v27  ;;  %v1791_v24 = vld [vmem:[%s2412_s1 + $0x220] sm:$0xff] }
  0x40   : > { %1094 = vmatpush.bf16.msrb.mxu1 %v1733_v12  ;;  %1181 = vmatpush.bf16.msrb.mxu0 %v1757_v18  ;;  %v275_v12 = vrot.slane %v1964_v31, 1  ;;  %v1768_v31 = vld [vmem:[%s2412_s1 + $0x168] sm:$0xff]  ;;  %v274_v18 = vsel %vm262_vm1, %v272_v8, %v273_v10  ;;  %v324_v13 = vsel %vm303_vm0, %v322_v3, %v323_v17  ;;  %v327_v57 = vsel %vm303_vm0, %v325_v14, %v326_v55 }
  0x41   : > { %1239 = vmatpush.bf16.msrb.mxu2 %v1773_v22  ;;  %v342_v22 = vpack.c.bf16 %v324_v13, %v324_v13  ;;  %v344_v35 = vpack.c.bf16 %v2255_v21, %v2255_v21  ;;  %v282_v8 = vrot.slane %v231_v58, 1  ;;  %v1763_v58 = vld [vmem:[%s2412_s1 + $0x140] sm:$0xff]  ;;  %v352_v53 = vrot.slane %v2255_v21, 2 }
  0x42   : > { %v277_v26 = vsel %vm262_vm1, %v275_v12, %v276_v16  ;;  %1268 = vmatpush.bf16.msrb.mxu3 %v1781_v59  ;;  %v215_v16 = vld [vmem:[%s1916_s10 + $0x44] sm:$0x1]  ;;  %v347_v59 = vrot.slane %v2255_v21, 1 }
  0x43   : > { %v299_v20 = vpack.c.bf16 %v277_v26, %v277_v26  ;;  %v2265_v36 = vunpack.c.l.b16 %v342_v22  ;;  %v235_v14 = vunpack.c.l.bf16 %v215_v16  ;;  %v1787_v26 = vld [vmem:[%s2412_s1 + $0x200] sm:$0xff] }
  0x44   : > { %1095 = vmatpush.bf16.msrb.mxu1 %v1732_v52  ;;  %1182 = vmatpush.bf16.msrb.mxu0 %v1756_v23  ;;  %v298_v52 = vpack.c.bf16 %v274_v18, %v274_v18  ;;  %v343_v23 = vpack.c.bf16 %v327_v57, %v327_v57 }
  0x45   : > { %1240 = vmatpush.bf16.msrb.mxu2 %v1772_v4  ;;  %v406_v34 = vunpack.c.l.b16 %v299_v20  ;;  %v284_v4 = vrot.slane %v2062_v28, 1  ;;  %v348_v18 = vrot.slane %v235_v14, 1  ;;  %v353_v56 = vrot.slane %v235_v14, 2 }
  0x46   : > { %1269 = vmatpush.bf16.msrb.mxu3 %v1780_v15  ;;  %v405_v30 = vunpack.c.l.b16 %v298_v52  ;;  %v216_v15 = vld [vmem:[%s1916_s10 + $0x48] sm:$0xf]  ;;  %v466_v21 = vpack.c.b16 %v2265_v36, %v2199_v51 }
  0x47   : > { %v349_v28 = vsel %vm262_vm1, %v347_v59, %v348_v18  ;;  %v236_v52 = vunpack.c.l.bf16 %v216_v15 }
  0x48   : > { %1096 = vmatpush.bf16.msrb.mxu1 %v1731_v37  ;;  %1183 = vmatpush.bf16.msrb.mxu0 %v1755_v39  ;;  %v2267_v37 = vunpack.c.l.b16 %v343_v23  ;;  %v411_v39 = vpack.c.b16 %v405_v30, %v2192_v44  ;;  %v455_v42 = vpack.c.b16 %v406_v34, %v405_v30  ;;  %v1764_v44 = vld [vmem:[%s2412_s1 + $0x148] sm:$0xff]  ;;  %v465_v30 = vpack.c.b16 %v2197_v48, %v2109_v54 }
  0x49   : > { %1241 = vmatpush.bf16.msrb.mxu2 %v1771_v46  ;;  %v360_v20 = vrot.slane %v236_v52, 1  ;;  %v357_v23 = vpack.c.bf16 %v236_v52, %v236_v52 }
  0x4a   : > { %1270 = vmatpush.bf16.msrb.mxu3 %v1779_v50 }
  0x4b   : > { %1097 = vmatmul.bf16.vlgmr.msrb.gmra.mxu1 %v410_v2  ;;  %1184 = vmatmul.bf16.vlgmr.msrb.gmra.mxu0 %v454_v5  ;;  %v279_v2 = vrot.slane %v229_v60, 1  ;;  %v281_v5 = vrot.slane %v2060_v25, 1  ;;  %v1790_v25 = vld [vmem:[%s2412_s1 + $0x218] sm:$0xff] }
  0x4c   : > { %1205 = vmatpush.bf16.msra.mxu1 %v1770_v38  ;;  %1292 = vmatpush.bf16.msra.mxu0 %v1794_v45  ;;  %v1765_v38 = vld [vmem:[%s2412_s1 + $0x150] sm:$0xff] }
  0x4d   : > { %1165 = vmatmul.bf16.gmra.mxu3 %v446_v49  ;;  %1826 = vmatpush.bf16.msra.mxu2 %v1794_v45  ;;  %v2274_v45 = vunpack.c.l.b16 %v344_v35  ;;  %v280_v60 = vsel %vm262_vm1, %v278_v43, %v279_v2  ;;  %v283_v40 = vsel %vm262_vm1, %v281_v5, %v282_v8  ;;  %v285_v49 = vrot.slane %v233_v63, 1 }
  0x4e   : > { %1136 = vmatmul.bf16.gmra.mxu2 %v2210_v9  ;;  %v300_v10 = vpack.c.bf16 %v280_v60, %v280_v60  ;;  %v301_v12 = vpack.c.bf16 %v283_v40, %v283_v40  ;;  %v351_v63 = vpack.c.bf16 %v349_v28, %v349_v28 }
  0x4f   : > { %v447_v33 = vpack.c.b16 %v2274_v45, %v2098_v47  ;;  %v1789_v47 = vld [vmem:[%s2412_s1 + $0x210] sm:$0xff]  ;;  %v286_v27 = vsel %vm262_vm1, %v284_v4, %v285_v49 }
  0x50   : > { %1206 = vmatpush.bf16.msra.mxu1 %v1769_v1  ;;  %1293 = vmatpush.bf16.msra.mxu0 %v1793_v11  ;;  %v2278_v1 = vpack.c.b16 %v2267_v37, %v2265_v36  ;;  %v407_v3 = vunpack.c.l.b16 %v300_v10  ;;  %v408_v17 = vunpack.c.l.b16 %v301_v12  ;;  %v302_v41 = vpack.c.bf16 %v286_v27, %v286_v27 }
  0x51   : > { %1827 = vmatpush.bf16.msra.mxu2 %v1793_v11  ;;  %v1788_v11 = vld [vmem:[%s2412_s1 + $0x208] sm:$0xff]  ;;  %v453_v13 = vunpack.c.l.b16 %v351_v63 }
  0x52   : > { %v412_v55 = vpack.c.b16 %v407_v3, %v406_v34 }
  0x54   : > { %1207 = vmatpush.bf16.msra.mxu1 %v1768_v31  ;;  %1294 = vmatpush.bf16.msra.mxu0 %v1792_v32  ;;  %v456_v31 = vpack.c.b16 %v408_v17, %v407_v3 }
  0x55   : > { %1828 = vmatpush.bf16.msra.mxu2 %v1792_v32  ;;  %v409_v32 = vunpack.c.l.b16 %v302_v41 }
  0x57   : > { %v413_v57 = vpack.c.b16 %v409_v32, %v408_v17  ;;  %v457_v46 = vpack.c.b16 %v453_v13, %v409_v32 }
  0x58   : > { %1208 = vmatpush.bf16.msra.mxu1 %v1767_v19  ;;  %1295 = vmatpush.bf16.msra.mxu0 %v1791_v24 }
  0x59   : > { %1829 = vmatpush.bf16.msra.mxu2 %v1791_v24 }
  0x5b   : > { %1102 = vmatmul.bf16.gmra.mxu1 %v411_v39  ;;  %1189 = vmatmul.bf16.gmra.mxu0 %v455_v42 }
  0x5c   : > { %1209 = vmatpush.bf16.msra.mxu1 %v1766_v29  ;;  %1296 = vmatpush.bf16.msra.mxu0 %v1790_v25  ;;  %v473_v29 = vunpack.c.l.b16 %v357_v23 }
  0x5d   : > { %1170 = vmatmul.bf16.gmra.mxu3 %v447_v33  ;;  %1830 = vmatpush.bf16.msra.mxu2 %v1790_v25 }
  0x5e   : > { %1141 = vmatmul.bf16.gmra.mxu2 %v2278_v1  ;;  %v474_v35 = vpack.c.b16 %v473_v29, %v2274_v45 }
  0x60   : > { %1210 = vmatpush.bf16.msra.mxu1 %v1765_v38  ;;  %1297 = vmatpush.bf16.msra.mxu0 %v1789_v47  ;;  %v354_v38 = vsel %vm303_vm0, %v352_v53, %v353_v56 }
  0x61   : > { %1831 = vmatpush.bf16.msra.mxu2 %v1789_v47  ;;  %v356_v42 = vpack.c.bf16 %v354_v38, %v354_v38 }
  0x63   : > { %v463_v48 = vunpack.c.l.b16 %v356_v42 }
  0x64   : > { %1211 = vmatpush.bf16.msra.mxu1 %v1764_v44  ;;  %1298 = vmatpush.bf16.msra.mxu0 %v1788_v11 }
  0x65   : > { %1832 = vmatpush.bf16.msra.mxu2 %v1788_v11  ;;  %v467_v50 = vpack.c.b16 %v463_v48, %v2267_v37 }
  0x68   : > { %1212 = vmatpush.bf16.msra.mxu1 %v1763_v58  ;;  %1299 = vmatpush.bf16.msra.mxu0 %v1787_v26 }
  0x69   : > { %1833 = vmatpush.bf16.msra.mxu2 %v1787_v26 }
  0x6b   : > { %1107 = vmatmul.bf16.gmra.mxu1 %v412_v55  ;;  %1194 = vmatmul.bf16.gmra.mxu0 %v456_v31 }
  0x6d   : > { %1271 = vmatmul.bf16.vlgmr.msrb.gmra.mxu3 %v411_v39 }
  0x6e   : > { %1242 = vmatmul.bf16.vlgmr.msrb.gmra.mxu2 %v2120_v62  ;;  %v217_v62 = vld [vmem:[%s1916_s10 + $0x4c] sm:$0x1] }
  0x6f   : > { %v237_v19 = vunpack.c.l.bf16 %v217_v62 }
  0x71   : > { %v361_v22 = vrot.slane %v237_v19, 1 }
  0x73   : > { %v362_v24 = vsel %vm262_vm1, %v360_v20, %v361_v22 }
  0x7b   : > { %1112 = vmatmul.bf16.gmra.mxu1 %v413_v57  ;;  %1199 = vmatmul.bf16.gmra.mxu0 %v457_v46 }
  0x7d   : > { %1276 = vmatmul.bf16.gmra.mxu3 %v412_v55 }
  0x7e   : > { %1247 = vmatmul.bf16.gmra.mxu2 %v2040_v7  ;;  %v364_v7 = vpack.c.bf16 %v362_v24, %v362_v24 }
  0x80   : > { %v477_v34 = vunpack.c.l.b16 %v364_v7 }
  0x8b   : > { %1213 = vmatmul.bf16.vlgmr.msra.gmra.mxu1 %v464_v0  ;;  %1300 = vmatmul.bf16.vlgmr.msra.gmra.mxu0 %v2131_v6  ;;  %v365_v0 = vrot.slane %v236_v52, 2  ;;  %v366_v6 = vrot.slane %v237_v19, 2 }
  0x8d   : > { %1281 = vmatmul.bf16.gmra.mxu3 %v413_v57  ;;  %v367_v39 = vsel %vm303_vm0, %v365_v0, %v366_v6 }
  0x8e   : > { %1252 = vmatmul.bf16.gmra.mxu2 %v2118_v61  ;;  %v478_v61 = vpack.c.b16 %v477_v34, %v453_v13  ;;  %v369_v54 = vpack.c.bf16 %v367_v39, %v367_v39 }
  0x90   : > { %v481_v43 = vunpack.c.l.b16 %v369_v54 }
  0x92   : > { %v482_v5 = vpack.c.b16 %v481_v43, %v463_v48 }
  0x9b   : > { %1218 = vmatmul.bf16.gmra.mxu1 %v465_v30  ;;  %1305 = vmatmul.bf16.gmra.mxu0 %v2210_v9 }
  0x9d   : > { %1286 = vmatmul.bf16.gmra.mxu3 %v478_v61 }
  0x9e   : > { %1257 = vmatmul.bf16.gmra.mxu2 %v474_v35 }
  0xa8   : > { %v1079_v45 = vpop.f32.mrf.mxu1  ;;  %v1069_v2 = vpop.f32.mrf.mxu0 }
  0xab   : > { %1223 = vmatmul.bf16.gmra.mxu1 %v466_v21  ;;  %1310 = vmatmul.bf16.gmra.mxu0 %v2278_v1 }
  0xae   : > { %1315 = vmatmul.bf16.vlgmr.msra.gmra.mxu2 %v482_v5 }
  0xb0   : > { %v1081_v8 = vpop.f32.mrf.mxu1  ;;  %v1071_v33 = vpop.f32.mrf.mxu0 }
  0xb1   : > { %v1127_v9 = vpop.f32.mrf.mxu2  ;;  %v1156_v44 = vpop.f32.mrf.mxu3 }
  0xb8   : > { %v1084_v60 = vpop.f32.mrf.mxu1  ;;  %v1074_v40 = vpop.f32.mrf.mxu0 }
  0xb9   : > { %v1129_v25 = vpop.f32.mrf.mxu2  ;;  %v2339_v47 = vpop.f32.mrf.mxu3 }
  0xbb   : > { %1228 = vmatmul.bf16.gmra.mxu1 %v467_v50 }
  0xc0   : > { %v1086_v36 = vpop.f32.mrf.mxu1  ;;  %v1076_v58 = vpop.f32.mrf.mxu0 }
  0xc1   : > { %v1132_v51 = vpop.f32.mrf.mxu2  ;;  %v1161_v10 = vpop.f32.mrf.mxu3 }
  0xc8   : > { %v1098_v16 = vpop.f32.mrf.mxu1  ;;  %v1185_v1 = vpop.f32.mrf.mxu0 }
  0xc9   : > { %v1134_v12 = vpop.f32.mrf.mxu2  ;;  %v1099_v11 = vadd.f32 %v1098_v16, %v1069_v2  ;;  %v2341_v17 = vpop.f32.mrf.mxu3 }
  0xcb   : > { %v1128_v3 = vadd.f32 %v1127_v9, %v1099_v11 }
  0xcd   : > { %v1157_v14 = vadd.f32 %v1156_v44, %v1128_v3 }
  0xcf   : > { %v1186_v55 = vadd.f32 %v1185_v1, %v1157_v14 }
  0xd0   : > { %v1100_v31 = vpop.f32.mrf.mxu1  ;;  %v1187_v4 = vpop.f32.mrf.mxu0 }
  0xd1   : > { %v1137_v37 = vpop.f32.mrf.mxu2  ;;  %v1101_v49 = vadd.f32 %v1100_v31, %v1071_v33  ;;  %v1166_v18 = vpop.f32.mrf.mxu3 }
  0xd3   : > { %v1130_v59 = vadd.f32 %v1129_v25, %v1101_v49 }
  0xd8   : > { %v1103_v27 = vpop.f32.mrf.mxu1  ;;  %v1190_v28 = vpop.f32.mrf.mxu0 }
  0xd9   : > { %v1139_v26 = vpop.f32.mrf.mxu2  ;;  %v1104_v41 = vadd.f32 %v1103_v27, %v1074_v40  ;;  %v2343_v46 = vpop.f32.mrf.mxu3 }
  0xdb   : > { %v1133_v63 = vadd.f32 %v1132_v51, %v1104_v41 }
  0xdd   : > { %v1162_v32 = vadd.f32 %v1161_v10, %v1133_v63 }
  0xdf   : > { %v1191_v13 = vadd.f32 %v1190_v28, %v1162_v32 }
  0xe0   : > { %v1105_v62 = vpop.f32.mrf.mxu1  ;;  %v2345_v15 = vpop.f32.mrf.mxu0 }
  0xe1   : > { %v1142_v57 = vpop.f32.mrf.mxu2  ;;  %v1106_v19 = vadd.f32 %v1105_v62, %v1076_v58  ;;  %v1171_v7 = vpop.f32.mrf.mxu3  ;;  %v1159_v58 = vadd.f32 %v2339_v47, %v1130_v59  ;;  %v2371_v47 = vld [vmem:[%s2414_s3] ss:$0 sm:$0xff] }
  0xe3   : > { %v1135_v52 = vadd.f32 %v1134_v12, %v1106_v19  ;;  %v1188_v12 = vadd.f32 %v1187_v4, %v1159_v58 }
  0xe5   : > { %v1164_v41 = vadd.f32 %v2341_v17, %v1135_v52 }
  0xe8   : > { %v1108_v22 = vpop.f32.mrf.mxu1  ;;  %v1195_v23 = vpop.f32.mrf.mxu0 }
  0xe9   : > { %v1144_v20 = vpop.f32.mrf.mxu2  ;;  %v1109_v24 = vadd.f32 %v1108_v22, %v1079_v45  ;;  %v2353_v61 = vpop.f32.mrf.mxu3 }
  0xeb   : > { %v1138_v29 = vadd.f32 %v1137_v37, %v1109_v24 }
  0xed   : > { %v1167_v30 = vadd.f32 %v1166_v18, %v1138_v29 }
  0xef   : > { %v2347_v34 = vadd.f32 %v1195_v23, %v1167_v30  ;;  %v1193_v23 = vadd.f32 %v2345_v15, %v1164_v41 }
  0xf0   : > { %v1110_v53 = vpop.f32.mrf.mxu1  ;;  %v2349_v56 = vpop.f32.mrf.mxu0 }
  0xf1   : > { %v1243_v35 = vpop.f32.mrf.mxu2  ;;  %v1111_v0 = vadd.f32 %v1110_v53, %v1081_v8  ;;  %v1272_v21 = vpop.f32.mrf.mxu3 }
  0xf3   : > { %v2351_v6 = vadd.f32 %v1139_v26, %v1111_v0 }
  0xf8   : > { %v1113_v39 = vpop.f32.mrf.mxu1  ;;  %v1200_v42 = vpop.f32.mrf.mxu0 }
  0xf9   : > { %v1245_v38 = vpop.f32.mrf.mxu2  ;;  %v1114_v54 = vadd.f32 %v1113_v39, %v1084_v60  ;;  %v1274_v8 = vpop.f32.mrf.mxu3 }
  0xfb   : > { %v1143_v48 = vadd.f32 %v1142_v57, %v1114_v54 }
  0xfd   : > { %v1172_v43 = vadd.f32 %v1171_v7, %v1143_v48 }
  0xff   : > { %v2355_v45 = vadd.f32 %v1200_v42, %v1172_v43  ;;  %v1169_v43 = vadd.f32 %v2343_v46, %v2351_v6 }
 0x100   : > { %v1115_v5 = vpop.f32.mrf.mxu1  ;;  %v2357_v9 = vpop.f32.mrf.mxu0 }
 0x101   : > { %v1248_v2 = vpop.f32.mrf.mxu2  ;;  %v1116_v33 = vadd.f32 %v1115_v5, %v1086_v36  ;;  %v2365_v36 = vld [vmem:[%s2413_s2] ss:$0 sm:$0xff]  ;;  %v1277_v14 = vpop.f32.mrf.mxu3 }
 0x103   : > { %v2359_v44 = vadd.f32 %v1144_v20, %v1116_v33 }
 0x108   : > { %v1214_v50 = vpop.f32.mrf.mxu1  ;;  %v1301_v25 = vpop.f32.mrf.mxu0 }
 0x109   : > { %v1215_v40 = vadd.f32 %v1214_v50, %v1186_v55  ;;  %v1250_v51 = vpop.f32.mrf.mxu2  ;;  %v1279_v57 = vpop.f32.mrf.mxu3  ;;  %v1198_v50 = vadd.f32 %v2349_v56, %v1169_v43 }
 0x10b   : > { %v1244_v60 = vadd.f32 %v1243_v35, %v1215_v40 }
 0x10d   : > { %v1273_v10 = vadd.f32 %v1272_v21, %v1244_v60 }
 0x10f   : > { %v1302_v11 = vadd.f32 %v1301_v25, %v1273_v10 }
 0x110   : > { %v1216_v16 = vpop.f32.mrf.mxu1  ;;  %v1303_v1 = vpop.f32.mrf.mxu0 }
 0x111   : > { %v1217_v3 = vadd.f32 %v1216_v16, %v1188_v12  ;;  %v1253_v31 = vpop.f32.mrf.mxu2  ;;  %v1325_v55 = vmul.f32 %v2365_v36, %v1302_v11  ;;  %v1282_v53 = vpop.f32.mrf.mxu3 }
 0x113   : > { %v1246_v37 = vadd.f32 %v1245_v38, %v1217_v3  ;;  %v1337_v26 = vadd.f32 %v2371_v47, %v1325_v55 }
 0x115   : > { %v1275_v4 = vadd.f32 %v1274_v8, %v1246_v37  ;;  %v1345_v62 = vmax.f32 %v1337_v26, 0.0  ;;  %v1174_v37 = vadd.f32 %v2353_v61, %v2359_v44 }
 0x117   : > { %v1304_v49 = vadd.f32 %v1303_v1, %v1275_v4  ;;  %v1203_v26 = vadd.f32 %v2357_v9, %v1174_v37 }
 0x118   : > { %v1219_v59 = vpop.f32.mrf.mxu1  ;;  %v1306_v18 = vpop.f32.mrf.mxu0 }
 0x119   : > { %v1326_v27 = vmul.f32 %v2365_v36, %v1304_v49  ;;  %v1220_v28 = vadd.f32 %v1219_v59, %v1191_v13  ;;  %v1255_v22 = vpop.f32.mrf.mxu2  ;;  %v1284_v40 = vpop.f32.mrf.mxu3 }
 0x11b   : > { %v1338_v63 = vadd.f32 %v2371_v47, %v1326_v27  ;;  %v1249_v32 = vadd.f32 %v1248_v2, %v1220_v28 }
 0x11d   : > { %v1346_v19 = vmax.f32 %v1338_v63, 0.0  ;;  %v1278_v20 = vadd.f32 %v1277_v14, %v1249_v32 }
 0x11f   : > { %v1798_v13 = vpack.c.bf16 %v1346_v19, %v1345_v62  ;;  %v1307_v52 = vadd.f32 %v1306_v18, %v1278_v20 }
 0x120   : > { %v1221_v24 = vpop.f32.mrf.mxu1  ;;  %v1308_v17 = vpop.f32.mrf.mxu0 }
 0x121   : > { %1799 = vst [vmem:[%s2381_s6] sm:$0xff] %v1798_v13   ;;  %v1222_v7 = vadd.f32 %v1221_v24, %v1193_v23  ;;  %v1327_v30 = vmul.f32 %v2365_v36, %v1307_v52  ;;  %v1258_v38 = vpop.f32.mrf.mxu2  ;;  %v1287_v14 = vpop.f32.mrf.mxu3 }
 0x123   : > { %v1251_v29 = vadd.f32 %v1250_v51, %v1222_v7  ;;  %v1339_v42 = vadd.f32 %v2371_v47, %v1327_v30 }
 0x125   : > { %v1280_v35 = vadd.f32 %v1279_v57, %v1251_v29  ;;  %v1347_v5 = vmax.f32 %v1339_v42, 0.0 }
 0x127   : > { %v1309_v0 = vadd.f32 %v1308_v17, %v1280_v35 }
 0x128   : > { %v1224_v39 = vpop.f32.mrf.mxu1  ;;  %v1311_v48 = vpop.f32.mrf.mxu0 }
 0x129   : > { %v1328_v54 = vmul.f32 %v2365_v36, %v1309_v0  ;;  %v1225_v15 = vadd.f32 %v1224_v39, %v2347_v34  ;;  %v1260_v10 = vpop.f32.mrf.mxu2  ;;  %v1289_v32 = vpop.f32.mrf.mxu3 }
 0x12b   : > { %v1340_v21 = vadd.f32 %v2371_v47, %v1328_v54  ;;  %v1254_v2 = vadd.f32 %v1253_v31, %v1225_v15 }
 0x12d   : > { %v1348_v33 = vmax.f32 %v1340_v21, 0.0  ;;  %v1283_v8 = vadd.f32 %v1282_v53, %v1254_v2 }
 0x12f   : > { %v1803_v25 = vpack.c.bf16 %v1348_v33, %v1347_v5  ;;  %v1312_v58 = vadd.f32 %v1311_v48, %v1283_v8 }
 0x130   : > { %v1226_v51 = vpop.f32.mrf.mxu1  ;;  %v1313_v12 = vpop.f32.mrf.mxu0 }
 0x131   : > { %1815 = vst [vmem:[%s2381_s6 + $0x8] sm:$0xff] %v1803_v25   ;;  %v1227_v60 = vadd.f32 %v1226_v51, %v1198_v50  ;;  %v1329_v16 = vmul.f32 %v2365_v36, %v1312_v58  ;;  %v1316_v4 = vpop.f32.mrf.mxu2 }
 0x133   : > { %v1256_v34 = vadd.f32 %v1255_v22, %v1227_v60  ;;  %v1341_v11 = vadd.f32 %v2371_v47, %v1329_v16 }
 0x135   : > { %v1285_v46 = vadd.f32 %v1284_v40, %v1256_v34  ;;  %v1349_v49 = vmax.f32 %v1341_v11, 0.0 }
 0x137   : > { %v1314_v6 = vadd.f32 %v1313_v12, %v1285_v46 }
 0x138   : > { %v1229_v1 = vpop.f32.mrf.mxu1 }
 0x139   : > { %v1330_v3 = vmul.f32 %v2365_v36, %v1314_v6  ;;  %v1230_v56 = vadd.f32 %v1229_v1, %v2355_v45  ;;  %v1318_v44 = vpop.f32.mrf.mxu2 }
 0x13b   : > { %v1342_v31 = vadd.f32 %v2371_v47, %v1330_v3  ;;  %v1259_v55 = vadd.f32 %v1258_v38, %v1230_v56 }
 0x13d   : > { %v1350_v59 = vmax.f32 %v1342_v31, 0.0  ;;  %v1288_v18 = vadd.f32 %v1287_v14, %v1259_v55 }
 0x13f   : > { %v1808_v27 = vpack.c.bf16 %v1350_v59, %v1349_v49  ;;  %v1317_v41 = vadd.f32 %v1316_v4, %v1288_v18 }
 0x140   : > { %v1231_v28 = vpop.f32.mrf.mxu1 }
 0x141   : > { %1816 = vst [vmem:[%s2381_s6 + $0x10] sm:$0xff] %v1808_v27   ;;  %v1232_v63 = vadd.f32 %v1231_v28, %v1203_v26  ;;  %v1331_v57 = vmul.f32 %v2365_v36, %v1317_v41 }
 0x143   : > { %v1261_v45 = vadd.f32 %v1260_v10, %v1232_v63  ;;  %v1343_v19 = vadd.f32 %v2371_v47, %v1331_v57 }
 0x145   : > { %v1290_v61 = vadd.f32 %v1289_v32, %v1261_v45  ;;  %v1351_v9 = vmax.f32 %v1343_v19, 0.0 }
 0x147   : > { %v1319_v62 = vadd.f32 %v1318_v44, %v1290_v61 }
 0x149   : > { %v1332_v20 = vmul.f32 %v2365_v36, %v1319_v62 }
 0x14b   : > { %v1344_v22 = vadd.f32 %v2371_v47, %v1332_v20 }
 0x14d   : > { %v1352_v23 = vmax.f32 %v1344_v22, 0.0 }
 0x14f   : > { %v1813_v13 = vpack.c.bf16 %v1352_v23, %v1351_v9 }
 0x151   : > { %1817 = vst [vmem:[%s2381_s6 + $0x18] sm:$0xff] %v1813_v13  }
 0x152 PF: > { %s14_s15 = sadd.s32 1, %s1851_s15  }
 0x153   : > { %p11_p4 = scmp.ge.s32.totalorder %s14_s15, 4  }
 0x155   :  { %13 = sbr.rel (!%p11_p4) target bundleno = 1 (0x1), region = 66 }

// kernel: conv_forward.3
= control target key start
LH: loop header
LB: loop body
LE: loop exit
PB: predicated region body
PF: predicated region fallthrough
CT: control target
= control target key end

     0   :  { %s3459_s18 = smov 0   ;;  %s4757_s0 = inlined_call_operand.vmem [shape: bf16[2,18,18,128], index: 0, kind: input, shape index: {}]   ;;  %s4758_s1 = inlined_call_operand.vmem [shape: bf16[1152,128], index: 1, kind: input, shape index: {}]   ;;  %s4759_s2 = inlined_call_operand.vmem [shape: f32[1,128], index: 2, kind: input, shape index: {}]   ;;  %s4760_s3 = inlined_call_operand.vmem [shape: f32[1,128], index: 3, kind: input, shape index: {}]   ;;  %s4761_s4 = inlined_call_operand.vmem [shape: bf16[2,64,128], index: 4, kind: input, shape index: {}]   ;;  %s4762_s5 = inlined_call_operand.vmem [shape: bf16[2,8,8,128], index: 5, kind: output, shape index: {}]  }
   0x1 LB: > { %s2900_s19 = sadd.s32 4294967295, %s3427_s18   ;;  %p2904_p0 = scmp.ge.s32.totalorder %s3427_s18, 1  ;;  %s3427_s18 = sphi %s3459_s18, %s15_s18  }
   0x2   : > { %p187_p1 = scmp.lt.s32.totalorder %s3427_s18, 3 }
   0x4   : > { %p188_p2 = pnand %p2904_p0, %p187_p1 }
   0x6   : > { %191 = sbr.rel (%p188_p2) target bundleno = 1019 (0x3fb), region = 40 }
   0xb   : > { %v3246_v0 = vld [vmem:[%s4758_s1 + $0x38] sm:$0xff]  ;;  %p215_p3 = scmp.lt.s32.totalorder %s2900_s19, 1  ;;  %v3245_v1 = vld [vmem:[%s4758_s1 + $0x30] sm:$0xff]  ;;  %v3244_v2 = vld [vmem:[%s4758_s1 + $0x28] sm:$0xff]  ;;  %vm413_vm0 = vcmask 1046528   ;;  %vm558_vm1 = vcmask 1045504  }
   0xc   : > { %1649 = vmatpush.bf16.msra.mxu0 %v3246_v0  ;;  %3386 = vmatpush.bf16.msra.mxu1 %v3246_v0  ;;  %v3243_v3 = vld [vmem:[%s4758_s1 + $0x20] sm:$0xff]  ;;  %v3242_v5 = vld [vmem:[%s4758_s1 + $0x18] sm:$0xff]  ;;  %v3241_v14 = vld [vmem:[%s4758_s1 + $0x10] sm:$0xff] }
   0xd   : > { %s4878_s19 = smov (!%p215_p3, %s2900_s19), 1  ;;  %3387 = vmatpush.bf16.msra.mxu2 %v3246_v0  ;;  %3388 = vmatpush.bf16.msra.mxu3 %v3246_v0  ;;  %v3240_v23 = vld [vmem:[%s4758_s1 + $0x8] sm:$0xff]  ;;  %v3239_v31 = vld [vmem:[%s4758_s1] sm:$0xff]  ;;  %v3254_v36 = vld [vmem:[%s4758_s1 + $0x78] sm:$0xff] }
   0xe   : > { %s3410_s26 = smul.u32 216, %s4878_s19  ;;  %v3262_v37 = vld [vmem:[%s4758_s1 + $0xb8] sm:$0xff]  ;;  %v3253_v46 = vld [vmem:[%s4758_s1 + $0x70] sm:$0xff]  ;;  %v3252_v56 = vld [vmem:[%s4758_s1 + $0x68] sm:$0xff]  ;;  %s3238_s8 = sshll.u32 %s4878_s19, 5 }
   0xf   : > { %v3261_v47 = vld [vmem:[%s4758_s1 + $0xb0] sm:$0xff]  ;;  %v3260_v57 = vld [vmem:[%s4758_s1 + $0xa8] sm:$0xff]  ;;  %s224_s11 = scalar_lea.vmem %s4762_s5, %s3238_s8 }
  0x10   : > { %1650 = vmatpush.bf16.msra.mxu0 %v3245_v1  ;;  %3389 = vmatpush.bf16.msra.mxu1 %v3245_v1  ;;  %s3485_s6 = scalar_lea.vmem %s4757_s0, %s3410_s26 }
  0x11   : > { %3390 = vmatpush.bf16.msra.mxu2 %v3245_v1  ;;  %3391 = vmatpush.bf16.msra.mxu3 %v3245_v1  ;;  %v3320_v4 = vld [vmem:[%s3485_s6] sm:$0xff]   ;;  %v3377_v6 = vld [vmem:[%s3485_s6 + $0x48] sm:$0xff]   ;;  %v3379_v8 = vld [vmem:[%s3485_s6 + $0x78] sm:$0xff]  }
  0x12   : > { %v3378_v7 = vld [vmem:[%s3485_s6 + $0x60] sm:$0xff]   ;;  %v3494_v9 = vunpack.c.l.bf16 %v3320_v4  ;;  %v3496_v10 = vunpack.c.h.bf16 %v3320_v4  ;;  %v3498_v11 = vunpack.c.l.bf16 %v3377_v6  ;;  %v3500_v12 = vunpack.c.h.bf16 %v3377_v6  ;;  %v228_v40 = vld [vmem:[%s3485_s6 + $0xc] sm:$0xff]   ;;  %v246_v43 = vld [vmem:[%s3485_s6 + $0x54] sm:$0xff]  }
  0x13   : > { %v3502_v13 = vunpack.c.l.bf16 %v3378_v7  ;;  %v3507_v15 = vunpack.c.h.bf16 %v3378_v7  ;;  %v3509_v16 = vunpack.c.l.bf16 %v3379_v8  ;;  %v3511_v17 = vunpack.c.h.bf16 %v3379_v8  ;;  %v252_v44 = vld [vmem:[%s3485_s6 + $0x6c] sm:$0xff]   ;;  %v258_v45 = vld [vmem:[%s3485_s6 + $0x84] sm:$0xff]  }
  0x14   : > { %1651 = vmatpush.bf16.msra.mxu0 %v3244_v2  ;;  %3392 = vmatpush.bf16.msra.mxu1 %v3244_v2  ;;  %v333_v18 = vpack.c.bf16 %v3494_v9, %v3494_v9  ;;  %v334_v19 = vpack.c.bf16 %v3496_v10, %v3496_v10  ;;  %v345_v20 = vpack.c.bf16 %v3498_v11, %v3498_v11  ;;  %v3557_v48 = vunpack.c.l.bf16 %v228_v40  ;;  %v3259_v4 = vld [vmem:[%s4758_s1 + $0xa0] sm:$0xff] }
  0x15   : > { %3393 = vmatpush.bf16.msra.mxu2 %v3244_v2  ;;  %3394 = vmatpush.bf16.msra.mxu3 %v3244_v2  ;;  %v346_v21 = vpack.c.bf16 %v3500_v12, %v3500_v12  ;;  %v349_v22 = vpack.c.bf16 %v3502_v13, %v3502_v13  ;;  %v350_v24 = vpack.c.bf16 %v3507_v15, %v3507_v15  ;;  %v3559_v49 = vunpack.c.h.bf16 %v228_v40  ;;  %v227_v2 = vld [vmem:[%s3485_s6 + $0x8] sm:$0x1] }
  0x16   : > { %v353_v25 = vpack.c.bf16 %v3509_v16, %v3509_v16  ;;  %v354_v26 = vpack.c.bf16 %v3511_v17, %v3511_v17  ;;  %v781_v27 = vunpack.c.l.b16 %v333_v18  ;;  %v782_v28 = vunpack.c.l.b16 %v334_v19 }
  0x17   : > { %v793_v29 = vunpack.c.l.b16 %v345_v20  ;;  %v794_v30 = vunpack.c.l.b16 %v346_v21  ;;  %v797_v32 = vunpack.c.l.b16 %v349_v22  ;;  %v798_v33 = vunpack.c.l.b16 %v350_v24  ;;  %v3250_v22 = vld [vmem:[%s4758_s1 + $0x58] sm:$0xff] }
  0x18   : > { %1652 = vmatpush.bf16.msra.mxu0 %v3243_v3  ;;  %3395 = vmatpush.bf16.msra.mxu1 %v3243_v3  ;;  %v801_v34 = vunpack.c.l.b16 %v353_v25  ;;  %v802_v35 = vunpack.c.l.b16 %v354_v26  ;;  %v813_v38 = vpack.c.b16 %v782_v28, %v781_v27  ;;  %v3562_v50 = vunpack.c.l.bf16 %v246_v43  ;;  %v3375_v27 = vld [vmem:[%s3485_s6 + $0x18] sm:$0xff]  }
  0x19   : > { %3396 = vmatpush.bf16.msra.mxu2 %v3243_v3  ;;  %3397 = vmatpush.bf16.msra.mxu3 %v3243_v3  ;;  %v3541_v39 = vpack.c.b16 %v794_v30, %v793_v29  ;;  %v3544_v41 = vpack.c.b16 %v798_v33, %v797_v32  ;;  %v3564_v51 = vunpack.c.h.bf16 %v246_v43  ;;  %v3566_v52 = vunpack.c.l.bf16 %v252_v44  ;;  %v3251_v3 = vld [vmem:[%s4758_s1 + $0x60] sm:$0xff]  ;;  %v3380_v29 = vld [vmem:[%s3485_s6 + $0x90] sm:$0xff]  }
  0x1a   : > { %v3546_v42 = vpack.c.b16 %v802_v35, %v801_v34  ;;  %v3568_v53 = vunpack.c.h.bf16 %v252_v44  ;;  %v3572_v54 = vunpack.c.l.bf16 %v258_v45  ;;  %v3574_v55 = vunpack.c.h.bf16 %v258_v45 }
  0x1b   : > { %v335_v58 = vpack.c.bf16 %v3557_v48, %v3557_v48  ;;  %v336_v59 = vpack.c.bf16 %v3559_v49, %v3559_v49  ;;  %v347_v60 = vpack.c.bf16 %v3562_v50, %v3562_v50  ;;  %v348_v61 = vpack.c.bf16 %v3564_v51, %v3564_v51 }
  0x1c   : > { %1653 = vmatpush.bf16.msra.mxu0 %v3242_v5  ;;  %3398 = vmatpush.bf16.msra.mxu1 %v3242_v5  ;;  %v351_v62 = vpack.c.bf16 %v3566_v52, %v3566_v52  ;;  %v352_v63 = vpack.c.bf16 %v3568_v53, %v3568_v53  ;;  %v355_v0 = vpack.c.bf16 %v3572_v54, %v3572_v54  ;;  %v281_v21 = vunpack.c.l.bf16 %v227_v2  ;;  %v3247_v2 = vld [vmem:[%s4758_s1 + $0x40] sm:$0xff] }
  0x1d   : > { %3399 = vmatpush.bf16.msra.mxu2 %v3242_v5  ;;  %3400 = vmatpush.bf16.msra.mxu3 %v3242_v5  ;;  %v356_v1 = vpack.c.bf16 %v3574_v55, %v3574_v55  ;;  %v783_v5 = vunpack.c.l.b16 %v335_v58  ;;  %v784_v6 = vunpack.c.l.b16 %v336_v59  ;;  %v795_v7 = vunpack.c.l.b16 %v347_v60 }
  0x1e   : > { %v796_v8 = vunpack.c.l.b16 %v348_v61  ;;  %v800_v18 = vunpack.c.l.b16 %v352_v63  ;;  %v803_v19 = vunpack.c.l.b16 %v355_v0  ;;  %v414_v30 = vrot.slane %v3494_v9, 1 }
  0x1f   : > { %v804_v20 = vunpack.c.l.b16 %v356_v1  ;;  %v3611_v24 = vpack.c.b16 %v784_v6, %v783_v5  ;;  %v417_v32 = vrot.slane %v281_v21, 1  ;;  %v559_v33 = vrot.slane %v3494_v9, 2  ;;  %v230_v1 = vld [vmem:[%s3485_s6 + $0x14] sm:$0x1] }
  0x20   : > { %1654 = vmatpush.bf16.msra.mxu0 %v3241_v14  ;;  %3401 = vmatpush.bf16.msra.mxu1 %v3241_v14  ;;  %v3613_v25 = vpack.c.b16 %v796_v8, %v795_v7  ;;  %v560_v34 = vrot.slane %v3496_v10, 2  ;;  %v562_v35 = vrot.slane %v281_v21, 2  ;;  %v3633_v40 = vunpack.c.h.bf16 %v3375_v27 }
  0x21   : > { %3402 = vmatpush.bf16.msra.mxu2 %v3241_v14  ;;  %3403 = vmatpush.bf16.msra.mxu3 %v3241_v14  ;;  %v799_v14 = vunpack.c.l.b16 %v351_v62  ;;  %v3618_v28 = vpack.c.b16 %v804_v20, %v803_v19  ;;  %v3637_v9 = vunpack.c.l.bf16 %v3380_v29  ;;  %v284_v20 = vunpack.c.l.bf16 %v230_v1 }
  0x22   : > { %v561_v45 = vsel %vm558_vm1, %v559_v33, %v560_v34  ;;  %v338_v58 = vpack.c.bf16 %v3633_v40, %v3633_v40 }
  0x23   : > { %v3615_v26 = vpack.c.b16 %v800_v18, %v799_v14  ;;  %v357_v59 = vpack.c.bf16 %v3637_v9, %v3637_v9  ;;  %v671_v63 = vpack.c.bf16 %v561_v45, %v561_v45  ;;  %v422_v33 = vrot.slane %v284_v20, 1 }
  0x24   : > { %1655 = vmatpush.bf16.msra.mxu0 %v3240_v23  ;;  %3404 = vmatpush.bf16.msra.mxu1 %v3240_v23  ;;  %v786_v5 = vunpack.c.l.b16 %v338_v58  ;;  %v3269_v58 = vld [vmem:[%s4758_s1 + $0xf0] sm:$0xff] }
  0x25   : > { %3405 = vmatpush.bf16.msra.mxu2 %v3240_v23  ;;  %3406 = vmatpush.bf16.msra.mxu3 %v3240_v23  ;;  %v3258_v23 = vld [vmem:[%s4758_s1 + $0x98] sm:$0xff]  ;;  %v805_v6 = vunpack.c.l.b16 %v357_v59  ;;  %v973_v18 = vunpack.c.l.b16 %v671_v63  ;;  %v3277_v59 = vld [vmem:[%s4758_s1 + $0x130] sm:$0xff] }
  0x28   : > { %1656 = vmatpush.bf16.msra.mxu0 %v3239_v31  ;;  %3407 = vmatpush.bf16.msra.mxu1 %v3239_v31 }
  0x29   : > { %3408 = vmatpush.bf16.msra.mxu2 %v3239_v31  ;;  %3409 = vmatpush.bf16.msra.mxu3 %v3239_v31  ;;  %v415_v31 = vrot.slane %v3496_v10, 1  ;;  %v3639_v10 = vunpack.c.h.bf16 %v3380_v29 }
  0x2b   : > { %1657 = vmatmul.bf16.vlgmr.msra.gmra.mxu0 %v813_v38  ;;  %1687 = vmatmul.bf16.vlgmr.msra.gmra.mxu1 %v3541_v39  ;;  %v3631_v38 = vunpack.c.l.bf16 %v3375_v27  ;;  %v416_v43 = vsel %vm413_vm0, %v414_v30, %v415_v31  ;;  %v418_v44 = vsel %vm413_vm0, %v415_v31, %v417_v32  ;;  %v358_v60 = vpack.c.bf16 %v3639_v10, %v3639_v10  ;;  %v234_v27 = vld [vmem:[%s3485_s6 + $0x24] sm:$0xff]   ;;  %v264_v30 = vld [vmem:[%s3485_s6 + $0x9c] sm:$0xff]  }
  0x2c   : > { %1738 = vmatpush.bf16.msrb.mxu1 %v3254_v36  ;;  %1697 = vmatmul.bf16.vlgmr.msra.gmra.mxu2 %v3544_v41  ;;  %v3249_v36 = vld [vmem:[%s4758_s1 + $0x50] sm:$0xff]  ;;  %v526_v61 = vpack.c.bf16 %v416_v43, %v416_v43  ;;  %v527_v62 = vpack.c.bf16 %v418_v44, %v418_v44  ;;  %v419_v31 = vrot.slane %v3557_v48, 1  ;;  %v420_v32 = vrot.slane %v3559_v49, 1 }
  0x2d   : > { %1827 = vmatpush.bf16.msrb.mxu2 %v3262_v37  ;;  %1707 = vmatmul.bf16.vlgmr.msra.gmra.mxu3 %v3546_v42  ;;  %v3257_v37 = vld [vmem:[%s4758_s1 + $0x90] sm:$0xff]  ;;  %v806_v7 = vunpack.c.l.b16 %v358_v60  ;;  %v3680_v43 = vunpack.c.h.bf16 %v234_v27  ;;  %v3683_v44 = vunpack.c.l.bf16 %v264_v30  ;;  %v3685_v45 = vunpack.c.h.bf16 %v264_v30  ;;  %v3267_v30 = vld [vmem:[%s4758_s1 + $0xe0] sm:$0xff] }
  0x2e   : > { %v877_v8 = vunpack.c.l.b16 %v526_v61  ;;  %v878_v14 = vunpack.c.l.b16 %v527_v62 }
  0x2f   : > { %v340_v61 = vpack.c.bf16 %v3680_v43, %v3680_v43  ;;  %v359_v62 = vpack.c.bf16 %v3683_v44, %v3683_v44  ;;  %v360_v63 = vpack.c.bf16 %v3685_v45, %v3685_v45 }
  0x30   : > { %1739 = vmatpush.bf16.msrb.mxu1 %v3253_v46  ;;  %v563_v46 = vsel %vm558_vm1, %v560_v34, %v562_v35  ;;  %v564_v34 = vrot.slane %v3557_v48, 2  ;;  %v565_v35 = vrot.slane %v3559_v49, 2  ;;  %v3278_v48 = vld [vmem:[%s4758_s1 + $0x138] sm:$0xff]  ;;  %v421_v49 = vsel %vm413_vm0, %v419_v31, %v420_v32  ;;  %v3275_v31 = vld [vmem:[%s4758_s1 + $0x120] sm:$0xff] }
  0x31   : > { %1828 = vmatpush.bf16.msrb.mxu2 %v3261_v47  ;;  %v3248_v47 = vld [vmem:[%s4758_s1 + $0x48] sm:$0xff]  ;;  %v672_v0 = vpack.c.bf16 %v563_v46, %v563_v46  ;;  %v3270_v46 = vld [vmem:[%s4758_s1 + $0xf8] sm:$0xff]  ;;  %2005 = vmatpush.bf16.msrb.mxu0 %v3278_v48  ;;  %v424_v48 = vrot.slane %v3631_v38, 1 }
  0x32   : > { %1916 = vmatpush.bf16.msrb.mxu3 %v3270_v46  ;;  %v3381_v46 = vld [vmem:[%s3485_s6 + $0xa8] sm:$0xff]  }
  0x33   : > { %v974_v19 = vunpack.c.l.b16 %v672_v0  ;;  %v528_v0 = vpack.c.bf16 %v421_v49, %v421_v49  ;;  %v425_v49 = vrot.slane %v3633_v40, 1 }
  0x34   : > { %1740 = vmatpush.bf16.msrb.mxu1 %v3252_v56  ;;  %v3256_v56 = vld [vmem:[%s4758_s1 + $0x88] sm:$0xff] }
  0x35   : > { %1829 = vmatpush.bf16.msrb.mxu2 %v3260_v57  ;;  %v337_v57 = vpack.c.bf16 %v3631_v38, %v3631_v38  ;;  %v1005_v29 = vpack.c.b16 %v974_v19, %v973_v18  ;;  %2006 = vmatpush.bf16.msrb.mxu0 %v3277_v59  ;;  %v808_v18 = vunpack.c.l.b16 %v360_v63  ;;  %v879_v19 = vunpack.c.l.b16 %v528_v0 }
  0x36   : > { %1917 = vmatpush.bf16.msrb.mxu3 %v3269_v58  ;;  %v426_v63 = vsel %vm413_vm0, %v424_v48, %v425_v49 }
  0x38   : > { %1741 = vmatpush.bf16.msrb.mxu1 %v3251_v3  ;;  %v3255_v3 = vld [vmem:[%s4758_s1 + $0x80] sm:$0xff] }
  0x39   : > { %1830 = vmatpush.bf16.msrb.mxu2 %v3259_v4  ;;  %v785_v4 = vunpack.c.l.b16 %v337_v57 }
  0x3b   : > { %1662 = vmatmul.bf16.gmra.mxu0 %v3611_v24  ;;  %1692 = vmatmul.bf16.gmra.mxu1 %v3613_v25  ;;  %v3668_v21 = vpack.c.b16 %v786_v5, %v785_v4  ;;  %v233_v4 = vld [vmem:[%s3485_s6 + $0x20] sm:$0x1]  ;;  %v3268_v5 = vld [vmem:[%s4758_s1 + $0xe8] sm:$0xff] }
  0x3c   : > { %1742 = vmatpush.bf16.msrb.mxu1 %v3250_v22  ;;  %1702 = vmatmul.bf16.gmra.mxu2 %v3615_v26  ;;  %v3670_v22 = vpack.c.b16 %v806_v7, %v805_v6  ;;  %v3276_v6 = vld [vmem:[%s4758_s1 + $0x128] sm:$0xff] }
  0x3d   : > { %1831 = vmatpush.bf16.msrb.mxu2 %v3258_v23  ;;  %1712 = vmatmul.bf16.gmra.mxu3 %v3618_v28  ;;  %v909_v23 = vpack.c.b16 %v878_v14, %v877_v8  ;;  %v788_v8 = vunpack.c.l.b16 %v340_v61  ;;  %v807_v14 = vunpack.c.l.b16 %v359_v62  ;;  %v3745_v61 = vunpack.c.l.bf16 %v3381_v46 }
  0x3e   : > { %1918 = vmatpush.bf16.msrb.mxu3 %v3268_v5  ;;  %2007 = vmatpush.bf16.msrb.mxu0 %v3276_v6  ;;  %v3747_v62 = vunpack.c.h.bf16 %v3381_v46 }
  0x40   : > { %1743 = vmatpush.bf16.msrb.mxu1 %v3249_v36  ;;  %v567_v36 = vrot.slane %v284_v20, 2 }
  0x41   : > { %1832 = vmatpush.bf16.msrb.mxu2 %v3257_v37  ;;  %v3678_v37 = vunpack.c.l.bf16 %v234_v27 }
  0x42   : > { %v568_v57 = vsel %vm558_vm1, %v565_v35, %v567_v36  ;;  %1919 = vmatpush.bf16.msrb.mxu3 %v3267_v30  ;;  %2008 = vmatpush.bf16.msrb.mxu0 %v3275_v31 }
  0x43   : > { %v339_v60 = vpack.c.bf16 %v3678_v37, %v3678_v37 }
  0x44   : > { %1744 = vmatpush.bf16.msrb.mxu1 %v3248_v47  ;;  %v423_v47 = vsel %vm413_vm0, %v420_v32, %v422_v33  ;;  %v3727_v33 = vpack.c.b16 %v808_v18, %v807_v14  ;;  %v530_v14 = vpack.c.bf16 %v426_v63, %v426_v63 }
  0x45   : > { %1833 = vmatpush.bf16.msrb.mxu2 %v3256_v56  ;;  %v566_v56 = vsel %vm558_vm1, %v564_v34, %v565_v35  ;;  %v529_v1 = vpack.c.bf16 %v423_v47, %v423_v47  ;;  %v787_v7 = vunpack.c.l.b16 %v339_v60  ;;  %v3376_v35 = vld [vmem:[%s3485_s6 + $0x30] sm:$0xff]  }
  0x46   : > { %v3739_v59 = vunpack.c.l.bf16 %v3376_v35  ;;  %v3741_v60 = vunpack.c.h.bf16 %v3376_v35  ;;  %v881_v48 = vunpack.c.l.b16 %v530_v14 }
  0x47   : > { %v880_v20 = vunpack.c.l.b16 %v529_v1  ;;  %v3725_v32 = vpack.c.b16 %v788_v8, %v787_v7  ;;  %v361_v7 = vpack.c.bf16 %v3745_v61, %v3745_v61  ;;  %v362_v8 = vpack.c.bf16 %v3747_v62, %v3747_v62 }
  0x48   : > { %1745 = vmatpush.bf16.msrb.mxu1 %v3247_v2  ;;  %v673_v2 = vpack.c.bf16 %v566_v56, %v566_v56  ;;  %v569_v56 = vrot.slane %v3631_v38, 2  ;;  %v3266_v38 = vld [vmem:[%s4758_s1 + $0xd8] sm:$0xff]  ;;  %v341_v5 = vpack.c.bf16 %v3739_v59, %v3739_v59  ;;  %v342_v6 = vpack.c.bf16 %v3741_v60, %v3741_v60 }
  0x49   : > { %1834 = vmatpush.bf16.msrb.mxu2 %v3255_v3  ;;  %v674_v3 = vpack.c.bf16 %v568_v57, %v568_v57  ;;  %v3729_v34 = vpack.c.b16 %v880_v20, %v879_v19  ;;  %v570_v57 = vrot.slane %v3633_v40, 2  ;;  %v3274_v40 = vld [vmem:[%s4758_s1 + $0x118] sm:$0xff]  ;;  %1920 = vmatpush.bf16.msrb.mxu3 %v3266_v38  ;;  %v809_v35 = vunpack.c.l.b16 %v361_v7  ;;  %v3271_v38 = vld [vmem:[%s4758_s1 + $0x100] sm:$0xff] }
  0x4a   : > { %2009 = vmatpush.bf16.msrb.mxu0 %v3274_v40  ;;  %v789_v30 = vunpack.c.l.b16 %v341_v5  ;;  %v790_v31 = vunpack.c.l.b16 %v342_v6  ;;  %v810_v46 = vunpack.c.l.b16 %v362_v8  ;;  %v430_v5 = vrot.slane %v3680_v43, 1 }
  0x4b   : > { %1667 = vmatmul.bf16.gmra.mxu0 %v3668_v21  ;;  %1746 = vmatmul.bf16.vlgmr.msrb.gmra.mxu1 %v909_v23  ;;  %v975_v23 = vunpack.c.l.b16 %v673_v2  ;;  %v976_v27 = vunpack.c.l.b16 %v674_v3  ;;  %v571_v1 = vsel %vm558_vm1, %v569_v56, %v570_v57  ;;  %v3265_v3 = vld [vmem:[%s4758_s1 + $0xd0] sm:$0xff]  ;;  %v574_v7 = vrot.slane %v3678_v37, 2 }
  0x4c   : > { %1835 = vmatmul.bf16.vlgmr.msrb.gmra.mxu2 %v1005_v29  ;;  %v287_v29 = vunpack.c.l.bf16 %v233_v4  ;;  %v3273_v4 = vld [vmem:[%s4758_s1 + $0x110] sm:$0xff]  ;;  %v675_v19 = vpack.c.bf16 %v571_v1, %v571_v1  ;;  %v3788_v40 = vpack.c.b16 %v790_v31, %v789_v30  ;;  %v3790_v63 = vpack.c.b16 %v810_v46, %v809_v35  ;;  %v240_v1 = vld [vmem:[%s3485_s6 + $0x3c] sm:$0xff]  }
  0x4d   : > { %1717 = vmatmul.bf16.gmra.mxu3 %v3670_v22  ;;  %v3732_v36 = vpack.c.b16 %v976_v27, %v975_v23  ;;  %v236_v23 = vld [vmem:[%s3485_s6 + $0x2c] sm:$0x1]  ;;  %v575_v8 = vrot.slane %v3680_v43, 2 }
  0x4e   : > { %v427_v47 = vrot.slane %v287_v29, 1  ;;  %v572_v58 = vrot.slane %v287_v29, 2  ;;  %1921 = vmatpush.bf16.msrb.mxu3 %v3265_v3  ;;  %2010 = vmatpush.bf16.msrb.mxu0 %v3273_v4  ;;  %v3264_v27 = vld [vmem:[%s4758_s1 + $0xc8] sm:$0xff]  ;;  %4800 = vst [vmem:[#allocation2_spill] sm:$0xff] %v3790_v63  ;;  %v270_v3 = vld [vmem:[%s3485_s6 + $0xb4] sm:$0xff]   ;;  %v429_v4 = vrot.slane %v3678_v37, 1 }
  0x4f   : > { %v3272_v29 = vld [vmem:[%s4758_s1 + $0x108] sm:$0xff] }
  0x50   : > { %v428_v0 = vsel %vm413_vm0, %v425_v49, %v427_v47  ;;  %v573_v2 = vsel %vm558_vm1, %v570_v57, %v572_v58  ;;  %v977_v47 = vunpack.c.l.b16 %v675_v19  ;;  %v290_v57 = vunpack.c.l.bf16 %v236_v23  ;;  %v3263_v58 = vld [vmem:[%s4758_s1 + $0xc0] sm:$0xff] }
  0x51   : > { %v531_v18 = vpack.c.bf16 %v428_v0, %v428_v0  ;;  %v676_v20 = vpack.c.bf16 %v573_v2, %v573_v2  ;;  %v3804_v19 = vunpack.c.h.bf16 %v240_v1  ;;  %v3810_v23 = vunpack.c.h.bf16 %v270_v3 }
  0x52   : > { %1922 = vmatpush.bf16.msrb.mxu3 %v3264_v27  ;;  %2011 = vmatpush.bf16.msrb.mxu0 %v3272_v29  ;;  %v432_v6 = vrot.slane %v290_v57, 1  ;;  %v577_v14 = vrot.slane %v290_v57, 2  ;;  %v431_v37 = vsel %vm413_vm0, %v429_v4, %v430_v5  ;;  %v576_v27 = vsel %vm558_vm1, %v574_v7, %v575_v8  ;;  %v239_v57 = vld [vmem:[%s3485_s6 + $0x38] sm:$0x1] }
  0x53   : > { %v882_v49 = vunpack.c.l.b16 %v531_v18  ;;  %v978_v56 = vunpack.c.l.b16 %v676_v20  ;;  %v3802_v18 = vunpack.c.l.bf16 %v240_v1  ;;  %v3808_v20 = vunpack.c.l.bf16 %v270_v3 }
  0x54   : > { %v433_v43 = vsel %vm413_vm0, %v430_v5, %v432_v6  ;;  %v578_v29 = vsel %vm558_vm1, %v575_v8, %v577_v14  ;;  %v344_v31 = vpack.c.bf16 %v3804_v19, %v3804_v19  ;;  %v364_v46 = vpack.c.bf16 %v3810_v23, %v3810_v23 }
  0x55   : > { %v3792_v0 = vpack.c.b16 %v882_v49, %v881_v48  ;;  %v3795_v2 = vpack.c.b16 %v978_v56, %v977_v47  ;;  %v343_v30 = vpack.c.bf16 %v3802_v18, %v3802_v18  ;;  %v363_v35 = vpack.c.bf16 %v3808_v20, %v3808_v20 }
  0x56   : > { %1923 = vmatpush.bf16.msrb.mxu3 %v3263_v58  ;;  %2012 = vmatpush.bf16.msrb.mxu0 %v3271_v38  ;;  %v532_v48 = vpack.c.bf16 %v431_v37, %v431_v37  ;;  %v533_v49 = vpack.c.bf16 %v433_v43, %v433_v43  ;;  %v677_v47 = vpack.c.bf16 %v576_v27, %v576_v27  ;;  %v792_v38 = vunpack.c.l.b16 %v344_v31 }
  0x57   : > { %4801 = vst [vmem:[#allocation3_spill] sm:$0xff] %v3792_v0  ;;  %v678_v56 = vpack.c.bf16 %v578_v29, %v578_v29  ;;  %v791_v58 = vunpack.c.l.b16 %v343_v30  ;;  %v811_v1 = vunpack.c.l.b16 %v363_v35  ;;  %v812_v3 = vunpack.c.l.b16 %v364_v46 }
  0x58   : > { %4802 = vst [vmem:[#allocation4_spill] sm:$0xff] %v3795_v2  ;;  %v883_v4 = vunpack.c.l.b16 %v532_v48  ;;  %v884_v5 = vunpack.c.l.b16 %v533_v49  ;;  %v979_v6 = vunpack.c.l.b16 %v677_v47  ;;  %v293_v8 = vunpack.c.l.bf16 %v239_v57 }
  0x59   : > { %v980_v7 = vunpack.c.l.b16 %v678_v56  ;;  %v3827_v14 = vpack.c.b16 %v792_v38, %v791_v58  ;;  %v434_v43 = vrot.slane %v3739_v59, 1  ;;  %v435_v27 = vrot.slane %v3741_v60, 1  ;;  %v242_v58 = vld [vmem:[%s3485_s6 + $0x44] sm:$0x1] }
  0x5a   : > { %v437_v29 = vrot.slane %v293_v8, 1  ;;  %v579_v30 = vrot.slane %v3739_v59, 2  ;;  %v580_v31 = vrot.slane %v3741_v60, 2  ;;  %v582_v35 = vrot.slane %v293_v8, 2 }
  0x5b   : > { %1672 = vmatmul.bf16.gmra.mxu0 %v3725_v32  ;;  %1751 = vmatmul.bf16.gmra.mxu1 %v3729_v34  ;;  %4803 = vst [vmem:[#allocation5_spill] sm:$0xff] %v3827_v14  ;;  %v3833_v37 = vpack.c.b16 %v980_v7, %v979_v6  ;;  %v436_v46 = vsel %vm413_vm0, %v434_v43, %v435_v27  ;;  %v439_v8 = vrot.slane %v3802_v18, 1  ;;  %v440_v43 = vrot.slane %v3804_v19, 1 }
  0x5c   : > { %1840 = vmatmul.bf16.gmra.mxu2 %v3732_v36  ;;  %v438_v48 = vsel %vm413_vm0, %v435_v27, %v437_v29  ;;  %v581_v49 = vsel %vm558_vm1, %v579_v30, %v580_v31  ;;  %v583_v47 = vsel %vm558_vm1, %v580_v31, %v582_v35  ;;  %v534_v59 = vpack.c.bf16 %v436_v46, %v436_v46 }
  0x5d   : > { %1722 = vmatmul.bf16.gmra.mxu3 %v3727_v33  ;;  %v535_v56 = vpack.c.bf16 %v438_v48, %v438_v48  ;;  %v679_v60 = vpack.c.bf16 %v581_v49, %v581_v49  ;;  %v680_v57 = vpack.c.bf16 %v583_v47, %v583_v47  ;;  %v584_v29 = vrot.slane %v3802_v18, 2 }
  0x5e   : > { %v885_v38 = vunpack.c.l.b16 %v534_v59  ;;  %v585_v30 = vrot.slane %v3804_v19, 2  ;;  %v441_v35 = vsel %vm413_vm0, %v439_v8, %v440_v43  ;;  %v589_v8 = vrot.slane %v3498_v11, 2 }
  0x5f   : > { %v536_v18 = vpack.c.bf16 %v441_v35, %v441_v35 }
  0x60   : > { %v586_v48 = vsel %vm558_vm1, %v584_v29, %v585_v30 }
  0x61   : > { %v681_v19 = vpack.c.bf16 %v586_v48, %v586_v48 }
  0x6b   : > { %1677 = vmatmul.bf16.gmra.mxu0 %v3788_v40  ;;  %1756 = vmatmul.bf16.gmra.mxu1 %v3792_v0 }
  0x6c   : > { %1845 = vmatmul.bf16.gmra.mxu2 %v3795_v2  ;;  %v3831_v2 = vpack.c.b16 %v884_v5, %v883_v4  ;;  %v982_v4 = vunpack.c.l.b16 %v680_v57  ;;  %v296_v5 = vunpack.c.l.bf16 %v242_v58 }
  0x6d   : > { %1727 = vmatmul.bf16.gmra.mxu3 %v3790_v63  ;;  %v3829_v63 = vpack.c.b16 %v812_v3, %v811_v1  ;;  %v886_v1 = vunpack.c.l.b16 %v535_v56  ;;  %v981_v3 = vunpack.c.l.b16 %v679_v60  ;;  %v245_v56 = vld [vmem:[%s3485_s6 + $0x50] sm:$0x1]  ;;  %v887_v60 = vunpack.c.l.b16 %v536_v18 }
  0x6e   : > { %4804 = vst [vmem:[#allocation6_spill] sm:$0xff] %v3831_v2  ;;  %v442_v27 = vrot.slane %v296_v5, 1  ;;  %v587_v31 = vrot.slane %v296_v5, 2 }
  0x6f   : > { %v3848_v6 = vpack.c.b16 %v886_v1, %v885_v38  ;;  %v3850_v7 = vpack.c.b16 %v982_v4, %v981_v3  ;;  %v299_v38 = vunpack.c.l.bf16 %v245_v56  ;;  %v444_v3 = vrot.slane %v3498_v11, 1 }
  0x70   : > { %v443_v46 = vsel %vm413_vm0, %v440_v43, %v442_v27  ;;  %v588_v49 = vsel %vm558_vm1, %v585_v30, %v587_v31  ;;  %v445_v4 = vrot.slane %v3500_v12, 1  ;;  %v590_v43 = vrot.slane %v3500_v12, 2 }
  0x71   : > { %4805 = vst [vmem:[#allocation7_spill] sm:$0xff] %v3848_v6  ;;  %v537_v47 = vpack.c.bf16 %v443_v46, %v443_v46  ;;  %v682_v59 = vpack.c.bf16 %v588_v49, %v588_v49  ;;  %v447_v5 = vrot.slane %v299_v38, 1  ;;  %v592_v27 = vrot.slane %v299_v38, 2  ;;  %v248_v49 = vld [vmem:[%s3485_s6 + $0x5c] sm:$0x1] }
  0x72   : > { %4806 = vst [vmem:[#allocation8_spill] sm:$0xff] %v3850_v7  ;;  %v446_v29 = vsel %vm413_vm0, %v444_v3, %v445_v4  ;;  %v591_v31 = vsel %vm558_vm1, %v589_v8, %v590_v43  ;;  %v302_v56 = vunpack.c.l.bf16 %v248_v49  ;;  %v449_v38 = vrot.slane %v3562_v50, 1 }
  0x73   : > { %v888_v57 = vunpack.c.l.b16 %v537_v47  ;;  %v984_v58 = vunpack.c.l.b16 %v682_v59  ;;  %v448_v30 = vsel %vm413_vm0, %v445_v4, %v447_v5  ;;  %v593_v35 = vsel %vm558_vm1, %v590_v43, %v592_v27 }
  0x74   : > { %v538_v11 = vpack.c.bf16 %v446_v29, %v446_v29  ;;  %v539_v46 = vpack.c.bf16 %v448_v30, %v448_v30  ;;  %v683_v12 = vpack.c.bf16 %v591_v31, %v591_v31  ;;  %v684_v48 = vpack.c.bf16 %v593_v35, %v593_v35 }
  0x75   : > { %v3865_v1 = vpack.c.b16 %v888_v57, %v887_v60  ;;  %v450_v3 = vrot.slane %v3564_v51, 1  ;;  %v452_v4 = vrot.slane %v302_v56, 1  ;;  %v594_v5 = vrot.slane %v3562_v50, 2 }
  0x76   : > { %v889_v18 = vunpack.c.l.b16 %v538_v11  ;;  %v890_v47 = vunpack.c.l.b16 %v539_v46  ;;  %v986_v59 = vunpack.c.l.b16 %v684_v48  ;;  %v595_v8 = vrot.slane %v3564_v51, 2 }
  0x77   : > { %4807 = vst [vmem:[#allocation9_spill] sm:$0xff] %v3865_v1  ;;  %v597_v43 = vrot.slane %v302_v56, 2  ;;  %v451_v27 = vsel %vm413_vm0, %v449_v38, %v450_v3  ;;  %v453_v29 = vsel %vm413_vm0, %v450_v3, %v452_v4 }
  0x78   : > { %v3882_v60 = vpack.c.b16 %v890_v47, %v889_v18  ;;  %v596_v30 = vsel %vm558_vm1, %v594_v5, %v595_v8  ;;  %v540_v35 = vpack.c.bf16 %v451_v27, %v451_v27  ;;  %v541_v11 = vpack.c.bf16 %v453_v29, %v453_v29  ;;  %v251_v18 = vld [vmem:[%s3485_s6 + $0x68] sm:$0x1] }
  0x79   : > { %v598_v50 = vsel %vm558_vm1, %v595_v8, %v597_v43  ;;  %v685_v48 = vpack.c.bf16 %v596_v30, %v596_v30  ;;  %v305_v38 = vunpack.c.l.bf16 %v251_v18  ;;  %v454_v29 = vrot.slane %v3502_v13, 1 }
  0x7a   : > { %4809 = vst [vmem:[#allocation11_spill] sm:$0xff] %v3882_v60  ;;  %v686_v49 = vpack.c.bf16 %v598_v50, %v598_v50  ;;  %v891_v47 = vunpack.c.l.b16 %v540_v35  ;;  %v455_v30 = vrot.slane %v3507_v15, 1  ;;  %v599_v35 = vrot.slane %v3502_v13, 2 }
  0x7b   : > { %1682 = vmatmul.bf16.gmra.mxu0 %v3827_v14  ;;  %1761 = vmatmul.bf16.gmra.mxu1 %v3831_v2  ;;  %v457_v50 = vrot.slane %v305_v38, 1 }
  0x7c   : > { %1850 = vmatmul.bf16.gmra.mxu2 %v3833_v37  ;;  %v988_v56 = vunpack.c.l.b16 %v686_v49  ;;  %v456_v49 = vsel %vm413_vm0, %v454_v29, %v455_v30 }
  0x7d   : > { %1732 = vmatmul.bf16.gmra.mxu3 %v3829_v63  ;;  %v458_v18 = vsel %vm413_vm0, %v455_v30, %v457_v50 }
  0x8b   : > { %1766 = vmatmul.bf16.gmra.mxu1 %v3848_v6  ;;  %2013 = vmatmul.bf16.vlgmr.msrb.gmra.mxu0 %v3729_v34  ;;  %v983_v34 = vunpack.c.l.b16 %v681_v19  ;;  %v985_v19 = vunpack.c.l.b16 %v683_v12 }
  0x8c   : > { %1855 = vmatmul.bf16.gmra.mxu2 %v3850_v7 }
  0x8d   : > { %1924 = vmatmul.bf16.vlgmr.msrb.gmra.mxu3 %v3611_v24  ;;  %v3867_v24 = vpack.c.b16 %v984_v58, %v983_v34  ;;  %v3888_v58 = vpack.c.b16 %v986_v59, %v985_v19  ;;  %v892_v19 = vunpack.c.l.b16 %v541_v11  ;;  %v987_v59 = vunpack.c.l.b16 %v685_v48 }
  0x8e   : > { %v600_v11 = vrot.slane %v3507_v15, 2  ;;  %v602_v48 = vrot.slane %v305_v38, 2 }
  0x8f   : > { %4808 = vst [vmem:[#allocation10_spill] sm:$0xff] %v3867_v24  ;;  %v3915_v5 = vpack.c.b16 %v892_v19, %v891_v47  ;;  %v3921_v27 = vpack.c.b16 %v988_v56, %v987_v59  ;;  %v542_v59 = vpack.c.bf16 %v456_v49, %v456_v49  ;;  %v543_v56 = vpack.c.bf16 %v458_v18, %v458_v18 }
  0x90   : > { %4810 = vst [vmem:[#allocation12_spill] sm:$0xff] %v3888_v58  ;;  %v601_v47 = vsel %vm558_vm1, %v599_v35, %v600_v11  ;;  %v603_v13 = vsel %vm558_vm1, %v600_v11, %v602_v48  ;;  %v459_v49 = vrot.slane %v3566_v52, 1  ;;  %v460_v18 = vrot.slane %v3568_v53, 1 }
  0x91   : > { %4812 = vst [vmem:[#allocation14_spill] sm:$0xff] %v3915_v5  ;;  %v893_v29 = vunpack.c.l.b16 %v542_v59 }
  0x92   : > { %4813 = vst [vmem:[#allocation15_spill] sm:$0xff] %v3921_v27 }
  0x9b   : > { %1771 = vmatmul.bf16.gmra.mxu1 %v3865_v1  ;;  %2018 = vmatmul.bf16.gmra.mxu0 %v3792_v0  ;;  %v894_v0 = vunpack.c.l.b16 %v543_v56 }
  0x9c   : > { %1860 = vmatmul.bf16.gmra.mxu2 %v3867_v24 }
  0x9d   : > { %1929 = vmatmul.bf16.gmra.mxu3 %v3668_v21  ;;  %v3948_v48 = vpack.c.b16 %v894_v0, %v893_v29  ;;  %v461_v0 = vsel %vm413_vm0, %v459_v49, %v460_v18 }
  0x9e   : > { %v544_v29 = vpack.c.bf16 %v461_v0, %v461_v0 }
  0x9f   : > { %4816 = vst [vmem:[#allocation18_spill] sm:$0xff] %v3948_v48 }
  0xa8   : > { %v3884_v57 = vpop.f32.mrf.mxu0  ;;  %v3886_v34 = vpop.f32.mrf.mxu1 }
  0xab   : > { %1776 = vmatmul.bf16.gmra.mxu1 %v3882_v60  ;;  %2023 = vmatmul.bf16.gmra.mxu0 %v3831_v2  ;;  %v688_v2 = vpack.c.bf16 %v603_v13, %v603_v13 }
  0xac   : > { %1865 = vmatmul.bf16.gmra.mxu2 %v3888_v58  ;;  %v254_v58 = vld [vmem:[%s3485_s6 + $0x74] sm:$0x1] }
  0xad   : > { %1934 = vmatmul.bf16.gmra.mxu3 %v3725_v32  ;;  %v308_v30 = vunpack.c.l.bf16 %v254_v58  ;;  %v990_v35 = vunpack.c.l.b16 %v688_v2  ;;  %v604_v58 = vrot.slane %v3566_v52, 2  ;;  %v605_v2 = vrot.slane %v3568_v53, 2 }
  0xaf   : > { %v3902_v31 = vpop.f32.mrf.mxu2  ;;  %v606_v52 = vsel %vm558_vm1, %v604_v58, %v605_v2 }
  0xb0   : > { %v3904_v51 = vpop.f32.mrf.mxu3  ;;  %v3906_v46 = vpop.f32.mrf.mxu0 }
  0xb1   : > { %v3908_v12 = vpop.f32.mrf.mxu1 }
  0xb7   : > { %v3911_v3 = vpop.f32.mrf.mxu2 }
  0xb8   : > { %v3913_v4 = vpop.f32.mrf.mxu3  ;;  %v3917_v8 = vpop.f32.mrf.mxu0 }
  0xb9   : > { %4811 = vst [vmem:[#allocation13_spill] sm:$0xff] %v3913_v4  ;;  %v3919_v43 = vpop.f32.mrf.mxu1 }
  0xbb   : > { %1781 = vmatmul.bf16.gmra.mxu1 %v3915_v5  ;;  %2028 = vmatmul.bf16.gmra.mxu0 %v3848_v6 }
  0xbc   : > { %1870 = vmatmul.bf16.gmra.mxu2 %v3921_v27  ;;  %v687_v27 = vpack.c.bf16 %v601_v47, %v601_v47 }
  0xbd   : > { %1939 = vmatmul.bf16.gmra.mxu3 %v3788_v40 }
  0xbe   : > { %v989_v50 = vunpack.c.l.b16 %v687_v27  ;;  %v607_v27 = vrot.slane %v308_v30, 2 }
  0xbf   : > { %v3935_v19 = vpop.f32.mrf.mxu2 }
  0xc0   : > { %v3937_v15 = vpop.f32.mrf.mxu3  ;;  %v3939_v38 = vpop.f32.mrf.mxu0  ;;  %v3954_v13 = vpack.c.b16 %v990_v35, %v989_v50  ;;  %v608_v53 = vsel %vm558_vm1, %v605_v2, %v607_v27  ;;  %v689_v35 = vpack.c.bf16 %v606_v52, %v606_v52 }
  0xc1   : > { %4814 = vst [vmem:[#allocation16_spill] sm:$0xff] %v3937_v15  ;;  %v3941_v6 = vpop.f32.mrf.mxu1  ;;  %v462_v15 = vrot.slane %v308_v30, 1 }
  0xc2   : > { %4817 = vst [vmem:[#allocation19_spill] sm:$0xff] %v3954_v13  ;;  %v991_v58 = vunpack.c.l.b16 %v689_v35 }
  0xc3   : > { %v463_v56 = vsel %vm413_vm0, %v460_v18, %v462_v15  ;;  %v257_v18 = vld [vmem:[%s3485_s6 + $0x80] sm:$0x1] }
  0xc4   : > { %v545_v30 = vpack.c.bf16 %v463_v56, %v463_v56  ;;  %v311_v2 = vunpack.c.l.bf16 %v257_v18 }
  0xc7   : > { %v3944_v24 = vpop.f32.mrf.mxu2 }
  0xc8   : > { %v3946_v11 = vpop.f32.mrf.mxu3  ;;  %v3952_v7 = vpop.f32.mrf.mxu0 }
  0xc9   : > { %4815 = vst [vmem:[#allocation17_spill] sm:$0xff] %v3946_v11  ;;  %v1747_v47 = vpop.f32.mrf.mxu1  ;;  %v895_v11 = vunpack.c.l.b16 %v544_v29 }
  0xca   : > { %v1748_v59 = vadd.f32 %v1747_v47, %v3884_v57  ;;  %v690_v47 = vpack.c.bf16 %v608_v53, %v608_v53  ;;  %v465_v53 = vrot.slane %v3511_v17, 1 }
  0xcb   : > { %1786 = vmatmul.bf16.gmra.mxu1 %v3948_v48  ;;  %2033 = vmatmul.bf16.gmra.mxu0 %v3865_v1 }
  0xcc   : > { %1875 = vmatmul.bf16.gmra.mxu2 %v3954_v13  ;;  %v992_v4 = vunpack.c.l.b16 %v690_v47 }
  0xcd   : > { %1944 = vmatmul.bf16.gmra.mxu3 %v3827_v14  ;;  %v896_v14 = vunpack.c.l.b16 %v545_v30  ;;  %v609_v30 = vrot.slane %v3509_v16, 2 }
  0xce   : > { %v3979_v52 = vpack.c.b16 %v992_v4, %v991_v58 }
  0xcf   : > { %v1836_v50 = vpop.f32.mrf.mxu2  ;;  %v3975_v27 = vpack.c.b16 %v896_v14, %v895_v11  ;;  %v610_v14 = vrot.slane %v3511_v17, 2  ;;  %v612_v11 = vrot.slane %v311_v2, 2 }
  0xd0   : > { %v3967_v57 = vpop.f32.mrf.mxu3  ;;  %v3969_v1 = vadd.f32 %v1836_v50, %v1748_v59  ;;  %v3971_v49 = vpop.f32.mrf.mxu0  ;;  %4821 = vst [vmem:[#allocation23_spill] sm:$0xff] %v3979_v52  ;;  %v464_v59 = vrot.slane %v3509_v16, 1  ;;  %v467_v50 = vrot.slane %v311_v2, 1 }
  0xd1   : > { %4818 = vst [vmem:[#allocation20_spill] sm:$0xff] %v3967_v57  ;;  %v1749_v15 = vpop.f32.mrf.mxu1  ;;  %v611_v16 = vsel %vm558_vm1, %v609_v30, %v610_v14  ;;  %v613_v17 = vsel %vm558_vm1, %v610_v14, %v612_v11 }
  0xd2   : > { %v1750_v13 = vadd.f32 %v1749_v15, %v3906_v46  ;;  %4819 = vst [vmem:[#allocation21_spill] sm:$0xff] %v3975_v27  ;;  %v466_v4 = vsel %vm413_vm0, %v464_v59, %v465_v53  ;;  %v691_v58 = vpack.c.bf16 %v611_v16, %v611_v16  ;;  %v692_v2 = vpack.c.bf16 %v613_v17, %v613_v17 }
  0xd3   : > { %v546_v15 = vpack.c.bf16 %v466_v4, %v466_v4 }
  0xd4   : > { %v993_v30 = vunpack.c.l.b16 %v691_v58  ;;  %v615_v58 = vrot.slane %v3574_v55, 2 }
  0xd7   : > { %v1838_v56 = vpop.f32.mrf.mxu2 }
  0xd8   : > { %v3977_v0 = vpop.f32.mrf.mxu3  ;;  %v3983_v57 = vadd.f32 %v1838_v56, %v1750_v13  ;;  %v3985_v46 = vpop.f32.mrf.mxu0  ;;  %v468_v13 = vsel %vm413_vm0, %v465_v53, %v467_v50  ;;  %v897_v53 = vunpack.c.l.b16 %v546_v15 }
  0xd9   : > { %4820 = vst [vmem:[#allocation22_spill] sm:$0xff] %v3977_v0  ;;  %v1752_v29 = vpop.f32.mrf.mxu1  ;;  %v547_v18 = vpack.c.bf16 %v468_v13, %v468_v13  ;;  %v994_v0 = vunpack.c.l.b16 %v692_v2 }
  0xda   : > { %v1753_v35 = vadd.f32 %v1752_v29, %v3917_v8 }
  0xdb   : > { %1791 = vmatmul.bf16.gmra.mxu1 %v3975_v27  ;;  %2038 = vmatmul.bf16.gmra.mxu0 %v3882_v60  ;;  %v898_v50 = vunpack.c.l.b16 %v547_v18  ;;  %v4010_v13 = vpack.c.b16 %v994_v0, %v993_v30 }
  0xdc   : > { %1880 = vmatmul.bf16.gmra.mxu2 %v3979_v52  ;;  %v260_v52 = vld [vmem:[%s3485_s6 + $0x8c] sm:$0x1] }
  0xdd   : > { %1949 = vmatmul.bf16.gmra.mxu3 %v3541_v39  ;;  %v314_v14 = vunpack.c.l.bf16 %v260_v52  ;;  %v4008_v4 = vpack.c.b16 %v898_v50, %v897_v53  ;;  %4824 = vst [vmem:[#allocation26_spill] sm:$0xff] %v4010_v13  ;;  %v614_v52 = vrot.slane %v3572_v54, 2 }
  0xdf   : > { %v1841_v8 = vpop.f32.mrf.mxu2  ;;  %v472_v15 = vrot.slane %v314_v14, 1  ;;  %v617_v2 = vrot.slane %v314_v14, 2 }
  0xe0   : > { %v3998_v47 = vpop.f32.mrf.mxu3  ;;  %v4000_v56 = vadd.f32 %v1841_v8, %v1753_v35  ;;  %v4002_v59 = vpop.f32.mrf.mxu0  ;;  %v470_v8 = vrot.slane %v3574_v55, 1 }
  0xe1   : > { %4822 = vst [vmem:[#allocation24_spill] sm:$0xff] %v3998_v47  ;;  %v1754_v29 = vpop.f32.mrf.mxu1 }
  0xe2   : > { %v1755_v60 = vadd.f32 %v1754_v29, %v3939_v38  ;;  %v469_v38 = vrot.slane %v3572_v54, 1  ;;  %v473_v0 = vsel %vm413_vm0, %v470_v8, %v472_v15  ;;  %v618_v54 = vsel %vm558_vm1, %v615_v58, %v617_v2 }
  0xe3   : > { %v549_v53 = vpack.c.bf16 %v473_v0, %v473_v0  ;;  %v475_v0 = vrot.slane %v3639_v10, 1 }
  0xe5   : > { %v900_v15 = vunpack.c.l.b16 %v549_v53  ;;  %v620_v53 = vrot.slane %v3639_v10, 2 }
  0xe7   : > { %v1843_v47 = vpop.f32.mrf.mxu2 }
  0xe8   : > { %v4006_v11 = vpop.f32.mrf.mxu3  ;;  %v4012_v35 = vadd.f32 %v1843_v47, %v1755_v60  ;;  %v4014_v16 = vpop.f32.mrf.mxu0  ;;  %v471_v60 = vsel %vm413_vm0, %v469_v38, %v470_v8 }
  0xe9   : > { %4823 = vst [vmem:[#allocation25_spill] sm:$0xff] %v4006_v11  ;;  %v1757_v17 = vpop.f32.mrf.mxu1  ;;  %v548_v29 = vpack.c.bf16 %v471_v60, %v471_v60 }
  0xea   : > { %v1758_v18 = vadd.f32 %v1757_v17, %v3952_v7  ;;  %v616_v7 = vsel %vm558_vm1, %v614_v52, %v615_v58 }
  0xeb   : > { %1796 = vmatmul.bf16.gmra.mxu1 %v4008_v4  ;;  %2043 = vmatmul.bf16.gmra.mxu0 %v3915_v5  ;;  %v693_v17 = vpack.c.bf16 %v616_v7, %v616_v7  ;;  %v694_v5 = vpack.c.bf16 %v618_v54, %v618_v54  ;;  %v899_v8 = vunpack.c.l.b16 %v548_v29 }
  0xec   : > { %1885 = vmatmul.bf16.gmra.mxu2 %v4010_v13  ;;  %v263_v13 = vld [vmem:[%s3485_s6 + $0x98] sm:$0x1] }
  0xed   : > { %1954 = vmatmul.bf16.gmra.mxu3 %v3613_v25  ;;  %v317_v52 = vunpack.c.l.bf16 %v263_v13  ;;  %v995_v11 = vunpack.c.l.b16 %v693_v17  ;;  %v996_v58 = vunpack.c.l.b16 %v694_v5  ;;  %v4039_v60 = vpack.c.b16 %v900_v15, %v899_v8 }
  0xee   : > { %v619_v5 = vrot.slane %v3637_v9, 2 }
  0xef   : > { %v1846_v55 = vpop.f32.mrf.mxu2  ;;  %4827 = vst [vmem:[#allocation29_spill] sm:$0xff] %v4039_v60  ;;  %v4047_v29 = vpack.c.b16 %v996_v58, %v995_v11 }
  0xf0   : > { %v4029_v47 = vpop.f32.mrf.mxu3  ;;  %v4031_v50 = vadd.f32 %v1846_v55, %v1758_v18  ;;  %v4033_v30 = vpop.f32.mrf.mxu0  ;;  %v474_v18 = vrot.slane %v3637_v9, 1  ;;  %v477_v55 = vrot.slane %v317_v52, 1 }
  0xf1   : > { %4825 = vst [vmem:[#allocation27_spill] sm:$0xff] %v4029_v47  ;;  %v1759_v14 = vpop.f32.mrf.mxu1 }
  0xf2   : > { %v1760_v38 = vadd.f32 %v1759_v14, %v3971_v49  ;;  %4828 = vst [vmem:[#allocation30_spill] sm:$0xff] %v4047_v29  ;;  %v622_v14 = vrot.slane %v317_v52, 2  ;;  %v478_v17 = vsel %vm413_vm0, %v475_v0, %v477_v55  ;;  %v266_v55 = vld [vmem:[%s3485_s6 + $0xa4] sm:$0x1] }
  0xf3   : > { %v551_v10 = vpack.c.bf16 %v478_v17, %v478_v17 }
  0xf4   : > { %v623_v9 = vsel %vm558_vm1, %v620_v53, %v622_v14 }
  0xf7   : > { %v1848_v47 = vpop.f32.mrf.mxu2 }
  0xf8   : > { %v4037_v2 = vpop.f32.mrf.mxu3  ;;  %v4043_v7 = vadd.f32 %v1848_v47, %v1760_v38  ;;  %v4045_v54 = vpop.f32.mrf.mxu0  ;;  %v476_v47 = vsel %vm413_vm0, %v474_v18, %v475_v0  ;;  %v696_v0 = vpack.c.bf16 %v623_v9, %v623_v9  ;;  %v625_v9 = vrot.slane %v3685_v45, 2 }
  0xf9   : > { %4826 = vst [vmem:[#allocation28_spill] sm:$0xff] %v4037_v2  ;;  %v1762_v49 = vpop.f32.mrf.mxu1  ;;  %v550_v11 = vpack.c.bf16 %v476_v47, %v476_v47  ;;  %v479_v47 = vrot.slane %v3683_v44, 1 }
  0xfa   : > { %v1763_v13 = vadd.f32 %v1762_v49, %v3985_v46  ;;  %v621_v46 = vsel %vm558_vm1, %v619_v5, %v620_v53  ;;  %v320_v5 = vunpack.c.l.bf16 %v266_v55  ;;  %v998_v53 = vunpack.c.l.b16 %v696_v0  ;;  %v3286_v55 = vld [vmem:[%s4758_s1 + $0x178] sm:$0xff] }
  0xfb   : > { %1801 = vmatmul.bf16.gmra.mxu1 %v4039_v60  ;;  %2048 = vmatmul.bf16.gmra.mxu0 %v3948_v48  ;;  %v695_v18 = vpack.c.bf16 %v621_v46, %v621_v46  ;;  %v901_v48 = vunpack.c.l.b16 %v550_v11  ;;  %v624_v46 = vrot.slane %v3683_v44, 2 }
  0xfc   : > { %1890 = vmatmul.bf16.gmra.mxu2 %v4047_v29  ;;  %v902_v29 = vunpack.c.l.b16 %v551_v10  ;;  %2094 = vmatpush.bf16.msra.mxu1 %v3286_v55  ;;  %v3292_v55 = vld [vmem:[%s4758_s1 + $0x1a8] sm:$0xff] }
  0xfd   : > { %1959 = vmatmul.bf16.gmra.mxu3 %v3544_v41  ;;  %v997_v2 = vunpack.c.l.b16 %v695_v18  ;;  %v626_v44 = vsel %vm558_vm1, %v624_v46, %v625_v9 }
  0xfe   : > { %v4068_v14 = vpack.c.b16 %v902_v29, %v901_v48 }
  0xff   : > { %v1851_v8 = vpop.f32.mrf.mxu2  ;;  %v4078_v18 = vpack.c.b16 %v998_v53, %v997_v2 }
 0x100   : > { %v4060_v38 = vpop.f32.mrf.mxu3  ;;  %v4062_v15 = vadd.f32 %v1851_v8, %v1763_v13  ;;  %v4064_v52 = vpop.f32.mrf.mxu0  ;;  %v480_v13 = vrot.slane %v3685_v45, 1 }
 0x101   : > { %4829 = vst [vmem:[#allocation31_spill] sm:$0xff] %v4060_v38  ;;  %v1764_v58 = vpop.f32.mrf.mxu1  ;;  %v482_v38 = vrot.slane %v320_v5, 1 }
 0x102   : > { %v1765_v49 = vadd.f32 %v1764_v58, %v4002_v59  ;;  %v627_v59 = vrot.slane %v320_v5, 2  ;;  %4830 = vst [vmem:[#allocation32_spill] sm:$0xff] %v4078_v18  ;;  %v481_v29 = vsel %vm413_vm0, %v479_v47, %v480_v13 }
 0x103   : > { %v483_v0 = vsel %vm413_vm0, %v480_v13, %v482_v38  ;;  %v552_v2 = vpack.c.bf16 %v481_v29, %v481_v29  ;;  %v3285_v13 = vld [vmem:[%s4758_s1 + $0x170] sm:$0xff] }
 0x104   : > { %v628_v45 = vsel %vm558_vm1, %v625_v9, %v627_v59  ;;  %v553_v38 = vpack.c.bf16 %v483_v0, %v483_v0  ;;  %v269_v29 = vld [vmem:[%s3485_s6 + $0xb0] sm:$0x1]  ;;  %2095 = vmatpush.bf16.msra.mxu1 %v3285_v13 }
 0x105   : > { %v698_v5 = vpack.c.bf16 %v628_v45, %v628_v45  ;;  %v3284_v45 = vld [vmem:[%s4758_s1 + $0x168] sm:$0xff] }
 0x107   : > { %v1853_v8 = vpop.f32.mrf.mxu2 }
 0x108   : > { %v4072_v17 = vpop.f32.mrf.mxu3  ;;  %v4076_v11 = vadd.f32 %v1853_v8, %v1765_v49  ;;  %v2014_v58 = vpop.f32.mrf.mxu0  ;;  %v697_v49 = vpack.c.bf16 %v626_v44, %v626_v44  ;;  %v3293_v8 = vld [vmem:[%s4758_s1 + $0x1b0] sm:$0xff]  ;;  %v903_v44 = vunpack.c.l.b16 %v552_v2  ;;  %2096 = vmatpush.bf16.msra.mxu1 %v3284_v45  ;;  %v630_v45 = vrot.slane %v3747_v62, 2 }
 0x109   : > { %v1767_v10 = vpop.f32.mrf.mxu1 }
 0x10a   : > { %v1768_v48 = vadd.f32 %v1767_v10, %v4014_v16  ;;  %v3294_v16 = vld [vmem:[%s4758_s1 + $0x1b8] sm:$0xff] }
 0x10b   : > { %1806 = vmatmul.bf16.gmra.mxu1 %v4068_v14  ;;  %2053 = vmatmul.bf16.gmra.mxu0 %v3975_v27  ;;  %v485_v27 = vrot.slane %v3747_v62, 1  ;;  %v3290_v62 = vld [vmem:[%s4758_s1 + $0x198] sm:$0xff] }
 0x10c   : > { %1895 = vmatmul.bf16.gmra.mxu2 %v4078_v18 }
 0x10d   : > { %1964 = vmatmul.bf16.gmra.mxu3 %v3615_v26  ;;  %2183 = vmatpush.bf16.msra.mxu2 %v3294_v16  ;;  %v999_v16 = vunpack.c.l.b16 %v697_v49  ;;  %v3291_v49 = vld [vmem:[%s4758_s1 + $0x1a0] sm:$0xff] }
 0x10f   : > { %v1856_v53 = vpop.f32.mrf.mxu2 }
 0x110   : > { %v1925_v47 = vpop.f32.mrf.mxu3  ;;  %v4101_v46 = vadd.f32 %v1856_v53, %v1768_v48  ;;  %v2016_v10 = vpop.f32.mrf.mxu0  ;;  %v904_v48 = vunpack.c.l.b16 %v553_v38  ;;  %v1000_v53 = vunpack.c.l.b16 %v698_v5  ;;  %v629_v38 = vrot.slane %v3745_v61, 2 }
 0x111   : > { %v1926_v9 = vadd.f32 %v1925_v47, %v3969_v1  ;;  %v1769_v59 = vpop.f32.mrf.mxu1  ;;  %2184 = vmatpush.bf16.msra.mxu2 %v3293_v8  ;;  %v323_v47 = vunpack.c.l.bf16 %v269_v29 }
 0x112   : > { %v1770_v0 = vadd.f32 %v1769_v59, %v4033_v30  ;;  %v4114_v30 = vpack.c.b16 %v904_v48, %v903_v44  ;;  %v4116_v2 = vpack.c.b16 %v1000_v53, %v999_v16  ;;  %v484_v59 = vrot.slane %v3745_v61, 1 }
 0x113   : > { %v4112_v1 = vadd.f32 %v2014_v58, %v1926_v9  ;;  %v487_v18 = vrot.slane %v323_v47, 1  ;;  %v3283_v58 = vld [vmem:[%s4758_s1 + $0x160] sm:$0xff] }
 0x114   : > { %2097 = vmatpush.bf16.msra.mxu1 %v3283_v58 }
 0x115   : > { %2185 = vmatpush.bf16.msra.mxu2 %v3292_v55  ;;  %v632_v55 = vrot.slane %v323_v47, 2 }
 0x117   : > { %v1858_v13 = vpop.f32.mrf.mxu2  ;;  %v633_v16 = vsel %vm558_vm1, %v630_v45, %v632_v55  ;;  %v272_v55 = vld [vmem:[%s3485_s6 + $0xbc] sm:$0x1] }
 0x118   : > { %v1927_v8 = vpop.f32.mrf.mxu3  ;;  %v4127_v5 = vadd.f32 %v1858_v13, %v1770_v0  ;;  %v2019_v44 = vpop.f32.mrf.mxu0  ;;  %v486_v0 = vsel %vm413_vm0, %v484_v59, %v485_v27  ;;  %v700_v58 = vpack.c.bf16 %v633_v16, %v633_v16  ;;  %v326_v16 = vunpack.c.l.bf16 %v272_v55 }
 0x119   : > { %v1928_v9 = vadd.f32 %v1927_v8, %v3983_v57  ;;  %v1772_v29 = vpop.f32.mrf.mxu1  ;;  %2186 = vmatpush.bf16.msra.mxu2 %v3291_v49  ;;  %v3282_v57 = vld [vmem:[%s4758_s1 + $0x158] sm:$0xff]  ;;  %v554_v13 = vpack.c.bf16 %v486_v0, %v486_v0  ;;  %v3281_v49 = vld [vmem:[%s4758_s1 + $0x150] sm:$0xff]  ;;  %v3280_v0 = vld [vmem:[%s4758_s1 + $0x148] sm:$0xff] }
 0x11a   : > { %v1773_v48 = vadd.f32 %v1772_v29, %v4045_v54  ;;  %v488_v54 = vsel %vm413_vm0, %v485_v27, %v487_v18  ;;  %2098 = vmatpush.bf16.msra.mxu1 %v3282_v57  ;;  %v3289_v27 = vld [vmem:[%s4758_s1 + $0x190] sm:$0xff]  ;;  %v3288_v57 = vld [vmem:[%s4758_s1 + $0x188] sm:$0xff]  ;;  %v492_v55 = vrot.slane %v326_v16, 1 }
 0x11b   : > { %v4132_v61 = vadd.f32 %v2016_v10, %v1928_v9  ;;  %1811 = vmatmul.bf16.gmra.mxu1 %v4114_v30  ;;  %2058 = vmatmul.bf16.gmra.mxu0 %v4008_v4  ;;  %v631_v10 = vsel %vm558_vm1, %v629_v38, %v630_v45  ;;  %v555_v8 = vpack.c.bf16 %v488_v54, %v488_v54 }
 0x11c   : > { %1900 = vmatmul.bf16.gmra.mxu2 %v4116_v2  ;;  %v699_v59 = vpack.c.bf16 %v631_v10, %v631_v10  ;;  %v1002_v10 = vunpack.c.l.b16 %v700_v58 }
 0x11d   : > { %1969 = vmatmul.bf16.gmra.mxu3 %v3546_v42  ;;  %2187 = vmatpush.bf16.msra.mxu2 %v3290_v62  ;;  %v906_v54 = vunpack.c.l.b16 %v555_v8 }
 0x11e   : > { %2099 = vmatpush.bf16.msra.mxu1 %v3281_v49 }
 0x11f   : > { %v1861_v53 = vpop.f32.mrf.mxu2 }
 0x120   : > { %v1930_v47 = vpop.f32.mrf.mxu3  ;;  %v4154_v18 = vadd.f32 %v1861_v53, %v1773_v48  ;;  %v2021_v29 = vpop.f32.mrf.mxu0  ;;  %v905_v48 = vunpack.c.l.b16 %v554_v13  ;;  %v3287_v13 = vld [vmem:[%s4758_s1 + $0x180] sm:$0xff] }
 0x121   : > { %v1931_v38 = vadd.f32 %v1930_v47, %v4000_v56  ;;  %v1774_v9 = vpop.f32.mrf.mxu1  ;;  %2188 = vmatpush.bf16.msra.mxu2 %v3289_v27  ;;  %v1001_v56 = vunpack.c.l.b16 %v699_v59  ;;  %v489_v27 = vrot.slane %v3808_v20, 1 }
 0x122   : > { %v1775_v45 = vadd.f32 %v1774_v9, %v4064_v52  ;;  %2100 = vmatpush.bf16.msra.mxu1 %v3280_v0  ;;  %v4167_v47 = vpack.c.b16 %v906_v54, %v905_v48  ;;  %v490_v9 = vrot.slane %v3810_v23, 1  ;;  %v634_v0 = vrot.slane %v3808_v20, 2 }
 0x123   : > { %v4165_v62 = vadd.f32 %v2019_v44, %v1931_v38  ;;  %v4169_v49 = vpack.c.b16 %v1002_v10, %v1001_v56  ;;  %v3279_v44 = vld [vmem:[%s4758_s1 + $0x140] sm:$0xff]  ;;  %v637_v48 = vrot.slane %v326_v16, 2 }
 0x125   : > { %2189 = vmatpush.bf16.msra.mxu2 %v3288_v57  ;;  %4831 = vst [vmem:[#allocation33_spill] sm:$0xff] %v4169_v49  ;;  %v635_v57 = vrot.slane %v3810_v23, 2 }
 0x126   : > { %2101 = vmatpush.bf16.msra.mxu1 %v3279_v44 }
 0x127   : > { %v1863_v52 = vpop.f32.mrf.mxu2  ;;  %v636_v20 = vsel %vm558_vm1, %v634_v0, %v635_v57  ;;  %v638_v23 = vsel %vm558_vm1, %v635_v57, %v637_v48 }
 0x128   : > { %v1932_v53 = vpop.f32.mrf.mxu3  ;;  %v4178_v8 = vadd.f32 %v1863_v52, %v1775_v45  ;;  %v2024_v38 = vpop.f32.mrf.mxu0  ;;  %v493_v45 = vsel %vm413_vm0, %v490_v9, %v492_v55 }
 0x129   : > { %v1933_v59 = vadd.f32 %v1932_v53, %v4012_v35  ;;  %v1777_v58 = vpop.f32.mrf.mxu1  ;;  %2190 = vmatpush.bf16.msra.mxu2 %v3287_v13  ;;  %v491_v35 = vsel %vm413_vm0, %v489_v27, %v490_v9  ;;  %v557_v52 = vpack.c.bf16 %v493_v45, %v493_v45  ;;  %v702_v27 = vpack.c.bf16 %v638_v23, %v638_v23 }
 0x12a   : > { %v1778_v56 = vadd.f32 %v1777_v58, %v3886_v34  ;;  %v556_v16 = vpack.c.bf16 %v491_v35, %v491_v35 }
 0x12b   : > { %v4184_v54 = vadd.f32 %v2021_v29, %v1933_v59  ;;  %1816 = vmatmul.bf16.gmra.mxu1 %v4167_v47  ;;  %2063 = vmatmul.bf16.gmra.mxu0 %v4039_v60  ;;  %v701_v60 = vpack.c.bf16 %v636_v20, %v636_v20  ;;  %v908_v55 = vunpack.c.l.b16 %v557_v52  ;;  %v1004_v57 = vunpack.c.l.b16 %v702_v27 }
 0x12c   : > { %1905 = vmatmul.bf16.gmra.mxu2 %v4169_v49  ;;  %v907_v9 = vunpack.c.l.b16 %v556_v16 }
 0x12d   : > { %1974 = vmatmul.bf16.gmra.mxu3 %v3618_v28  ;;  %v1003_v0 = vunpack.c.l.b16 %v701_v60 }
 0x12e   : > { %v4201_v35 = vpack.c.b16 %v908_v55, %v907_v9 }
 0x12f   : > { %v1866_v29 = vpop.f32.mrf.mxu2  ;;  %v4206_v20 = vpack.c.b16 %v1004_v57, %v1003_v0 }
 0x130   : > { %v1935_v10 = vpop.f32.mrf.mxu3  ;;  %v4195_v53 = vadd.f32 %v1866_v29, %v1778_v56  ;;  %v2026_v59 = vpop.f32.mrf.mxu0  ;;  %4832 = vst [vmem:[#allocation34_spill] sm:$0xff] %v4201_v35 }
 0x131   : > { %v1936_v44 = vadd.f32 %v1935_v10, %v4031_v50  ;;  %v1779_v13 = vpop.f32.mrf.mxu1 }
 0x132   : > { %v1780_v34 = vadd.f32 %v1779_v13, %v3908_v12 }
 0x133   : > { %v4198_v49 = vadd.f32 %v2024_v38, %v1936_v44 }
 0x137   : > { %v1868_v58 = vpop.f32.mrf.mxu2 }
 0x138   : > { %v1937_v48 = vpop.f32.mrf.mxu3  ;;  %v4203_v45 = vadd.f32 %v1868_v58, %v1780_v34  ;;  %v2029_v29 = vpop.f32.mrf.mxu0 }
 0x139   : > { %v1938_v50 = vadd.f32 %v1937_v48, %v4043_v7  ;;  %v1782_v56 = vpop.f32.mrf.mxu1  ;;  %v3309_v48 = vld [vmem:[%s4758_s1 + $0x230] sm:$0xff] }
 0x13a   : > { %v1783_v12 = vadd.f32 %v1782_v56, %v3919_v43 }
 0x13b   : > { %v4208_v38 = vadd.f32 %v2026_v59, %v1938_v50  ;;  %1821 = vmatmul.bf16.gmra.mxu1 %v4201_v35  ;;  %2068 = vmatmul.bf16.gmra.mxu0 %v4068_v14 }
 0x13c   : > { %1910 = vmatmul.bf16.gmra.mxu2 %v4206_v20 }
 0x13d   : > { %1979 = vmatmul.bf16.gmra.mxu3 %v3670_v22 }
 0x13f   : > { %v1871_v60 = vpop.f32.mrf.mxu2 }
 0x140   : > { %v1940_v23 = vpop.f32.mrf.mxu3  ;;  %v4215_v10 = vadd.f32 %v1871_v60, %v1783_v12  ;;  %v2031_v52 = vpop.f32.mrf.mxu0  ;;  %v3308_v12 = vld [vmem:[%s4758_s1 + $0x228] sm:$0xff] }
 0x141   : > { %v1941_v7 = vadd.f32 %v1940_v23, %v4062_v15  ;;  %v1784_v16 = vpop.f32.mrf.mxu1  ;;  %v3302_v15 = vld [vmem:[%s4758_s1 + $0x1f8] sm:$0xff] }
 0x142   : > { %v1785_v13 = vadd.f32 %v1784_v16, %v3941_v6  ;;  %v3310_v6 = vld [vmem:[%s4758_s1 + $0x238] sm:$0xff]  ;;  %2272 = vmatpush.bf16.msra.mxu3 %v3302_v15  ;;  %v3299_v16 = vld [vmem:[%s4758_s1 + $0x1e0] sm:$0xff] }
 0x143   : > { %v4218_v44 = vadd.f32 %v2029_v29, %v1941_v7  ;;  %2361 = vmatpush.bf16.msra.mxu0 %v3310_v6  ;;  %v4834_v15 = vld [vmem:[#allocation2_spill] sm:$0xff] }
 0x147   : > { %v1873_v59 = vpop.f32.mrf.mxu2  ;;  %2362 = vmatpush.bf16.msra.mxu0 %v3309_v48 }
 0x148   : > { %v1942_v27 = vpop.f32.mrf.mxu3  ;;  %v4221_v9 = vadd.f32 %v1873_v59, %v1785_v13  ;;  %v2034_v43 = vpop.f32.mrf.mxu0 }
 0x149   : > { %v1943_v55 = vadd.f32 %v1942_v27, %v4076_v11  ;;  %v1787_v0 = vpop.f32.mrf.mxu1 }
 0x14a   : > { %v1788_v11 = vadd.f32 %v1787_v0, %v3902_v31  ;;  %v3300_v31 = vld [vmem:[%s4758_s1 + $0x1e8] sm:$0xff] }
 0x14b   : > { %v4224_v57 = vadd.f32 %v2031_v52, %v1943_v55  ;;  %2073 = vmatmul.bf16.gmra.mxu0 %v4114_v30  ;;  %2102 = vmatmul.bf16.vlgmr.msra.gmra.mxu1 %v3732_v36  ;;  %v3301_v36 = vld [vmem:[%s4758_s1 + $0x1f0] sm:$0xff]  ;;  %v3307_v52 = vld [vmem:[%s4758_s1 + $0x220] sm:$0xff] }
 0x14c   : > { %2191 = vmatmul.bf16.vlgmr.msra.gmra.mxu2 %v3668_v21  ;;  %2273 = vmatpush.bf16.msra.mxu3 %v3301_v36  ;;  %v3305_v36 = vld [vmem:[%s4758_s1 + $0x210] sm:$0xff] }
 0x14d   : > { %1984 = vmatmul.bf16.gmra.mxu3 %v3727_v33  ;;  %2363 = vmatpush.bf16.msra.mxu0 %v3308_v12  ;;  %v3304_v12 = vld [vmem:[%s4758_s1 + $0x208] sm:$0xff] }
 0x14f   : > { %v1876_v34 = vpop.f32.mrf.mxu2 }
 0x150   : > { %v1945_v58 = vpop.f32.mrf.mxu3  ;;  %v4243_v50 = vadd.f32 %v1876_v34, %v1788_v11  ;;  %v2036_v21 = vpop.f32.mrf.mxu0  ;;  %2274 = vmatpush.bf16.msra.mxu3 %v3300_v31  ;;  %v4288_v31 = vld [vmem:[%s3485_s6 + $0xc8] sm:$0x1] }
 0x151   : > { %v1946_v56 = vadd.f32 %v1945_v58, %v4101_v46  ;;  %v1789_v29 = vpop.f32.mrf.mxu1  ;;  %2364 = vmatpush.bf16.msra.mxu0 %v3307_v52  ;;  %v3297_v58 = vld [vmem:[%s4758_s1 + $0x1d0] sm:$0xff] }
 0x152   : > { %v1790_v23 = vadd.f32 %v1789_v29, %v3911_v3  ;;  %v4833_v3 = vld [vmem:[#allocation4_spill] sm:$0xff] }
 0x153   : > { %v4252_v60 = vadd.f32 %v2034_v43, %v1946_v56  ;;  %v3298_v43 = vld [vmem:[%s4758_s1 + $0x1d8] sm:$0xff] }
 0x154   : > { %2275 = vmatpush.bf16.msra.mxu3 %v3299_v16 }
 0x157   : > { %v1878_v7 = vpop.f32.mrf.mxu2 }
 0x158   : > { %v1947_v46 = vpop.f32.mrf.mxu3  ;;  %v4261_v13 = vadd.f32 %v1878_v7, %v1790_v23  ;;  %v2039_v55 = vpop.f32.mrf.mxu0  ;;  %2276 = vmatpush.bf16.msra.mxu3 %v3298_v43  ;;  %v3295_v43 = vld [vmem:[%s4758_s1 + $0x1c0] sm:$0xff] }
 0x159   : > { %v1948_v59 = vadd.f32 %v1947_v46, %v4127_v5  ;;  %v1792_v27 = vpop.f32.mrf.mxu1  ;;  %v3306_v5 = vld [vmem:[%s4758_s1 + $0x218] sm:$0xff]  ;;  %v4797_v46 = vunpack.c.l.bf16 %v4288_v31 }
 0x15a   : > { %2365 = vmatpush.bf16.msra.mxu0 %v3306_v5  ;;  %v1793_v6 = vadd.f32 %v1792_v27, %v3935_v19  ;;  %v3296_v19 = vld [vmem:[%s4758_s1 + $0x1c8] sm:$0xff] }
 0x15b   : > { %v4264_v0 = vadd.f32 %v2036_v21, %v1948_v59  ;;  %2078 = vmatmul.bf16.gmra.mxu0 %v4167_v47  ;;  %2107 = vmatmul.bf16.gmra.mxu1 %v4833_v3  ;;  %v3382_v21 = vld [vmem:[%s3485_s6 + $0xc0] sm:$0xff]  }
 0x15c   : > { %2196 = vmatmul.bf16.gmra.mxu2 %v3725_v32  ;;  %2277 = vmatpush.bf16.msra.mxu3 %v3297_v58  ;;  %v4298_v7 = vunpack.c.l.bf16 %v3382_v21  ;;  %v711_v58 = vrot.slane %v4797_v46, 1 }
 0x15d   : > { %1989 = vmatmul.bf16.gmra.mxu3 %v4834_v15 }
 0x15e   : > { %2366 = vmatpush.bf16.msra.mxu0 %v3305_v36  ;;  %v708_v27 = vrot.slane %v4298_v7, 1 }
 0x15f   : > { %v1881_v11 = vpop.f32.mrf.mxu2 }
 0x160   : > { %v1950_v34 = vpop.f32.mrf.mxu3  ;;  %v4283_v48 = vadd.f32 %v1881_v11, %v1793_v6  ;;  %v2041_v32 = vpop.f32.mrf.mxu0  ;;  %2278 = vmatpush.bf16.msra.mxu3 %v3296_v19 }
 0x161   : > { %v1951_v56 = vadd.f32 %v1950_v34, %v4154_v18  ;;  %v1794_v29 = vpop.f32.mrf.mxu1  ;;  %v4300_v18 = vunpack.c.h.bf16 %v3382_v21 }
 0x162   : > { %2367 = vmatpush.bf16.msra.mxu0 %v3304_v12  ;;  %v1795_v16 = vadd.f32 %v1794_v29, %v3944_v24 }
 0x163   : > { %v4296_v23 = vadd.f32 %v2039_v55, %v1951_v56  ;;  %v3303_v55 = vld [vmem:[%s4758_s1 + $0x200] sm:$0xff]  ;;  %v709_v24 = vrot.slane %v4300_v18, 1 }
 0x164   : > { %2279 = vmatpush.bf16.msra.mxu3 %v3295_v43 }
 0x165   : > { %v712_v56 = vsel %vm413_vm0, %v709_v24, %v711_v58  ;;  %v4836_v58 = vld [vmem:[#allocation13_spill] sm:$0xff] }
 0x166   : > { %2368 = vmatpush.bf16.msra.mxu0 %v3303_v55  ;;  %v703_v55 = vpack.c.bf16 %v4298_v7, %v4298_v7 }
 0x167   : > { %v1883_v52 = vpop.f32.mrf.mxu2 }
 0x168   : > { %v1952_v59 = vpop.f32.mrf.mxu3  ;;  %v4311_v5 = vadd.f32 %v1883_v52, %v1795_v16  ;;  %v2044_v34 = vpop.f32.mrf.mxu0  ;;  %v716_v16 = vpack.c.bf16 %v712_v56, %v712_v56 }
 0x169   : > { %v1953_v6 = vadd.f32 %v1952_v59, %v4178_v8  ;;  %v1797_v11 = vpop.f32.mrf.mxu1  ;;  %v710_v8 = vsel %vm413_vm0, %v708_v27, %v709_v24 }
 0x16a   : > { %v1798_v29 = vadd.f32 %v1797_v11, %v3904_v51  ;;  %v715_v12 = vpack.c.bf16 %v710_v8, %v710_v8  ;;  %v1046_v51 = vunpack.c.l.b16 %v716_v16  ;;  %v1039_v11 = vunpack.c.l.b16 %v703_v55  ;;  %v4840_v16 = vld [vmem:[#allocation5_spill] sm:$0xff] }
 0x16b   : > { %v4317_v36 = vadd.f32 %v2041_v32, %v1953_v6  ;;  %2083 = vmatmul.bf16.gmra.mxu0 %v4201_v35  ;;  %2112 = vmatmul.bf16.gmra.mxu1 %v3833_v37 }
 0x16c   : > { %2201 = vmatmul.bf16.gmra.mxu2 %v3788_v40  ;;  %v704_v40 = vpack.c.bf16 %v4300_v18, %v4300_v18  ;;  %v1045_v6 = vunpack.c.l.b16 %v715_v12  ;;  %v4839_v12 = vld [vmem:[#allocation8_spill] sm:$0xff] }
 0x16d   : > { %4835 = vst [vmem:[#allocation4_spill] sm:$0xff] %v4317_v36  ;;  %1994 = vmatmul.bf16.gmra.mxu3 %v3829_v63 }
 0x16e   : > { %v1040_v24 = vunpack.c.l.b16 %v704_v40 }
 0x16f   : > { %v1886_v21 = vpop.f32.mrf.mxu2 }
 0x170   : > { %v1955_v19 = vpop.f32.mrf.mxu3  ;;  %v4326_v32 = vadd.f32 %v1886_v21, %v1798_v29  ;;  %v2046_v43 = vpop.f32.mrf.mxu0  ;;  %v4336_v21 = vpack.c.b16 %v1046_v51, %v1045_v6  ;;  %v4341_v35 = vpack.c.b16 %v1040_v24, %v1039_v11  ;;  %v4842_v24 = vld [vmem:[#allocation17_spill] sm:$0xff] }
 0x171   : > { %v1956_v52 = vadd.f32 %v1955_v19, %v4195_v53  ;;  %v1799_v59 = vpop.f32.mrf.mxu1 }
 0x172   : > { %v1800_v8 = vadd.f32 %v1799_v59, %v4836_v58  ;;  %4837 = vst [vmem:[#allocation2_spill] sm:$0xff] %v4336_v21 }
 0x173   : > { %v4333_v27 = vadd.f32 %v2044_v34, %v1956_v52  ;;  %v4841_v52 = vld [vmem:[#allocation16_spill] sm:$0xff] }
 0x177   : > { %v1888_v56 = vpop.f32.mrf.mxu2 }
 0x178   : > { %v1957_v29 = vpop.f32.mrf.mxu3  ;;  %v4338_v53 = vadd.f32 %v1888_v56, %v1800_v8  ;;  %v2049_v36 = vpop.f32.mrf.mxu0 }
 0x179   : > { %v1958_v19 = vadd.f32 %v1957_v29, %v4203_v45  ;;  %v1802_v46 = vpop.f32.mrf.mxu1 }
 0x17a   : > { %v1803_v59 = vadd.f32 %v1802_v46, %v4841_v52 }
 0x17b   : > { %v4343_v34 = vadd.f32 %v2046_v43, %v1958_v19  ;;  %2088 = vmatmul.bf16.gmra.mxu0 %v4336_v21  ;;  %2117 = vmatmul.bf16.gmra.mxu1 %v4839_v12 }
 0x17c   : > { %2206 = vmatmul.bf16.gmra.mxu2 %v4840_v16 }
 0x17d   : > { %4838 = vst [vmem:[#allocation13_spill] sm:$0xff] %v4343_v34  ;;  %1999 = vmatmul.bf16.gmra.mxu3 %v4341_v35 }
 0x17f   : > { %v1891_v55 = vpop.f32.mrf.mxu2 }
 0x180   : > { %v1960_v40 = vpop.f32.mrf.mxu3  ;;  %v4350_v6 = vadd.f32 %v1891_v55, %v1803_v59  ;;  %v2051_v11 = vpop.f32.mrf.mxu0  ;;  %v4844_v59 = vld [vmem:[#allocation10_spill] sm:$0xff] }
 0x181   : > { %v1961_v45 = vadd.f32 %v1960_v40, %v4215_v10  ;;  %v1804_v51 = vpop.f32.mrf.mxu1  ;;  %v4845_v10 = vld [vmem:[#allocation3_spill] sm:$0xff] }
 0x182   : > { %v1805_v58 = vadd.f32 %v1804_v51, %v4842_v24 }
 0x183   : > { %v4353_v43 = vadd.f32 %v2049_v36, %v1961_v45  ;;  %v4846_v36 = vld [vmem:[#allocation20_spill] sm:$0xff] }
 0x187   : > { %v1893_v8 = vpop.f32.mrf.mxu2 }
 0x188   : > { %v1962_v56 = vpop.f32.mrf.mxu3  ;;  %v4356_v29 = vadd.f32 %v1893_v8, %v1805_v58  ;;  %v2054_v46 = vpop.f32.mrf.mxu0  ;;  %v4847_v8 = vld [vmem:[#allocation22_spill] sm:$0xff] }
 0x189   : > { %v1963_v19 = vadd.f32 %v1962_v56, %v4221_v9  ;;  %v1807_v16 = vpop.f32.mrf.mxu1 }
 0x18a   : > { %v1808_v55 = vadd.f32 %v1807_v16, %v4846_v36 }
 0x18b   : > { %v4359_v52 = vadd.f32 %v2051_v11, %v1963_v19  ;;  %2122 = vmatmul.bf16.gmra.mxu1 %v4844_v59  ;;  %2369 = vmatmul.bf16.vlgmr.msra.gmra.mxu0 %v4833_v3 }
 0x18c   : > { %2211 = vmatmul.bf16.gmra.mxu2 %v3541_v39 }
 0x18d   : > { %4843 = vst [vmem:[#allocation8_spill] sm:$0xff] %v4359_v52  ;;  %2280 = vmatmul.bf16.vlgmr.msra.gmra.mxu3 %v4845_v10 }
 0x18f   : > { %v1896_v40 = vpop.f32.mrf.mxu2 }
 0x190   : > { %v1965_v45 = vpop.f32.mrf.mxu3  ;;  %v4366_v51 = vadd.f32 %v1896_v40, %v1808_v55  ;;  %v2056_v58 = vpop.f32.mrf.mxu0  ;;  %v4848_v55 = vld [vmem:[#allocation12_spill] sm:$0xff] }
 0x191   : > { %v1966_v9 = vadd.f32 %v1965_v45, %v4243_v50  ;;  %v1809_v24 = vpop.f32.mrf.mxu1  ;;  %v4849_v50 = vld [vmem:[#allocation6_spill] sm:$0xff] }
 0x192   : > { %v1810_v56 = vadd.f32 %v1809_v24, %v4847_v8 }
 0x193   : > { %v4369_v11 = vadd.f32 %v2054_v46, %v1966_v9  ;;  %v4850_v46 = vld [vmem:[#allocation24_spill] sm:$0xff] }
 0x197   : > { %v1898_v19 = vpop.f32.mrf.mxu2 }
 0x198   : > { %v1967_v3 = vpop.f32.mrf.mxu3  ;;  %v4372_v52 = vadd.f32 %v1898_v19, %v1810_v56  ;;  %v2059_v16 = vpop.f32.mrf.mxu0  ;;  %v4851_v19 = vld [vmem:[#allocation25_spill] sm:$0xff] }
 0x199   : > { %v1968_v39 = vadd.f32 %v1967_v3, %v4261_v13  ;;  %v1812_v10 = vpop.f32.mrf.mxu1 }
 0x19a   : > { %v1813_v40 = vadd.f32 %v1812_v10, %v4850_v46 }
 0x19b   : > { %v4375_v36 = vadd.f32 %v2056_v58, %v1968_v39  ;;  %2127 = vmatmul.bf16.gmra.mxu1 %v4848_v55  ;;  %2374 = vmatmul.bf16.gmra.mxu0 %v3833_v37 }
 0x19c   : > { %2216 = vmatmul.bf16.gmra.mxu2 %v3613_v25 }
 0x19d   : > { %2285 = vmatmul.bf16.gmra.mxu3 %v4849_v50 }
 0x19f   : > { %v1901_v45 = vpop.f32.mrf.mxu2 }
 0x1a0   : > { %v1970_v9 = vpop.f32.mrf.mxu3  ;;  %v4382_v24 = vadd.f32 %v1901_v45, %v1813_v40  ;;  %v2061_v56 = vpop.f32.mrf.mxu0  ;;  %v4852_v40 = vld [vmem:[#allocation15_spill] sm:$0xff] }
 0x1a1   : > { %v1971_v13 = vadd.f32 %v1970_v9, %v4283_v48  ;;  %v1814_v8 = vpop.f32.mrf.mxu1  ;;  %v4853_v48 = vld [vmem:[#allocation7_spill] sm:$0xff] }
 0x1a2   : > { %v1815_v3 = vadd.f32 %v1814_v8, %v4851_v19 }
 0x1a3   : > { %v4385_v58 = vadd.f32 %v2059_v16, %v1971_v13  ;;  %v4854_v16 = vld [vmem:[#allocation27_spill] sm:$0xff] }
 0x1a7   : > { %v1903_v39 = vpop.f32.mrf.mxu2 }
 0x1a8   : > { %v1972_v37 = vpop.f32.mrf.mxu3  ;;  %v4388_v34 = vadd.f32 %v1903_v39, %v1815_v3  ;;  %v2064_v10 = vpop.f32.mrf.mxu0  ;;  %v4855_v39 = vld [vmem:[#allocation28_spill] sm:$0xff] }
 0x1a9   : > { %v1973_v25 = vadd.f32 %v1972_v37, %v4311_v5  ;;  %v1817_v50 = vpop.f32.mrf.mxu1 }
 0x1aa   : > { %v1818_v45 = vadd.f32 %v1817_v50, %v4854_v16 }
 0x1ab   : > { %v4391_v46 = vadd.f32 %v2061_v56, %v1973_v25  ;;  %2132 = vmatmul.bf16.gmra.mxu1 %v4852_v40  ;;  %2379 = vmatmul.bf16.gmra.mxu0 %v4839_v12 }
 0x1ac   : > { %2221 = vmatmul.bf16.gmra.mxu2 %v3544_v41 }
 0x1ad   : > { %2290 = vmatmul.bf16.gmra.mxu3 %v4853_v48 }
 0x1af   : > { %v1906_v9 = vpop.f32.mrf.mxu2 }
 0x1b0   : > { %v1975_v13 = vpop.f32.mrf.mxu3  ;;  %v4398_v8 = vadd.f32 %v1906_v9, %v1818_v45  ;;  %v2066_v3 = vpop.f32.mrf.mxu0  ;;  %v4856_v45 = vld [vmem:[#allocation19_spill] sm:$0xff] }
 0x1b1   : > { %v1976_v5 = vadd.f32 %v1975_v13, %v4326_v32  ;;  %v1819_v19 = vpop.f32.mrf.mxu1  ;;  %v4857_v32 = vld [vmem:[#allocation9_spill] sm:$0xff] }
 0x1b2   : > { %v1820_v37 = vadd.f32 %v1819_v19, %v4855_v39 }
 0x1b3   : > { %v4401_v56 = vadd.f32 %v2064_v10, %v1976_v5  ;;  %v4858_v10 = vld [vmem:[#allocation31_spill] sm:$0xff] }
 0x1b7   : > { %v1908_v25 = vpop.f32.mrf.mxu2 }
 0x1b8   : > { %v1977_v12 = vpop.f32.mrf.mxu3  ;;  %v4404_v21 = vadd.f32 %v1908_v25, %v1820_v37  ;;  %v2069_v50 = vpop.f32.mrf.mxu0 }
 0x1b9   : > { %v1978_v41 = vadd.f32 %v1977_v12, %v4338_v53  ;;  %v1822_v48 = vpop.f32.mrf.mxu1 }
 0x1ba   : > { %v1823_v9 = vadd.f32 %v1822_v48, %v4858_v10 }
 0x1bb   : > { %v4407_v16 = vadd.f32 %v2066_v3, %v1978_v41  ;;  %2137 = vmatmul.bf16.gmra.mxu1 %v4856_v45  ;;  %2384 = vmatmul.bf16.gmra.mxu0 %v4844_v59 }
 0x1bc   : > { %2226 = vmatmul.bf16.gmra.mxu2 %v3615_v26 }
 0x1bd   : > { %2295 = vmatmul.bf16.gmra.mxu3 %v4857_v32 }
 0x1bf   : > { %v1911_v13 = vpop.f32.mrf.mxu2 }
 0x1c0   : > { %v1980_v5 = vpop.f32.mrf.mxu3  ;;  %v4414_v19 = vadd.f32 %v1911_v13, %v1823_v9  ;;  %v2071_v37 = vpop.f32.mrf.mxu0  ;;  %v4859_v13 = vld [vmem:[#allocation23_spill] sm:$0xff] }
 0x1c1   : > { %v1981_v53 = vadd.f32 %v1980_v5, %v4350_v6  ;;  %v1824_v39 = vpop.f32.mrf.mxu1  ;;  %v4860_v6 = vld [vmem:[#allocation11_spill] sm:$0xff] }
 0x1c2   : > { %v1825_v25 = vadd.f32 %v1824_v39, %v4072_v17 }
 0x1c3   : > { %v4417_v3 = vadd.f32 %v2069_v50, %v1981_v53 }
 0x1c7   : > { %v1913_v12 = vpop.f32.mrf.mxu2 }
 0x1c8   : > { %v1982_v59 = vpop.f32.mrf.mxu3  ;;  %v4420_v41 = vadd.f32 %v1913_v12, %v1825_v25  ;;  %v2074_v32 = vpop.f32.mrf.mxu0 }
 0x1c9   : > { %v1983_v26 = vadd.f32 %v1982_v59, %v4356_v29  ;;  %v2103_v48 = vpop.f32.mrf.mxu1 }
 0x1ca   : > { %v2104_v10 = vadd.f32 %v2103_v48, %v4112_v1 }
 0x1cb   : > { %v4424_v9 = vadd.f32 %v2071_v37, %v1983_v26  ;;  %2142 = vmatmul.bf16.gmra.mxu1 %v4859_v13  ;;  %2389 = vmatmul.bf16.gmra.mxu0 %v4848_v55 }
 0x1cc   : > { %2231 = vmatmul.bf16.gmra.mxu2 %v3546_v42 }
 0x1cd   : > { %2300 = vmatmul.bf16.gmra.mxu3 %v4860_v6 }
 0x1cf   : > { %v2192_v50 = vpop.f32.mrf.mxu2 }
 0x1d0   : > { %v1985_v17 = vpop.f32.mrf.mxu3  ;;  %v4431_v53 = vadd.f32 %v2192_v50, %v2104_v10  ;;  %v2076_v29 = vpop.f32.mrf.mxu0 }
 0x1d1   : > { %v1986_v5 = vadd.f32 %v1985_v17, %v4366_v51  ;;  %v2105_v39 = vpop.f32.mrf.mxu1  ;;  %v4861_v51 = vld [vmem:[#allocation26_spill] sm:$0xff] }
 0x1d2   : > { %v2106_v1 = vadd.f32 %v2105_v39, %v4132_v61  ;;  %v4862_v61 = vld [vmem:[#allocation14_spill] sm:$0xff] }
 0x1d3   : > { %v4434_v37 = vadd.f32 %v2074_v32, %v1986_v5 }
 0x1d7   : > { %v2194_v12 = vpop.f32.mrf.mxu2 }
 0x1d8   : > { %v1987_v25 = vpop.f32.mrf.mxu3  ;;  %v4437_v59 = vadd.f32 %v2194_v12, %v2106_v1  ;;  %v2079_v42 = vpop.f32.mrf.mxu0 }
 0x1d9   : > { %v1988_v55 = vadd.f32 %v1987_v25, %v4372_v52  ;;  %v2108_v26 = vpop.f32.mrf.mxu1 }
 0x1da   : > { %v2109_v48 = vadd.f32 %v2108_v26, %v4165_v62 }
 0x1db   : > { %v4440_v6 = vadd.f32 %v2076_v29, %v1988_v55  ;;  %2147 = vmatmul.bf16.gmra.mxu1 %v4861_v51  ;;  %2394 = vmatmul.bf16.gmra.mxu0 %v4852_v40 }
 0x1dc   : > { %2236 = vmatmul.bf16.gmra.mxu2 %v3618_v28 }
 0x1dd   : > { %2305 = vmatmul.bf16.gmra.mxu3 %v4862_v61 }
 0x1df   : > { %v2197_v10 = vpop.f32.mrf.mxu2 }
 0x1e0   : > { %v1990_v32 = vpop.f32.mrf.mxu3  ;;  %v4447_v17 = vadd.f32 %v2197_v10, %v2109_v48  ;;  %v2081_v50 = vpop.f32.mrf.mxu0 }
 0x1e1   : > { %v1991_v52 = vadd.f32 %v1990_v32, %v4382_v24  ;;  %v2110_v5 = vpop.f32.mrf.mxu1  ;;  %v4863_v24 = vld [vmem:[#allocation30_spill] sm:$0xff] }
 0x1e2   : > { %v2111_v62 = vadd.f32 %v2110_v5, %v4184_v54  ;;  %v4864_v54 = vld [vmem:[#allocation18_spill] sm:$0xff] }
 0x1e3   : > { %v4450_v29 = vadd.f32 %v2079_v42, %v1991_v52 }
 0x1e7   : > { %v2199_v1 = vpop.f32.mrf.mxu2 }
 0x1e8   : > { %v1992_v39 = vpop.f32.mrf.mxu3  ;;  %v4453_v25 = vadd.f32 %v2199_v1, %v2111_v62  ;;  %v2084_v28 = vpop.f32.mrf.mxu0 }
 0x1e9   : > { %v1993_v40 = vadd.f32 %v1992_v39, %v4388_v34  ;;  %v2113_v12 = vpop.f32.mrf.mxu1 }
 0x1ea   : > { %v2114_v55 = vadd.f32 %v2113_v12, %v4198_v49 }
 0x1eb   : > { %v4456_v26 = vadd.f32 %v2081_v50, %v1993_v40  ;;  %2152 = vmatmul.bf16.gmra.mxu1 %v4863_v24  ;;  %2399 = vmatmul.bf16.gmra.mxu0 %v4856_v45 }
 0x1ec   : > { %2241 = vmatmul.bf16.gmra.mxu2 %v3670_v22 }
 0x1ed   : > { %2310 = vmatmul.bf16.gmra.mxu3 %v4864_v54 }
 0x1ef   : > { %v2202_v48 = vpop.f32.mrf.mxu2 }
 0x1f0   : > { %v1995_v42 = vpop.f32.mrf.mxu3  ;;  %v4463_v61 = vadd.f32 %v2202_v48, %v2114_v55  ;;  %v2086_v32 = vpop.f32.mrf.mxu0 }
 0x1f1   : > { %v1996_v34 = vadd.f32 %v1995_v42, %v4398_v8  ;;  %v2115_v10 = vpop.f32.mrf.mxu1  ;;  %v4865_v8 = vld [vmem:[#allocation32_spill] sm:$0xff] }
 0x1f2   : > { %v2116_v49 = vadd.f32 %v2115_v10, %v4208_v38  ;;  %v4866_v38 = vld [vmem:[#allocation21_spill] sm:$0xff] }
 0x1f3   : > { %v4466_v52 = vadd.f32 %v2084_v28, %v1996_v34 }
 0x1f7   : > { %v2204_v5 = vpop.f32.mrf.mxu2 }
 0x1f8   : > { %v1997_v50 = vpop.f32.mrf.mxu3  ;;  %v4469_v62 = vadd.f32 %v2204_v5, %v2116_v49  ;;  %v2089_v22 = vpop.f32.mrf.mxu0 }
 0x1f9   : > { %v1998_v45 = vadd.f32 %v1997_v50, %v4404_v21  ;;  %v2118_v39 = vpop.f32.mrf.mxu1 }
 0x1fa   : > { %v2119_v1 = vadd.f32 %v2118_v39, %v4218_v44 }
 0x1fb   : > { %v4472_v40 = vadd.f32 %v2086_v32, %v1998_v45  ;;  %2157 = vmatmul.bf16.gmra.mxu1 %v4865_v8  ;;  %2404 = vmatmul.bf16.gmra.mxu0 %v4859_v13 }
 0x1fc   : > { %2246 = vmatmul.bf16.gmra.mxu2 %v3727_v33 }
 0x1fd   : > { %2315 = vmatmul.bf16.gmra.mxu3 %v4866_v38 }
 0x1ff   : > { %v2207_v12 = vpop.f32.mrf.mxu2 }
 0x200   : > { %v2000_v28 = vpop.f32.mrf.mxu3  ;;  %v4479_v55 = vadd.f32 %v2207_v12, %v2119_v1  ;;  %v2091_v54 = vpop.f32.mrf.mxu0 }
 0x201   : > { %v2001_v21 = vadd.f32 %v2000_v28, %v4414_v19  ;;  %v2120_v42 = vpop.f32.mrf.mxu1 }
 0x202   : > { %v2121_v44 = vadd.f32 %v2120_v42, %v4224_v57 }
 0x203   : > { %v4482_v48 = vadd.f32 %v2089_v22, %v2001_v21  ;;  %v4868_v21 = vld [vmem:[#allocation33_spill] sm:$0xff] }
 0x207   : > { %v2209_v32 = vpop.f32.mrf.mxu2 }
 0x208   : > { %v2002_v34 = vpop.f32.mrf.mxu3  ;;  %v4485_v10 = vadd.f32 %v2209_v32, %v2121_v44  ;;  %v2370_v49 = vpop.f32.mrf.mxu0 }
 0x209   : > { %v2003_v13 = vadd.f32 %v2002_v34, %v4420_v41  ;;  %v2123_v33 = vpop.f32.mrf.mxu1 }
 0x20a   : > { %v2124_v50 = vadd.f32 %v2123_v33, %v4252_v60 }
 0x20b   : > { %v4488_v5 = vadd.f32 %v2091_v54, %v2003_v13  ;;  %2162 = vmatmul.bf16.gmra.mxu1 %v4116_v2  ;;  %2409 = vmatmul.bf16.gmra.mxu0 %v4861_v51  ;;  %v4869_v54 = vld [vmem:[#allocation29_spill] sm:$0xff] }
 0x20c   : > { %2251 = vmatmul.bf16.gmra.mxu2 %v4834_v15 }
 0x20d   : > { %4867 = vst [vmem:[#allocation5_spill] sm:$0xff] %v4488_v5  ;;  %2320 = vmatmul.bf16.gmra.mxu3 %v4008_v4 }
 0x20f   : > { %v2212_v57 = vpop.f32.mrf.mxu2 }
 0x210   : > { %v2281_v19 = vpop.f32.mrf.mxu3  ;;  %v4494_v45 = vadd.f32 %v2212_v57, %v2124_v50  ;;  %v2372_v39 = vpop.f32.mrf.mxu0 }
 0x211   : > { %v2282_v41 = vadd.f32 %v2281_v19, %v4431_v53  ;;  %v4497_v22 = vpop.f32.mrf.mxu1  ;;  %v4508_v53 = vld [vmem:[%s4759_s2] ss:$0 sm:$0xff] }
 0x213   : > { %v2371_v60 = vadd.f32 %v2370_v49, %v2282_v41  ;;  %v717_v41 = vrot.slane %v4298_v7, 2 }
 0x215   : > { %v2454_v44 = vmul.f32 %v4508_v53, %v2371_v60 }
 0x217   : > { %v4499_v1 = vpop.f32.mrf.mxu2 }
 0x218   : > { %v2283_v38 = vpop.f32.mrf.mxu3  ;;  %v2375_v12 = vpop.f32.mrf.mxu0 }
 0x219   : > { %v2284_v28 = vadd.f32 %v2283_v38, %v4437_v59  ;;  %v2128_v51 = vpop.f32.mrf.mxu1 }
 0x21a   : > { %v2129_v15 = vadd.f32 %v2128_v51, %v4296_v23  ;;  %v4516_v23 = vld [vmem:[%s4760_s3] ss:$0 sm:$0xff] }
 0x21b   : > { %v2373_v4 = vadd.f32 %v2372_v39, %v2284_v28  ;;  %2167 = vmatmul.bf16.gmra.mxu1 %v4868_v21  ;;  %2414 = vmatmul.bf16.gmra.mxu0 %v4863_v24  ;;  %v2490_v33 = vadd.f32 %v4516_v23, %v2454_v44  ;;  %v718_v39 = vrot.slane %v4300_v18, 2 }
 0x21c   : > { %2256 = vmatmul.bf16.gmra.mxu2 %v3829_v63 }
 0x21d   : > { %2325 = vmatmul.bf16.gmra.mxu3 %v4869_v54  ;;  %v2522_v38 = vmax.f32 %v2490_v33, 0.0  ;;  %v2455_v28 = vmul.f32 %v4508_v53, %v2373_v4 }
 0x21f   : > { %v2217_v42 = vpop.f32.mrf.mxu2  ;;  %v2491_v4 = vadd.f32 %v4516_v23, %v2455_v28 }
 0x220   : > { %v2286_v59 = vpop.f32.mrf.mxu3  ;;  %v4518_v34 = vadd.f32 %v2217_v42, %v2129_v15  ;;  %v2377_v13 = vpop.f32.mrf.mxu0  ;;  %v276_v42 = vld [vmem:[%s3485_s6 + $0xcc] sm:$0xff]  }
 0x221   : > { %v2287_v24 = vadd.f32 %v2286_v59, %v4447_v17  ;;  %v4521_v32 = vpop.f32.mrf.mxu1  ;;  %v4870_v17 = vunpack.c.l.bf16 %v4288_v31  ;;  %v719_v31 = vsel %vm558_vm1, %v717_v41, %v718_v39  ;;  %v4539_v7 = vunpack.c.l.bf16 %v276_v42 }
 0x222   : > { %v4541_v18 = vunpack.c.h.bf16 %v276_v42  ;;  %v724_v33 = vpack.c.bf16 %v719_v31, %v719_v31  ;;  %v2523_v41 = vmax.f32 %v2491_v4, 0.0 }
 0x223   : > { %v2376_v63 = vadd.f32 %v2375_v12, %v2287_v24  ;;  %v720_v60 = vrot.slane %v4870_v17, 2 }
 0x225   : > { %v2456_v49 = vmul.f32 %v4508_v53, %v2376_v63 }
 0x227   : > { %v2492_v50 = vadd.f32 %v4516_v23, %v2456_v49  ;;  %v4526_v57 = vpop.f32.mrf.mxu2 }
 0x228   : > { %v2288_v19 = vpop.f32.mrf.mxu3  ;;  %v2380_v54 = vpop.f32.mrf.mxu0 }
 0x229   : > { %v2524_v51 = vmax.f32 %v2492_v50, 0.0  ;;  %v2289_v12 = vadd.f32 %v2288_v19, %v4453_v25  ;;  %v2133_v15 = vpop.f32.mrf.mxu1  ;;  %v726_v50 = vpack.c.bf16 %v4539_v7, %v4539_v7  ;;  %v727_v19 = vpack.c.bf16 %v4541_v18, %v4541_v18 }
 0x22a   : > { %v2134_v59 = vadd.f32 %v2133_v15, %v4333_v27  ;;  %v721_v27 = vsel %vm558_vm1, %v718_v39, %v720_v60 }
 0x22b   : > { %v2378_v44 = vadd.f32 %v2377_v13, %v2289_v12  ;;  %v2618_v24 = vmax.f32 %v2522_v38, %v2524_v51  ;;  %2172 = vmatmul.bf16.gmra.mxu1 %v4206_v20  ;;  %2419 = vmatmul.bf16.gmra.mxu0 %v4865_v8  ;;  %v725_v49 = vpack.c.bf16 %v721_v27, %v721_v27  ;;  %v1051_v12 = vunpack.c.l.b16 %v724_v33 }
 0x22c   : > { %2261 = vmatmul.bf16.gmra.mxu2 %v4341_v35  ;;  %v1057_v42 = vunpack.c.l.b16 %v726_v50 }
 0x22d   : > { %v2457_v25 = vmul.f32 %v4508_v53, %v2378_v44  ;;  %2330 = vmatmul.bf16.gmra.mxu3 %v4068_v14  ;;  %v2634_v51 = vpack.c.bf16 %v2618_v24, %v2618_v24  ;;  %v1052_v15 = vunpack.c.l.b16 %v725_v49  ;;  %v1058_v44 = vunpack.c.l.b16 %v727_v19 }
 0x22f   : > { %v2493_v13 = vadd.f32 %v4516_v23, %v2457_v25  ;;  %v2222_v63 = vpop.f32.mrf.mxu2  ;;  %v2698_v25 = vunpack.c.l.b16 %v2634_v51 }
 0x230   : > { %v2291_v8 = vpop.f32.mrf.mxu3  ;;  %v4553_v38 = vadd.f32 %v2222_v63, %v2134_v59  ;;  %v2382_v39 = vpop.f32.mrf.mxu0  ;;  %v4560_v59 = vpack.c.b16 %v1052_v15, %v1051_v12 }
 0x231   : > { %v2525_v17 = vmax.f32 %v2493_v13, 0.0  ;;  %v2292_v14 = vadd.f32 %v2291_v8, %v4463_v61  ;;  %v4556_v35 = vpop.f32.mrf.mxu1  ;;  %v1059_v8 = vpack.c.b16 %v1058_v44, %v1057_v42 }
 0x233   : > { %v2381_v60 = vadd.f32 %v2380_v54, %v2292_v14  ;;  %v2619_v28 = vmax.f32 %v2523_v41, %v2525_v17 }
 0x235   : > { %v2635_v31 = vpack.c.bf16 %v2619_v28, %v2619_v28  ;;  %v2458_v19 = vmul.f32 %v4508_v53, %v2381_v60 }
 0x237   : > { %v2699_v27 = vunpack.c.l.b16 %v2635_v31  ;;  %v4558_v5 = vpop.f32.mrf.mxu2 }
 0x238   : > { %v2293_v4 = vpop.f32.mrf.mxu3  ;;  %v2385_v63 = vpop.f32.mrf.mxu0 }
 0x239   : > { %v2294_v61 = vadd.f32 %v2293_v4, %v4469_v62  ;;  %v2138_v13 = vpop.f32.mrf.mxu1  ;;  %v4563_v54 = vpack.c.b16 %v2699_v27, %v2698_v25 }
 0x23a   : > { %v2139_v24 = vadd.f32 %v2138_v13, %v4353_v43 }
 0x23b   : > { %v2383_v33 = vadd.f32 %v2382_v39, %v2294_v61  ;;  %2177 = vmatmul.bf16.gmra.mxu1 %v4560_v59  ;;  %2424 = vmatmul.bf16.gmra.mxu0 %v4116_v2  ;;  %v2494_v39 = vadd.f32 %v4516_v23, %v2458_v19 }
 0x23c   : > { %2266 = vmatmul.bf16.gmra.mxu2 %v1059_v8 }
 0x23d   : > { %2335 = vmatmul.bf16.gmra.mxu3 %v4114_v30  ;;  %v2526_v12 = vmax.f32 %v2494_v39, 0.0  ;;  %v2459_v60 = vmul.f32 %v4508_v53, %v2383_v33 }
 0x23f   : > { %v2227_v49 = vpop.f32.mrf.mxu2  ;;  %v2495_v4 = vadd.f32 %v4516_v23, %v2459_v60 }
 0x240   : > { %v2296_v50 = vpop.f32.mrf.mxu3  ;;  %v4570_v62 = vadd.f32 %v2227_v49, %v2139_v24  ;;  %v2387_v14 = vpop.f32.mrf.mxu0 }
 0x241   : > { %v2297_v41 = vadd.f32 %v2296_v50, %v4479_v55  ;;  %v4573_v17 = vpop.f32.mrf.mxu1  ;;  %v2527_v24 = vmax.f32 %v2495_v4, 0.0 }
 0x243   : > { %v2386_v43 = vadd.f32 %v2385_v63, %v2297_v41 }
 0x245   : > { %v2460_v28 = vmul.f32 %v4508_v53, %v2386_v43 }
 0x247   : > { %v2496_v2 = vadd.f32 %v4516_v23, %v2460_v28  ;;  %v4578_v51 = vpop.f32.mrf.mxu2 }
 0x248   : > { %v2298_v30 = vpop.f32.mrf.mxu3  ;;  %v2390_v44 = vpop.f32.mrf.mxu0 }
 0x249   : > { %v2528_v15 = vmax.f32 %v2496_v2, 0.0  ;;  %v2299_v42 = vadd.f32 %v2298_v30, %v4485_v10  ;;  %v2143_v55 = vpop.f32.mrf.mxu1 }
 0x24a   : > { %v2144_v31 = vadd.f32 %v2143_v55, %v4369_v11 }
 0x24b   : > { %v2388_v25 = vadd.f32 %v2387_v14, %v2299_v42  ;;  %v2620_v27 = vmax.f32 %v2526_v12, %v2528_v15  ;;  %2429 = vmatmul.bf16.gmra.mxu0 %v4868_v21  ;;  %v2126_v14 = vadd.f32 %v4497_v22, %v4264_v0  ;;  %v4871_v0 = vld [vmem:[#allocation34_spill] sm:$0xff] }
 0x24d   : > { %v2461_v61 = vmul.f32 %v4508_v53, %v2388_v25  ;;  %2340 = vmatmul.bf16.gmra.mxu3 %v4167_v47  ;;  %v2636_v47 = vpack.c.bf16 %v2620_v27, %v2620_v27  ;;  %v2215_v39 = vadd.f32 %v4499_v1, %v2126_v14  ;;  %v278_v25 = vld [vmem:[%s3485_s6 + $0xd4] sm:$0x1] }
 0x24f   : > { %v2497_v13 = vadd.f32 %v4516_v23, %v2461_v61  ;;  %v2232_v63 = vpop.f32.mrf.mxu2  ;;  %v2700_v42 = vunpack.c.l.b16 %v2636_v47  ;;  %v740_v47 = vrot.slane %v4539_v7, 2 }
 0x250   : > { %v2301_v8 = vpop.f32.mrf.mxu3  ;;  %v4588_v33 = vadd.f32 %v2232_v63, %v2144_v31  ;;  %v2392_v50 = vpop.f32.mrf.mxu0 }
 0x251   : > { %v2529_v10 = vmax.f32 %v2497_v13, 0.0  ;;  %v2302_v11 = vadd.f32 %v2301_v8, %v4494_v45  ;;  %v2145_v49 = vpop.f32.mrf.mxu1  ;;  %v332_v8 = vunpack.c.l.bf16 %v278_v25 }
 0x252   : > { %v2146_v21 = vadd.f32 %v2145_v49, %v4375_v36 }
 0x253   : > { %v2391_v19 = vadd.f32 %v2390_v44, %v2302_v11  ;;  %v2621_v41 = vmax.f32 %v2527_v24, %v2529_v10  ;;  %v4872_v24 = vld [vmem:[#allocation4_spill] sm:$0xff] }
 0x255   : > { %v2637_v43 = vpack.c.bf16 %v2621_v41, %v2621_v41  ;;  %v2462_v22 = vmul.f32 %v4508_v53, %v2391_v19  ;;  %v734_v19 = vrot.slane %v332_v8, 1 }
 0x257   : > { %v2234_v28 = vpop.f32.mrf.mxu2  ;;  %v2701_v30 = vunpack.c.l.b16 %v2637_v43  ;;  %v2498_v10 = vadd.f32 %v4516_v23, %v2462_v22  ;;  %v743_v43 = vrot.slane %v332_v8, 2 }
 0x258   : > { %v2303_v2 = vpop.f32.mrf.mxu3  ;;  %v4595_v12 = vadd.f32 %v2234_v28, %v2146_v21  ;;  %v2395_v15 = vpop.f32.mrf.mxu0  ;;  %v731_v21 = vrot.slane %v4539_v7, 1 }
 0x259   : > { %v2304_v45 = vadd.f32 %v2303_v2, %v2215_v39  ;;  %v2148_v60 = vpop.f32.mrf.mxu1  ;;  %v4598_v44 = vpack.c.b16 %v2701_v30, %v2700_v42  ;;  %v2530_v41 = vmax.f32 %v2498_v10, 0.0 }
 0x25a   : > { %v2149_v36 = vadd.f32 %v2148_v60, %v4385_v58 }
 0x25b   : > { %v2393_v55 = vadd.f32 %v2392_v50, %v2304_v45  ;;  %2434 = vmatmul.bf16.gmra.mxu0 %v4206_v20  ;;  %v2131_v20 = vadd.f32 %v4521_v32, %v4872_v24  ;;  %v741_v32 = vrot.slane %v4541_v18, 2 }
 0x25d   : > { %2345 = vmatmul.bf16.gmra.mxu3 %v4871_v0  ;;  %v2220_v49 = vadd.f32 %v4526_v57, %v2131_v20  ;;  %v2463_v39 = vmul.f32 %v4508_v53, %v2393_v55  ;;  %v4873_v0 = vld [vmem:[#allocation2_spill] sm:$0xff]  ;;  %v742_v22 = vsel %vm558_vm1, %v740_v47, %v741_v32 }
 0x25f   : > { %v2237_v1 = vpop.f32.mrf.mxu2 }
 0x260   : > { %v2306_v31 = vpop.f32.mrf.mxu3  ;;  %v4604_v27 = vadd.f32 %v2237_v1, %v2149_v36  ;;  %v2397_v13 = vpop.f32.mrf.mxu0  ;;  %v744_v1 = vsel %vm558_vm1, %v741_v32, %v743_v43 }
 0x261   : > { %v2307_v4 = vadd.f32 %v2306_v31, %v4518_v34  ;;  %v2150_v61 = vpop.f32.mrf.mxu1  ;;  %v732_v34 = vrot.slane %v4541_v18, 1  ;;  %v2499_v18 = vadd.f32 %v4516_v23, %v2463_v39 }
 0x262   : > { %v2151_v58 = vadd.f32 %v2150_v61, %v4391_v46  ;;  %v747_v61 = vpack.c.bf16 %v742_v22, %v742_v22 }
 0x263   : > { %v2396_v63 = vadd.f32 %v2395_v15, %v2307_v4  ;;  %v733_v36 = vsel %vm413_vm0, %v731_v21, %v732_v34  ;;  %v735_v7 = vsel %vm413_vm0, %v732_v34, %v734_v19 }
 0x264   : > { %v738_v4 = vpack.c.bf16 %v733_v36, %v733_v36  ;;  %v1069_v34 = vunpack.c.l.b16 %v747_v61 }
 0x265   : > { %v2464_v11 = vmul.f32 %v4508_v53, %v2396_v63 }
 0x267   : > { %v2500_v50 = vadd.f32 %v4516_v23, %v2464_v11  ;;  %v2239_v46 = vpop.f32.mrf.mxu2 }
 0x268   : > { %v2308_v14 = vpop.f32.mrf.mxu3  ;;  %v4619_v2 = vadd.f32 %v2239_v46, %v2151_v58  ;;  %v2400_v45 = vpop.f32.mrf.mxu0  ;;  %v2531_v58 = vmax.f32 %v2499_v18, 0.0 }
 0x269   : > { %v2532_v28 = vmax.f32 %v2500_v50, 0.0  ;;  %v2309_v57 = vadd.f32 %v2308_v14, %v2220_v49  ;;  %v2153_v30 = vpop.f32.mrf.mxu1  ;;  %v1063_v14 = vunpack.c.l.b16 %v738_v4 }
 0x26a   : > { %v2154_v60 = vadd.f32 %v2153_v30, %v4401_v56 }
 0x26b   : > { %v2398_v15 = vadd.f32 %v2397_v13, %v2309_v57  ;;  %v2622_v42 = vmax.f32 %v2530_v41, %v2532_v28  ;;  %2439 = vmatmul.bf16.gmra.mxu0 %v4560_v59  ;;  %v739_v59 = vpack.c.bf16 %v735_v7, %v735_v7  ;;  %v748_v13 = vpack.c.bf16 %v744_v1, %v744_v1  ;;  %v4874_v41 = vld [vmem:[#allocation13_spill] sm:$0xff] }
 0x26c   : > { %v2136_v46 = vadd.f32 %v4556_v35, %v4874_v41 }
 0x26d   : > { %v2465_v55 = vmul.f32 %v4508_v53, %v2398_v15  ;;  %2350 = vmatmul.bf16.gmra.mxu3 %v4873_v0  ;;  %v2638_v21 = vpack.c.bf16 %v2622_v42, %v2622_v42  ;;  %v1070_v19 = vunpack.c.l.b16 %v748_v13  ;;  %v1064_v47 = vunpack.c.l.b16 %v739_v59  ;;  %v4875_v59 = vld [vmem:[#allocation8_spill] sm:$0xff] }
 0x26e   : > { %v2225_v43 = vadd.f32 %v4558_v5, %v2136_v46 }
 0x26f   : > { %v2501_v56 = vadd.f32 %v4516_v23, %v2465_v55  ;;  %v2242_v31 = vpop.f32.mrf.mxu2  ;;  %v2702_v39 = vunpack.c.l.b16 %v2638_v21  ;;  %v1071_v30 = vpack.c.b16 %v1070_v19, %v1069_v34  ;;  %v1065_v42 = vpack.c.b16 %v1064_v47, %v1063_v14 }
 0x270   : > { %v2311_v25 = vpop.f32.mrf.mxu3  ;;  %v4631_v8 = vadd.f32 %v2242_v31, %v2154_v60  ;;  %v2402_v10 = vpop.f32.mrf.mxu0 }
 0x271   : > { %v2533_v63 = vmax.f32 %v2501_v56, 0.0  ;;  %v2312_v24 = vadd.f32 %v2311_v25, %v4553_v38  ;;  %v2155_v20 = vpop.f32.mrf.mxu1 }
 0x272   : > { %v2156_v11 = vadd.f32 %v2155_v20, %v4407_v16 }
 0x273   : > { %v2401_v49 = vadd.f32 %v2400_v45, %v2312_v24  ;;  %v2623_v50 = vmax.f32 %v2531_v58, %v2533_v63 }
 0x275   : > { %v2639_v32 = vpack.c.bf16 %v2623_v50, %v2623_v50  ;;  %v2466_v5 = vmul.f32 %v4508_v53, %v2401_v49 }
 0x277   : > { %v2703_v28 = vunpack.c.l.b16 %v2639_v32  ;;  %v2244_v38 = vpop.f32.mrf.mxu2  ;;  %v2502_v4 = vadd.f32 %v4516_v23, %v2466_v5 }
 0x278   : > { %v2313_v57 = vpop.f32.mrf.mxu3  ;;  %v4638_v60 = vadd.f32 %v2244_v38, %v2156_v11  ;;  %v2405_v15 = vpop.f32.mrf.mxu0 }
 0x279   : > { %v2314_v16 = vadd.f32 %v2313_v57, %v2225_v43  ;;  %v2158_v45 = vpop.f32.mrf.mxu1  ;;  %v4640_v36 = vpack.c.b16 %v2703_v28, %v2702_v39  ;;  %v2534_v63 = vmax.f32 %v2502_v4, 0.0 }
 0x27a   : > { %v2159_v35 = vadd.f32 %v2158_v45, %v4417_v3  ;;  %v2141_v3 = vadd.f32 %v4573_v17, %v4875_v59 }
 0x27b   : > { %v2403_v7 = vadd.f32 %v2402_v10, %v2314_v16  ;;  %2444 = vmatmul.bf16.gmra.mxu0 %v1071_v30 }
 0x27c   : > { %v2230_v13 = vadd.f32 %v4578_v51, %v2141_v3 }
 0x27d   : > { %2355 = vmatmul.bf16.gmra.mxu3 %v1065_v42 }
 0x27f   : > { %v2247_v18 = vpop.f32.mrf.mxu2 }
 0x280   : > { %v2316_v55 = vpop.f32.mrf.mxu3  ;;  %v4644_v0 = vadd.f32 %v2247_v18, %v2159_v35  ;;  %v2407_v56 = vpop.f32.mrf.mxu0 }
 0x281   : > { %v2317_v22 = vadd.f32 %v2316_v55, %v4570_v62  ;;  %v2160_v1 = vpop.f32.mrf.mxu1  ;;  %v2467_v62 = vmul.f32 %v4508_v53, %v2403_v7 }
 0x282   : > { %v2161_v31 = vadd.f32 %v2160_v1, %v4424_v9 }
 0x283   : > { %v2406_v25 = vadd.f32 %v2405_v15, %v2317_v22  ;;  %v2503_v17 = vadd.f32 %v4516_v23, %v2467_v62 }
 0x285   : > { %v2468_v61 = vmul.f32 %v4508_v53, %v2406_v25  ;;  %v2535_v41 = vmax.f32 %v2503_v17, 0.0 }
 0x287   : > { %v2504_v58 = vadd.f32 %v4516_v23, %v2468_v61  ;;  %v2249_v24 = vpop.f32.mrf.mxu2 }
 0x288   : > { %v2318_v20 = vpop.f32.mrf.mxu3  ;;  %v4655_v11 = vadd.f32 %v2249_v24, %v2161_v31  ;;  %v2410_v49 = vpop.f32.mrf.mxu0 }
 0x289   : > { %v2536_v10 = vmax.f32 %v2504_v58, 0.0  ;;  %v2319_v9 = vadd.f32 %v2318_v20, %v2230_v13 }
 0x28b   : > { %v2408_v50 = vadd.f32 %v2407_v56, %v2319_v9  ;;  %v2624_v21 = vmax.f32 %v2534_v63, %v2536_v10 }
 0x28d   : > { %v2469_v34 = vmul.f32 %v4508_v53, %v2408_v50  ;;  %v2640_v39 = vpack.c.bf16 %v2624_v21, %v2624_v21 }
 0x28f   : > { %v2505_v51 = vadd.f32 %v4516_v23, %v2469_v34  ;;  %v2704_v38 = vunpack.c.l.b16 %v2640_v39 }
 0x290   : > { %v2321_v19 = vpop.f32.mrf.mxu3  ;;  %v2412_v47 = vpop.f32.mrf.mxu0 }
 0x291   : > { %v2537_v46 = vmax.f32 %v2505_v51, 0.0  ;;  %v2322_v14 = vadd.f32 %v2321_v19, %v4588_v33 }
 0x293   : > { %v2411_v32 = vadd.f32 %v2410_v49, %v2322_v14  ;;  %v2625_v43 = vmax.f32 %v2535_v41, %v2537_v46  ;;  %v2163_v14 = vpop.f32.mrf.mxu1 }
 0x295   : > { %v2641_v28 = vpack.c.bf16 %v2625_v43, %v2625_v43  ;;  %v2470_v7 = vmul.f32 %v4508_v53, %v2411_v32 }
 0x297   : > { %v2705_v57 = vunpack.c.l.b16 %v2641_v28  ;;  %v2506_v55 = vadd.f32 %v4516_v23, %v2470_v7 }
 0x298   : > { %v2323_v30 = vpop.f32.mrf.mxu3  ;;  %v2415_v45 = vpop.f32.mrf.mxu0 }
 0x299   : > { %v2324_v16 = vadd.f32 %v2323_v30, %v4595_v12  ;;  %v4662_v15 = vpack.c.b16 %v2705_v57, %v2704_v38  ;;  %v2538_v31 = vmax.f32 %v2506_v55, 0.0 }
 0x29b   : > { %v2413_v42 = vadd.f32 %v2412_v47, %v2324_v16  ;;  %v2252_v47 = vpop.f32.mrf.mxu2  ;;  %v2165_v30 = vpop.f32.mrf.mxu1 }
 0x29d   : > { %v2471_v12 = vmul.f32 %v4508_v53, %v2413_v42 }
 0x2a0   : > { %v2326_v35 = vpop.f32.mrf.mxu3  ;;  %v2417_v33 = vpop.f32.mrf.mxu0 }
 0x2a1   : > { %v2327_v5 = vadd.f32 %v2326_v35, %v4604_v27  ;;  %v2507_v27 = vadd.f32 %v4516_v23, %v2471_v12 }
 0x2a3   : > { %v2416_v18 = vadd.f32 %v2415_v45, %v2327_v5  ;;  %v2539_v24 = vmax.f32 %v2507_v27, 0.0  ;;  %v2254_v16 = vpop.f32.mrf.mxu2  ;;  %v2164_v27 = vadd.f32 %v2163_v14, %v4434_v37 }
 0x2a5   : > { %v2472_v22 = vmul.f32 %v4508_v53, %v2416_v18 }
 0x2a7   : > { %v2508_v1 = vadd.f32 %v4516_v23, %v2472_v22 }
 0x2a8   : > { %v2328_v56 = vpop.f32.mrf.mxu3  ;;  %v2420_v59 = vpop.f32.mrf.mxu0 }
 0x2a9   : > { %v2540_v25 = vmax.f32 %v2508_v1, 0.0  ;;  %v2329_v4 = vadd.f32 %v2328_v56, %v4619_v2  ;;  %v2168_v56 = vpop.f32.mrf.mxu1 }
 0x2ab   : > { %v2418_v3 = vadd.f32 %v2417_v33, %v2329_v4  ;;  %v2626_v61 = vmax.f32 %v2538_v31, %v2540_v25 }
 0x2ad   : > { %v2473_v13 = vmul.f32 %v4508_v53, %v2418_v3  ;;  %v2642_v50 = vpack.c.bf16 %v2626_v61, %v2626_v61 }
 0x2af   : > { %v2509_v58 = vadd.f32 %v4516_v23, %v2473_v13  ;;  %v2706_v2 = vunpack.c.l.b16 %v2642_v50  ;;  %v2253_v13 = vadd.f32 %v2252_v47, %v2164_v27  ;;  %v2166_v50 = vadd.f32 %v2165_v30, %v4440_v6 }
 0x2b0   : > { %v2331_v63 = vpop.f32.mrf.mxu3  ;;  %v2422_v10 = vpop.f32.mrf.mxu0 }
 0x2b1   : > { %v2541_v20 = vmax.f32 %v2509_v58, 0.0  ;;  %v2332_v62 = vadd.f32 %v2331_v63, %v4631_v8 }
 0x2b3   : > { %v2421_v9 = vadd.f32 %v2420_v59, %v2332_v62  ;;  %v2627_v49 = vmax.f32 %v2539_v24, %v2541_v20  ;;  %v2257_v59 = vpop.f32.mrf.mxu2 }
 0x2b5   : > { %v2643_v21 = vpack.c.bf16 %v2627_v49, %v2627_v49  ;;  %v2474_v43 = vmul.f32 %v4508_v53, %v2421_v9  ;;  %v2170_v9 = vpop.f32.mrf.mxu1 }
 0x2b7   : > { %v2707_v17 = vunpack.c.l.b16 %v2643_v21  ;;  %v2510_v38 = vadd.f32 %v4516_v23, %v2474_v43  ;;  %v2169_v21 = vadd.f32 %v2168_v56, %v4450_v29  ;;  %v2171_v43 = vadd.f32 %v2170_v9, %v4456_v26 }
 0x2b8   : > { %v2333_v34 = vpop.f32.mrf.mxu3  ;;  %v2425_v19 = vpop.f32.mrf.mxu0 }
 0x2b9   : > { %v2334_v51 = vadd.f32 %v2333_v34, %v4638_v60  ;;  %v4676_v41 = vpack.c.b16 %v2707_v17, %v2706_v2  ;;  %v2542_v42 = vmax.f32 %v2510_v38, 0.0  ;;  %v2255_v17 = vadd.f32 %v2254_v16, %v2166_v50 }
 0x2ba   : > { %v2258_v34 = vadd.f32 %v2257_v59, %v2169_v21 }
 0x2bb   : > { %v2423_v46 = vadd.f32 %v2422_v10, %v2334_v51  ;;  %v2259_v49 = vpop.f32.mrf.mxu2 }
 0x2bc   : > { %v2260_v29 = vadd.f32 %v2259_v49, %v2171_v43 }
 0x2bd   : > { %v2475_v35 = vmul.f32 %v4508_v53, %v2423_v46 }
 0x2bf   : > { %v2511_v55 = vadd.f32 %v4516_v23, %v2475_v35 }
 0x2c0   : > { %v2336_v32 = vpop.f32.mrf.mxu3  ;;  %v2427_v39 = vpop.f32.mrf.mxu0 }
 0x2c1   : > { %v2337_v8 = vadd.f32 %v2336_v32, %v4644_v0  ;;  %v2543_v12 = vmax.f32 %v2511_v55, 0.0  ;;  %v2173_v32 = vpop.f32.mrf.mxu1 }
 0x2c3   : > { %v2426_v28 = vadd.f32 %v2425_v19, %v2337_v8 }
 0x2c5   : > { %v2476_v57 = vmul.f32 %v4508_v53, %v2426_v28  ;;  %v2262_v28 = vpop.f32.mrf.mxu2 }
 0x2c7   : > { %v2512_v60 = vadd.f32 %v4516_v23, %v2476_v57 }
 0x2c8   : > { %v2338_v45 = vpop.f32.mrf.mxu3  ;;  %v2430_v33 = vpop.f32.mrf.mxu0 }
 0x2c9   : > { %v2544_v7 = vmax.f32 %v2512_v60, 0.0  ;;  %v2339_v5 = vadd.f32 %v2338_v45, %v4655_v11 }
 0x2cb   : > { %v2428_v18 = vadd.f32 %v2427_v39, %v2339_v5  ;;  %v2628_v0 = vmax.f32 %v2542_v42, %v2544_v7 }
 0x2cd   : > { %v2477_v22 = vmul.f32 %v4508_v53, %v2428_v18  ;;  %v2644_v61 = vpack.c.bf16 %v2628_v0, %v2628_v0  ;;  %v2264_v0 = vpop.f32.mrf.mxu2 }
 0x2cf   : > { %v2513_v1 = vadd.f32 %v4516_v23, %v2477_v22  ;;  %v2708_v58 = vunpack.c.l.b16 %v2644_v61 }
 0x2d0   : > { %v2341_v31 = vpop.f32.mrf.mxu3  ;;  %v2432_v4 = vpop.f32.mrf.mxu0 }
 0x2d1   : > { %v2545_v25 = vmax.f32 %v2513_v1, 0.0  ;;  %v2342_v20 = vadd.f32 %v2341_v31, %v2253_v13 }
 0x2d3   : > { %v2629_v3 = vmax.f32 %v2543_v12, %v2545_v25  ;;  %v2431_v2 = vadd.f32 %v2430_v33, %v2342_v20  ;;  %v2175_v33 = vpop.f32.mrf.mxu1  ;;  %v2174_v12 = vadd.f32 %v2173_v32, %v4466_v52 }
 0x2d5   : > { %v2645_v11 = vpack.c.bf16 %v2629_v3, %v2629_v3  ;;  %v2478_v37 = vmul.f32 %v4508_v53, %v2431_v2  ;;  %v2263_v59 = vadd.f32 %v2262_v28, %v2174_v12 }
 0x2d7   : > { %v2709_v63 = vunpack.c.l.b16 %v2645_v11  ;;  %v2514_v8 = vadd.f32 %v4516_v23, %v2478_v37 }
 0x2d8   : > { %v2343_v24 = vpop.f32.mrf.mxu3  ;;  %v2435_v62 = vpop.f32.mrf.mxu0 }
 0x2d9   : > { %v4689_v10 = vpack.c.b16 %v2709_v63, %v2708_v58  ;;  %v2344_v19 = vadd.f32 %v2343_v24, %v2255_v17  ;;  %v2546_v30 = vmax.f32 %v2514_v8, 0.0  ;;  %v2267_v63 = vpop.f32.mrf.mxu2  ;;  %v2176_v24 = vadd.f32 %v2175_v33, %v4472_v40 }
 0x2db   : > { %v2433_v39 = vadd.f32 %v2432_v4, %v2344_v19  ;;  %v2178_v27 = vpop.f32.mrf.mxu1  ;;  %v2265_v9 = vadd.f32 %v2264_v0, %v2176_v24  ;;  %v4876_v19 = vld [vmem:[#allocation5_spill] sm:$0xff] }
 0x2dc   : > { %v2179_v20 = vadd.f32 %v2178_v27, %v4482_v48 }
 0x2dd   : > { %v2479_v60 = vmul.f32 %v4508_v53, %v2433_v39 }
 0x2de   : > { %v2268_v49 = vadd.f32 %v2267_v63, %v2179_v20 }
 0x2df   : > { %v2515_v26 = vadd.f32 %v4516_v23, %v2479_v60 }
 0x2e0   : > { %v2346_v51 = vpop.f32.mrf.mxu3  ;;  %v2437_v14 = vpop.f32.mrf.mxu0 }
 0x2e1   : > { %v2347_v46 = vadd.f32 %v2346_v51, %v2258_v34  ;;  %v2547_v22 = vmax.f32 %v2515_v26, 0.0  ;;  %v2269_v37 = vpop.f32.mrf.mxu2 }
 0x2e3   : > { %v2436_v47 = vadd.f32 %v2435_v62, %v2347_v46  ;;  %v2180_v34 = vpop.f32.mrf.mxu1 }
 0x2e4   : > { %v2181_v46 = vadd.f32 %v2180_v34, %v4876_v19 }
 0x2e5   : > { %v2480_v6 = vmul.f32 %v4508_v53, %v2436_v47 }
 0x2e6   : > { %v2270_v48 = vadd.f32 %v2269_v37, %v2181_v46 }
 0x2e7   : > { %v2516_v38 = vadd.f32 %v4516_v23, %v2480_v6 }
 0x2e8   : > { %v2348_v57 = vpop.f32.mrf.mxu3  ;;  %v2440_v7 = vpop.f32.mrf.mxu0 }
 0x2e9   : > { %v2548_v16 = vmax.f32 %v2516_v38, 0.0  ;;  %v2349_v45 = vadd.f32 %v2348_v57, %v2260_v29 }
 0x2eb   : > { %v2438_v42 = vadd.f32 %v2437_v14, %v2349_v45  ;;  %v2630_v35 = vmax.f32 %v2546_v30, %v2548_v16 }
 0x2ed   : > { %v2481_v5 = vmul.f32 %v4508_v53, %v2438_v42  ;;  %v2646_v31 = vpack.c.bf16 %v2630_v35, %v2630_v35 }
 0x2ef   : > { %v2517_v18 = vadd.f32 %v4516_v23, %v2481_v5  ;;  %v2710_v3 = vunpack.c.l.b16 %v2646_v31 }
 0x2f0   : > { %v2351_v55 = vpop.f32.mrf.mxu3  ;;  %v2442_v4 = vpop.f32.mrf.mxu0 }
 0x2f1   : > { %v2549_v1 = vmax.f32 %v2517_v18, 0.0  ;;  %v2352_v13 = vadd.f32 %v2351_v55, %v2263_v59 }
 0x2f3   : > { %v2631_v56 = vmax.f32 %v2547_v22, %v2549_v1  ;;  %v2441_v62 = vadd.f32 %v2440_v7, %v2352_v13 }
 0x2f5   : > { %v2647_v25 = vpack.c.bf16 %v2631_v56, %v2631_v56  ;;  %v2482_v52 = vmul.f32 %v4508_v53, %v2441_v62 }
 0x2f7   : > { %v2711_v61 = vunpack.c.l.b16 %v2647_v25  ;;  %v2518_v14 = vadd.f32 %v4516_v23, %v2482_v52 }
 0x2f8   : > { %v2353_v11 = vpop.f32.mrf.mxu3  ;;  %v2445_v50 = vpop.f32.mrf.mxu0 }
 0x2f9   : > { %v2720_v58 = vpack.c.b16 %v2711_v61, %v2710_v3  ;;  %v2354_v2 = vadd.f32 %v2353_v11, %v2265_v9  ;;  %v2550_v8 = vmax.f32 %v2518_v14, 0.0 }
 0x2fb   : > { %v2443_v47 = vadd.f32 %v2442_v4, %v2354_v2 }
 0x2fd   : > { %v2483_v39 = vmul.f32 %v4508_v53, %v2443_v47 }
 0x2ff   : > { %v2519_v30 = vadd.f32 %v4516_v23, %v2483_v39 }
 0x300   : > { %v2356_v21 = vpop.f32.mrf.mxu3  ;;  %v2447_v29 = vpop.f32.mrf.mxu0 }
 0x301   : > { %v2357_v17 = vadd.f32 %v2356_v21, %v2268_v49  ;;  %v2551_v45 = vmax.f32 %v2519_v30, 0.0 }
 0x303   : > { %v2446_v51 = vadd.f32 %v2445_v50, %v2357_v17 }
 0x305   : > { %v2484_v40 = vmul.f32 %v4508_v53, %v2446_v51 }
 0x307   : > { %v2520_v32 = vadd.f32 %v4516_v23, %v2484_v40 }
 0x308   : > { %v2358_v43 = vpop.f32.mrf.mxu3 }
 0x309   : > { %v2552_v6 = vmax.f32 %v2520_v32, 0.0  ;;  %v2359_v28 = vadd.f32 %v2358_v43, %v2270_v48 }
 0x30b   : > { %v2632_v38 = vmax.f32 %v2550_v8, %v2552_v6  ;;  %v2448_v57 = vadd.f32 %v2447_v29, %v2359_v28 }
 0x30d   : > { %v2485_v60 = vmul.f32 %v4508_v53, %v2448_v57  ;;  %v2648_v35 = vpack.c.bf16 %v2632_v38, %v2632_v38  ;;  %v3315_v53 = vld [vmem:[%s4761_s4 + $0x20] sm:$0xff] }
 0x30f   : > { %v2521_v16 = vadd.f32 %v4516_v23, %v2485_v60  ;;  %v2712_v5 = vunpack.c.l.b16 %v2648_v35  ;;  %v3311_v23 = vld [vmem:[%s4761_s4] sm:$0xff] }
 0x311   : > { %v2553_v42 = vmax.f32 %v2521_v16, 0.0 }
 0x313   : > { %v2633_v7 = vmax.f32 %v2551_v45, %v2553_v42 }
 0x315   : > { %v2649_v26 = vpack.c.bf16 %v2633_v7, %v2633_v7 }
 0x317   : > { %v2713_v33 = vunpack.c.l.b16 %v2649_v26 }
 0x319   : > { %v2721_v18 = vpack.c.b16 %v2713_v33, %v2712_v5 }
 0x31b   : > { %2730 = vmatpush.bf16.msrb.mxu1 %v2721_v18  ;;  %2792 = vmatpush.bf16.msrb.mxu2 %v2721_v18 }
 0x31f   : > { %2731 = vmatpush.bf16.msrb.mxu1 %v2720_v58  ;;  %2793 = vmatpush.bf16.msrb.mxu2 %v2720_v58 }
 0x323   : > { %2732 = vmatpush.bf16.msrb.mxu1 %v4689_v10  ;;  %2794 = vmatpush.bf16.msrb.mxu2 %v4689_v10  ;;  %v3314_v10 = vld [vmem:[%s4761_s4 + $0x18] sm:$0xff] }
 0x327   : > { %2733 = vmatpush.bf16.msrb.mxu1 %v4676_v41  ;;  %2795 = vmatpush.bf16.msrb.mxu2 %v4676_v41  ;;  %v3318_v41 = vld [vmem:[%s4761_s4 + $0x38] sm:$0xff] }
 0x32b   : > { %2734 = vmatpush.bf16.msrb.mxu1 %v4662_v15  ;;  %2796 = vmatpush.bf16.msrb.mxu2 %v4662_v15  ;;  %v3317_v15 = vld [vmem:[%s4761_s4 + $0x30] sm:$0xff] }
 0x32f   : > { %2735 = vmatpush.bf16.msrb.mxu1 %v4640_v36  ;;  %2797 = vmatpush.bf16.msrb.mxu2 %v4640_v36  ;;  %v3316_v36 = vld [vmem:[%s4761_s4 + $0x28] sm:$0xff] }
 0x333   : > { %2736 = vmatpush.bf16.msrb.mxu1 %v4598_v44  ;;  %2798 = vmatpush.bf16.msrb.mxu2 %v4598_v44  ;;  %v3312_v44 = vld [vmem:[%s4761_s4 + $0x8] sm:$0xff] }
 0x337   : > { %2737 = vmatpush.bf16.msrb.mxu1 %v4563_v54  ;;  %2799 = vmatpush.bf16.msrb.mxu2 %v4563_v54  ;;  %v3313_v54 = vld [vmem:[%s4761_s4 + $0x10] sm:$0xff] }
 0x33a   : > { %2800 = vmatmul.bf16.vlgmr.msrb.gmra.mxu2 %v3315_v53  ;;  %2738 = vmatmul.bf16.vlgmr.msrb.gmra.mxu1 %v3311_v23 }
 0x34a   : > { %2805 = vmatmul.bf16.gmra.mxu2 %v3316_v36  ;;  %2743 = vmatmul.bf16.gmra.mxu1 %v3312_v44 }
 0x35a   : > { %2810 = vmatmul.bf16.gmra.mxu2 %v3317_v15  ;;  %2748 = vmatmul.bf16.gmra.mxu1 %v3313_v54 }
 0x36a   : > { %2815 = vmatmul.bf16.gmra.mxu2 %v3318_v41  ;;  %2753 = vmatmul.bf16.gmra.mxu1 %v3314_v10 }
 0x3b7   : > { %v2739_v0 = vpop.f32.mrf.mxu1 }
 0x3bd   : > { %v2801_v55 = vpop.f32.mrf.mxu2 }
 0x3be   : > { %v2821_v56 = vmax.f32 %v2739_v0, %v2801_v55 }
 0x3bf   : > { %v2741_v22 = vpop.f32.mrf.mxu1 }
 0x3c5   : > { %v2803_v1 = vpop.f32.mrf.mxu2 }
 0x3c6   : > { %v2822_v31 = vmax.f32 %v2741_v22, %v2803_v1 }
 0x3c7   : > { %v2744_v12 = vpop.f32.mrf.mxu1 }
 0x3c8   : > { %v3358_v25 = vpack.c.bf16 %v2822_v31, %v2821_v56 }
 0x3ca   : > { %3359 = vst [vmem:[%s224_s11] sm:$0xff] %v3358_v25  }
 0x3cd   : > { %v2806_v4 = vpop.f32.mrf.mxu2 }
 0x3ce   : > { %v2823_v61 = vmax.f32 %v2744_v12, %v2806_v4 }
 0x3cf   : > { %v2746_v59 = vpop.f32.mrf.mxu1 }
 0x3d5   : > { %v2808_v3 = vpop.f32.mrf.mxu2 }
 0x3d6   : > { %v2824_v27 = vmax.f32 %v2746_v59, %v2808_v3 }
 0x3d7   : > { %v2749_v11 = vpop.f32.mrf.mxu1 }
 0x3d8   : > { %v3363_v13 = vpack.c.bf16 %v2824_v27, %v2823_v61 }
 0x3da   : > { %3383 = vst [vmem:[%s224_s11 + $0x8] sm:$0xff] %v3363_v13  }
 0x3dd   : > { %v2811_v58 = vpop.f32.mrf.mxu2 }
 0x3de   : > { %v2825_v20 = vmax.f32 %v2749_v11, %v2811_v58 }
 0x3df   : > { %v2751_v63 = vpop.f32.mrf.mxu1 }
 0x3e5   : > { %v2813_v24 = vpop.f32.mrf.mxu2 }
 0x3e6   : > { %v2826_v62 = vmax.f32 %v2751_v63, %v2813_v24 }
 0x3e7   : > { %v2754_v49 = vpop.f32.mrf.mxu1 }
 0x3e8   : > { %v3368_v9 = vpack.c.bf16 %v2826_v62, %v2825_v20 }
 0x3ea   : > { %3384 = vst [vmem:[%s224_s11 + $0x10] sm:$0xff] %v3368_v9  }
 0x3ed   : > { %v2816_v50 = vpop.f32.mrf.mxu2 }
 0x3ee   : > { %v2827_v2 = vmax.f32 %v2754_v49, %v2816_v50 }
 0x3ef   : > { %v2756_v21 = vpop.f32.mrf.mxu1 }
 0x3f5   : > { %v2818_v52 = vpop.f32.mrf.mxu2 }
 0x3f6   : > { %v2828_v17 = vmax.f32 %v2756_v21, %v2818_v52 }
 0x3f8   : > { %v3373_v34 = vpack.c.bf16 %v2828_v17, %v2827_v2 }
 0x3fa   : > { %3385 = vst [vmem:[%s224_s11 + $0x18] sm:$0xff] %v3373_v34  }
 0x3fb PF: > { %s15_s18 = sadd.s32 1, %s3427_s18  }
 0x3fc   : > { %p12_p4 = scmp.ge.s32.totalorder %s15_s18, 4  }
 0x3fe   :  { %14 = sbr.rel (!%p12_p4) target bundleno = 1 (0x1), region = 71 }

</bundles_post_ra>
